<compile_context>
chip_gen: v7x
topology: tpu7x:2x2x1
jax: 0.10.0
libtpu: 0.0.40
codegen_flags: <defaults>
</compile_context>

<pallas_src>
import functools

import jax
import jax.numpy as jnp
from jax.experimental import pallas as pl
from jax.experimental.pallas import tpu as pltpu


def _layer_norm(v, scale, bias, eps=1e-5):
    # v is f32; statistics in f32, rsqrt on the EUP. Matches torch var(unbiased=False).
    mean = jnp.mean(v, axis=-1, keepdims=True)
    var = jnp.mean((v - mean) ** 2, axis=-1, keepdims=True)
    return (v - mean) * jax.lax.rsqrt(var + eps) * scale + bias


def _gelu_tanh(v):
    return 0.5 * v * (1.0 + jnp.tanh(jnp.sqrt(2.0 / jnp.pi) * (v + 0.044715 * v ** 3)))


def transformer_block_kernel(
    num_heads,
    x_ref,      # (1, T, E)  bf16 : full sequence (K/V path, consumed only at t == 0)
    xt_ref,     # (1, tq, E) f32  : this query tile (Q / LN + residual path)
    wq_ref,     # (E, E)     bf16
    wkv_ref,    # (E, 2E)    bf16 : [W_k | W_v]
    wo_ref,     # (E, E)     bf16
    bo_ref,     # (1, E)     f32
    w1_ref,     # (E, 4E)    bf16
    b1_ref,     # (1, 4E)    f32
    w2_ref,     # (4E, E)    bf16
    b2_ref,     # (1, E)     f32
    ln1s_ref, ln1b_ref, ln2s_ref, ln2b_ref,   # (1, E) f32
    out_ref,    # (1, tq, E) f32
    kv_ref,     # VMEM scratch (T, 2E) bf16 : cached [K | V] for the current batch
    ctx_ref,    # VMEM scratch (tq, E) bf16 : per-head attention context
):
    T, E = x_ref.shape[1], x_ref.shape[2]
    tq = xt_ref.shape[1]
    head_dim = E // num_heads
    t = pl.program_id(1)
    q_start = t * tq

    # ---- once per batch: full-sequence LayerNorm + fused K/V projection into the VMEM cache --
    @pl.when(t == 0)
    def _():
        h1_full = _layer_norm(
            x_ref[0].astype(jnp.float32), ln1s_ref[...], ln1b_ref[...]
        ).astype(jnp.bfloat16)                                                   # (T, E)
        kv = jnp.dot(h1_full, wkv_ref[...], preferred_element_type=jnp.float32)  # (T, 2E) f32
        kv_ref[...] = kv.astype(jnp.bfloat16)

    # ---- per query tile: LN -> scaled Q projection ----
    x_tile = xt_ref[0]                                                           # (tq, E) f32
    h1_tile = _layer_norm(x_tile, ln1s_ref[...], ln1b_ref[...]).astype(jnp.bfloat16)
    scale = 1.0 / jnp.sqrt(jnp.float32(head_dim))
    q = (jnp.dot(h1_tile, wq_ref[...], preferred_element_type=jnp.float32)
         * scale).astype(jnp.bfloat16)                                           # (tq, E)

    rows = q_start + jax.lax.broadcasted_iota(jnp.int32, (tq, tq), 0)
    neg_big = jnp.float32(-1e30)   # finite fill: avoids (-inf) - (-inf) = NaN edge cases

    # ---- causal multi-head attention against the cached K/V, flash-style over KV blocks ----
    for h in range(num_heads):
        sl_k = slice(h * head_dim, (h + 1) * head_dim)
        sl_v = slice(E + h * head_dim, E + (h + 1) * head_dim)
        q_h = q[:, sl_k]                                                         # (tq, hd) bf16

        def kv_step(j, carry, sl_k=sl_k, sl_v=sl_v, q_h=q_h):
            m, l, acc = carry
            start = pl.multiple_of(j * tq, tq)
            k_blk = kv_ref[pl.ds(start, tq), sl_k]                               # (tq, hd) bf16
            v_blk = kv_ref[pl.ds(start, tq), sl_v]                               # (tq, hd) bf16
            s = jax.lax.dot_general(q_h, k_blk, (((1,), (1,)), ((), ())),
                                    preferred_element_type=jnp.float32)          # (tq, tq)
            cols = j * tq + jax.lax.broadcasted_iota(jnp.int32, (tq, tq), 1)
            s = jnp.where(cols > rows, neg_big, s)
            m_new = jnp.maximum(m, jnp.max(s, axis=-1, keepdims=True))
            alpha = jnp.exp(m - m_new)
            p = jnp.exp(s - m_new)
            l_new = alpha * l + jnp.sum(p, axis=-1, keepdims=True)
            acc_new = alpha * acc + jnp.dot(p.astype(jnp.bfloat16), v_blk,
                                            preferred_element_type=jnp.float32)
            return m_new, l_new, acc_new

        m0 = jnp.full((tq, 1), neg_big, jnp.float32)
        l0 = jnp.zeros((tq, 1), jnp.float32)
        a0 = jnp.zeros((tq, head_dim), jnp.float32)
        # Only the first t+1 KV blocks can be (partially) visible to this query tile.
        m_f, l_f, acc_f = jax.lax.fori_loop(0, t + 1, kv_step, (m0, l0, a0))
        ctx_ref[:, sl_k] = (acc_f * pl.reciprocal(l_f, approx=True)).astype(jnp.bfloat16)

    attn = (jnp.dot(ctx_ref[...], wo_ref[...],
                    preferred_element_type=jnp.float32) + bo_ref[...])           # (tq, E) f32
    x1 = x_tile + attn                      # residual in f32 (dropout = identity)

    # ---- sub-block 2: LayerNorm -> FeedForward(GELU) -> residual ----
    h2 = _layer_norm(x1, ln2s_ref[...], ln2b_ref[...]).astype(jnp.bfloat16)
    f = jnp.dot(h2, w1_ref[...], preferred_element_type=jnp.float32) + b1_ref[...]
    f = _gelu_tanh(f).astype(jnp.bfloat16)
    f = jnp.dot(f, w2_ref[...], preferred_element_type=jnp.float32) + b2_ref[...]
    out_ref[0] = (x1 + f).astype(out_ref.dtype)


def _pick_vmem_limit():
    try:
        cap = pltpu.get_tpu_info().vmem_capacity_bytes
    except Exception:
        return 48 * 1024 * 1024                     # conservative fallback, fits all generations
    # Leave headroom; ~100 MiB on 128-MiB parts (v5e/v6e), ~54 MiB on v7x (64 MiB).
    return min(int(cap * 0.85), 100 * 1024 * 1024)


def transformer_block(x, params, num_heads, q_tile=256):
    B, T, E = x.shape
    H4 = 4 * E
    # Query-tile size: multiple of the sublane (8) if it divides T, else the full sequence.
    tq = q_tile if (T % q_tile == 0) else T
    num_t = T // tq

    bf = jnp.bfloat16
    x_bf = x.astype(bf)
    wq = params["wq"].astype(bf)
    wkv = jnp.concatenate([params["wk"], params["wv"]], axis=1).astype(bf)   # (E, 2E)
    wo = params["wo"].astype(bf)
    w1 = params["w1"].astype(bf)
    w2 = params["w2"].astype(bf)

    kernel = functools.partial(transformer_block_kernel, num_heads)

    def build_call(weight_mode):
        def const_spec(shape):
            zeros = (0,) * len(shape)
            idx = lambda b, t, _z=zeros: _z
            if weight_mode is None:
                return pl.BlockSpec(shape, idx)
            # Grid-invariant blocks: single-buffered (fetched once; no double-buffer benefit).
            return pl.BlockSpec(shape, idx, pipeline_mode=weight_mode)

        in_specs = [
            pl.BlockSpec((1, T, E), lambda b, t: (b, 0, 0)),    # x bf16, full sequence (K/V)
            pl.BlockSpec((1, tq, E), lambda b, t: (b, t, 0)),   # x f32, query tile (Q/residual)
            const_spec((E, E)),          # W_q
            const_spec((E, 2 * E)),      # [W_k | W_v]
            const_spec((E, E)),          # W_out
            const_spec((1, E)),          # b_out
            const_spec((E, H4)),         # W_ff1
            const_spec((1, H4)),         # b_ff1
            const_spec((H4, E)),         # W_ff2
            const_spec((1, E)),          # b_ff2
            const_spec((1, E)),          # ln1 scale ("shift" param)
            const_spec((1, E)),          # ln1 bias
            const_spec((1, E)),          # ln2 scale
            const_spec((1, E)),          # ln2 bias
        ]
        return pl.pallas_call(
            kernel,
            out_shape=jax.ShapeDtypeStruct((B, T, E), jnp.float32),
            grid_spec=pltpu.PrefetchScalarGridSpec(
                num_scalar_prefetch=0,
                grid=(B, num_t),
                in_specs=in_specs,
                out_specs=pl.BlockSpec((1, tq, E), lambda b, t: (b, t, 0)),
                scratch_shapes=[
                    pltpu.VMEM((T, 2 * E), jnp.bfloat16),   # cached [K | V] for current batch
                    pltpu.VMEM((tq, E), jnp.bfloat16),      # per-head context
                ],
            ),
            compiler_params=pltpu.CompilerParams(
                # t must be sequential ("arbitrary"): the K/V cache is filled at t == 0 and
                # reused for t > 0. B stays "parallel" for megacore sharding.
                dimension_semantics=("parallel", "arbitrary"),
                vmem_limit_bytes=_pick_vmem_limit(),
            ),
        )

    args = (
        x_bf, x,
        wq, wkv, wo, params["bo"],
        w1, params["b1"], w2, params["b2"],
        params["ln1_scale"], params["ln1_bias"],
        params["ln2_scale"], params["ln2_bias"],
    )
    try:
        return build_call(pl.Buffered(1))(*args)
    except Exception:
        # Fallback for JAX builds that reject pipeline_mode / Buffered(1).
        return build_call(None)(*args)


def transformer_block_ref(x, params, num_heads):
    """Pure-JAX f32 reference mirroring the PyTorch forward (dropout = identity)."""
    B, T, E = x.shape
    hd = E // num_heads

    def ln(v, s, b, eps=1e-5):
        m = jnp.mean(v, axis=-1, keepdims=True)
        var = jnp.mean((v - m) ** 2, axis=-1, keepdims=True)
        return (v - m) / jnp.sqrt(var + eps) * s + b

    h = ln(x, params["ln1_scale"][0], params["ln1_bias"][0])
    q = h @ params["wq"]; k = h @ params["wk"]; v = h @ params["wv"]
    q = q.reshape(B, T, num_heads, hd).transpose(0, 2, 1, 3)
    k = k.reshape(B, T, num_heads, hd).transpose(0, 2, 1, 3)
    v = v.reshape(B, T, num_heads, hd).transpose(0, 2, 1, 3)
    s = jnp.einsum("bhqd,bhkd->bhqk", q, k)
    mask = jnp.triu(jnp.ones((T, T), bool), k=1)
    s = jnp.where(mask, -jnp.inf, s)
    p = jax.nn.softmax(s / jnp.sqrt(jnp.float32(hd)), axis=-1)
    ctx = jnp.einsum("bhqk,bhkd->bhqd", p, v).transpose(0, 2, 1, 3).reshape(B, T, E)
    attn = ctx @ params["wo"] + params["bo"][0]
    x1 = x + attn
    h2 = ln(x1, params["ln2_scale"][0], params["ln2_bias"][0])
    f = h2 @ params["w1"] + params["b1"][0]
    f = 0.5 * f * (1.0 + jnp.tanh(jnp.sqrt(2.0 / jnp.pi) * (f + 0.044715 * f ** 3)))
    f = f @ params["w2"] + params["b2"][0]
    return x1 + f


def init_params(key, emb_dim):
    ks = jax.random.split(key, 8)
    s = 0.02
    E, H4 = emb_dim, 4 * emb_dim
    return {
        "wq": s * jax.random.normal(ks[0], (E, E), jnp.float32),
        "wk": s * jax.random.normal(ks[1], (E, E), jnp.float32),
        "wv": s * jax.random.normal(ks[2], (E, E), jnp.float32),
        "wo": s * jax.random.normal(ks[3], (E, E), jnp.float32),
        "bo": s * jax.random.normal(ks[4], (1, E), jnp.float32),
        "w1": s * jax.random.normal(ks[5], (E, H4), jnp.float32),
        "b1": s * jax.random.normal(ks[6], (1, H4), jnp.float32),
        "w2": s * jax.random.normal(ks[7], (H4, E), jnp.float32),
        "b2": jnp.zeros((1, E), jnp.float32),
        "ln1_scale": jnp.ones((1, E), jnp.float32),   # LayerNorm.shift (init ones)
        "ln1_bias": jnp.zeros((1, E), jnp.float32),   # LayerNorm.bias (init zeros)
        "ln2_scale": jnp.ones((1, E), jnp.float32),
        "ln2_bias": jnp.zeros((1, E), jnp.float32),
    }


if __name__ == "__main__":
    key = jax.random.PRNGKey(0)
    kx, kp, kx2 = jax.random.split(key, 3)

    # Test 1: module-sized config (single query tile; flash KV loop of length 1).
    cfg = {"emb_dim": 32, "num_head": 4, "context_length": 8, "dropout": 0.0, "qkv_bias": False}
    B, T, E = 2, cfg["context_length"], cfg["emb_dim"]
    x = jax.random.normal(kx, (B, T, E), jnp.float32)
    params = init_params(kp, E)

    out = jax.block_until_ready(transformer_block(x, params, cfg["num_head"]))
    ref = transformer_block_ref(x, params, cfg["num_head"])
    assert out.shape == (B, T, E)
    err1 = float(jnp.max(jnp.abs(out - ref)))
    assert jnp.allclose(out, ref, atol=2e-2, rtol=2e-2), f"mismatch (test 1), max abs err={err1}"

    # Test 2: longer sequence with a small explicit query tile, exercising the multi-tile path:
    # K/V cached at t==0 and reused for t>0, multi-block flash loop, causal block skipping.
    T2 = 32
    x2 = jax.random.normal(kx2, (B, T2, E), jnp.float32)
    out2 = jax.block_until_ready(transformer_block(x2, params, cfg["num_head"], q_tile=8))
    ref2 = transformer_block_ref(x2, params, cfg["num_head"])
    err2 = float(jnp.max(jnp.abs(out2 - ref2)))
    assert jnp.allclose(out2, ref2, atol=2e-2, rtol=2e-2), f"mismatch (test 2), max abs err={err2}"

    print("KERNEL_OK")
</pallas_src>

<mosaic_0001>
module attributes {stable_mosaic.version = 11 : i64} {
  func.func @transformer_block_kernel(%arg0: i32, %arg1: i32, %arg2: memref<1x8x32xbf16, #tpu.memory_space<vmem>>, %arg3: memref<1x8x32xf32, #tpu.memory_space<vmem>>, %arg4: memref<32x32xbf16, #tpu.memory_space<vmem>>, %arg5: memref<32x64xbf16, #tpu.memory_space<vmem>>, %arg6: memref<32x32xbf16, #tpu.memory_space<vmem>>, %arg7: memref<1x32xf32, #tpu.memory_space<vmem>>, %arg8: memref<32x128xbf16, #tpu.memory_space<vmem>>, %arg9: memref<1x128xf32, #tpu.memory_space<vmem>>, %arg10: memref<128x32xbf16, #tpu.memory_space<vmem>>, %arg11: memref<1x32xf32, #tpu.memory_space<vmem>>, %arg12: memref<1x32xf32, #tpu.memory_space<vmem>>, %arg13: memref<1x32xf32, #tpu.memory_space<vmem>>, %arg14: memref<1x32xf32, #tpu.memory_space<vmem>>, %arg15: memref<1x32xf32, #tpu.memory_space<vmem>>, %arg16: memref<1x8x32xf32, #tpu.memory_space<vmem>>, %arg17: memref<8x64xbf16, #tpu.memory_space<vmem>>, %arg18: memref<8x32xbf16, #tpu.memory_space<vmem>>) attributes {dimension_semantics = [#tpu.dimension_semantics<parallel>, #tpu.dimension_semantics<arbitrary>], iteration_bounds = array<i64: 2, 1>, scalar_prefetch = 0 : i64, scratch_operands = 2 : i64, tpu.core_type = #tpu.core_type<tc>, window_params = [{transform_indices = @transform_0, window_bounds = array<i64: 1, 8, 32>}, {transform_indices = @transform_1, window_bounds = array<i64: 1, 8, 32>}, {pipeline_mode = #tpu.pipeline_mode<synchronous>, transform_indices = @transform_2, window_bounds = array<i64: 32, 32>}, {pipeline_mode = #tpu.pipeline_mode<synchronous>, transform_indices = @transform_3, window_bounds = array<i64: 32, 64>}, {pipeline_mode = #tpu.pipeline_mode<synchronous>, transform_indices = @transform_4, window_bounds = array<i64: 32, 32>}, {pipeline_mode = #tpu.pipeline_mode<synchronous>, transform_indices = @transform_5, window_bounds = array<i64: 1, 32>}, {pipeline_mode = #tpu.pipeline_mode<synchronous>, transform_indices = @transform_6, window_bounds = array<i64: 32, 128>}, {pipeline_mode = #tpu.pipeline_mode<synchronous>, transform_indices = @transform_7, window_bounds = array<i64: 1, 128>}, {pipeline_mode = #tpu.pipeline_mode<synchronous>, transform_indices = @transform_8, window_bounds = array<i64: 128, 32>}, {pipeline_mode = #tpu.pipeline_mode<synchronous>, transform_indices = @transform_9, window_bounds = array<i64: 1, 32>}, {pipeline_mode = #tpu.pipeline_mode<synchronous>, transform_indices = @transform_10, window_bounds = array<i64: 1, 32>}, {pipeline_mode = #tpu.pipeline_mode<synchronous>, transform_indices = @transform_11, window_bounds = array<i64: 1, 32>}, {pipeline_mode = #tpu.pipeline_mode<synchronous>, transform_indices = @transform_12, window_bounds = array<i64: 1, 32>}, {pipeline_mode = #tpu.pipeline_mode<synchronous>, transform_indices = @transform_13, window_bounds = array<i64: 1, 32>}, {transform_indices = @transform_14, window_bounds = array<i64: 1, 8, 32>}]} {
    %c8_i32 = arith.constant 8 : i32
    %0 = arith.muli %arg1, %c8_i32 : i32
    %c0_i32 = arith.constant 0 : i32
    %1 = arith.cmpi eq, %arg1, %c0_i32 : i32
    %2 = arith.extui %1 : i1 to i32
    %c0_i32_0 = arith.constant 0 : i32
    %3 = arith.cmpi ne, %2, %c0_i32_0 : i32
    scf.if %3 {
      %c0_81 = arith.constant 0 : index
      %c0_82 = arith.constant 0 : index
      %c0_83 = arith.constant 0 : index
      %154 = vector.load %arg2[%c0_81, %c0_82, %c0_83] : memref<1x8x32xbf16, #tpu.memory_space<vmem>>, vector<1x8x32xbf16>
      %155 = vector.shape_cast %154 : vector<1x8x32xbf16> to vector<8x32xbf16>
      %156 = arith.extf %155 : vector<8x32xbf16> to vector<8x32xf32>
      %c0_84 = arith.constant 0 : index
      %c0_85 = arith.constant 0 : index
      %157 = vector.load %arg12[%c0_84, %c0_85] : memref<1x32xf32, #tpu.memory_space<vmem>>, vector<1x32xf32>
      %c0_86 = arith.constant 0 : index
      %c0_87 = arith.constant 0 : index
      %158 = vector.load %arg13[%c0_86, %c0_87] : memref<1x32xf32, #tpu.memory_space<vmem>>, vector<1x32xf32>
      %cst_88 = arith.constant dense<0.000000e+00> : vector<8xf32>
      %159 = vector.multi_reduction <add>, %156, %cst_88 [1] : vector<8x32xf32> to vector<8xf32>
      %160 = vector.shape_cast %159 : vector<8xf32> to vector<8x1xf32>
      %cst_89 = arith.constant 3.200000e+01 : f32
      %161 = vector.broadcast %cst_89 : f32 to vector<8x1xf32>
      %162 = arith.divf %160, %161 : vector<8x1xf32>
      %163 = vector.broadcast %162 : vector<8x1xf32> to vector<8x32xf32>
      %164 = arith.subf %156, %163 : vector<8x32xf32>
      %165 = arith.mulf %164, %164 : vector<8x32xf32>
      %cst_90 = arith.constant dense<0.000000e+00> : vector<8xf32>
      %166 = vector.multi_reduction <add>, %165, %cst_90 [1] : vector<8x32xf32> to vector<8xf32>
      %167 = vector.shape_cast %166 : vector<8xf32> to vector<8x1xf32>
      %cst_91 = arith.constant 3.200000e+01 : f32
      %168 = vector.broadcast %cst_91 : f32 to vector<8x1xf32>
      %169 = arith.divf %167, %168 : vector<8x1xf32>
      %170 = vector.broadcast %162 : vector<8x1xf32> to vector<8x32xf32>
      %171 = arith.subf %156, %170 : vector<8x32xf32>
      %cst_92 = arith.constant 9.99999974E-6 : f32
      %172 = vector.broadcast %cst_92 : f32 to vector<8x1xf32>
      %173 = arith.addf %169, %172 : vector<8x1xf32>
      %174 = math.rsqrt %173 : vector<8x1xf32>
      %175 = vector.broadcast %174 : vector<8x1xf32> to vector<8x32xf32>
      %176 = arith.mulf %171, %175 : vector<8x32xf32>
      %177 = vector.broadcast %157 : vector<1x32xf32> to vector<8x32xf32>
      %178 = arith.mulf %176, %177 : vector<8x32xf32>
      %179 = vector.broadcast %158 : vector<1x32xf32> to vector<8x32xf32>
      %180 = arith.addf %178, %179 : vector<8x32xf32>
      %181 = arith.truncf %180 : vector<8x32xf32> to vector<8x32xbf16>
      %c0_93 = arith.constant 0 : index
      %c0_94 = arith.constant 0 : index
      %182 = vector.load %arg5[%c0_93, %c0_94] : memref<32x64xbf16, #tpu.memory_space<vmem>>, vector<32x64xbf16>
      %cst_95 = arith.constant dense<0.000000e+00> : vector<8x64xf32>
      %183 = tpu.matmul %181, %182, %cst_95 {dimension_numbers = #tpu.dot_dimension_numbers<[1], [0], [0], [1], [0, 0, 1, 1], [], []>} : vector<8x32xbf16>, vector<32x64xbf16>, vector<8x64xf32> -> vector<8x64xf32>
      %184 = arith.truncf %183 : vector<8x64xf32> to vector<8x64xbf16>
      %c0_96 = arith.constant 0 : index
      %c0_97 = arith.constant 0 : index
      %185 = vector.load %arg17[%c0_96, %c0_97] : memref<8x64xbf16, #tpu.memory_space<vmem>>, vector<8x64xbf16>
      tpu.vector_store %arg17[%c0_96, %c0_97], %184 {strides = array<i32>} : memref<8x64xbf16, #tpu.memory_space<vmem>>, vector<8x64xbf16>,
    } else {
    }
    %c0 = arith.constant 0 : index
    %c0_1 = arith.constant 0 : index
    %c0_2 = arith.constant 0 : index
    %4 = vector.load %arg3[%c0, %c0_1, %c0_2] : memref<1x8x32xf32, #tpu.memory_space<vmem>>, vector<1x8x32xf32>
    %5 = vector.shape_cast %4 : vector<1x8x32xf32> to vector<8x32xf32>
    %c0_3 = arith.constant 0 : index
    %c0_4 = arith.constant 0 : index
    %6 = vector.load %arg12[%c0_3, %c0_4] : memref<1x32xf32, #tpu.memory_space<vmem>>, vector<1x32xf32>
    %c0_5 = arith.constant 0 : index
    %c0_6 = arith.constant 0 : index
    %7 = vector.load %arg13[%c0_5, %c0_6] : memref<1x32xf32, #tpu.memory_space<vmem>>, vector<1x32xf32>
    %cst = arith.constant dense<0.000000e+00> : vector<8xf32>
    %8 = vector.multi_reduction <add>, %5, %cst [1] : vector<8x32xf32> to vector<8xf32>
    %9 = vector.shape_cast %8 : vector<8xf32> to vector<8x1xf32>
    %cst_7 = arith.constant 3.200000e+01 : f32
    %10 = vector.broadcast %cst_7 : f32 to vector<8x1xf32>
    %11 = arith.divf %9, %10 : vector<8x1xf32>
    %12 = vector.broadcast %11 : vector<8x1xf32> to vector<8x32xf32>
    %13 = arith.subf %5, %12 : vector<8x32xf32>
    %14 = arith.mulf %13, %13 : vector<8x32xf32>
    %cst_8 = arith.constant dense<0.000000e+00> : vector<8xf32>
    %15 = vector.multi_reduction <add>, %14, %cst_8 [1] : vector<8x32xf32> to vector<8xf32>
    %16 = vector.shape_cast %15 : vector<8xf32> to vector<8x1xf32>
    %cst_9 = arith.constant 3.200000e+01 : f32
    %17 = vector.broadcast %cst_9 : f32 to vector<8x1xf32>
    %18 = arith.divf %16, %17 : vector<8x1xf32>
    %19 = vector.broadcast %11 : vector<8x1xf32> to vector<8x32xf32>
    %20 = arith.subf %5, %19 : vector<8x32xf32>
    %cst_10 = arith.constant 9.99999974E-6 : f32
    %21 = vector.broadcast %cst_10 : f32 to vector<8x1xf32>
    %22 = arith.addf %18, %21 : vector<8x1xf32>
    %23 = math.rsqrt %22 : vector<8x1xf32>
    %24 = vector.broadcast %23 : vector<8x1xf32> to vector<8x32xf32>
    %25 = arith.mulf %20, %24 : vector<8x32xf32>
    %26 = vector.broadcast %6 : vector<1x32xf32> to vector<8x32xf32>
    %27 = arith.mulf %25, %26 : vector<8x32xf32>
    %28 = vector.broadcast %7 : vector<1x32xf32> to vector<8x32xf32>
    %29 = arith.addf %27, %28 : vector<8x32xf32>
    %30 = arith.truncf %29 : vector<8x32xf32> to vector<8x32xbf16>
    %cst_11 = arith.constant 8.000000e+00 : f32
    %31 = math.sqrt %cst_11 : f32
    %cst_12 = arith.constant 1.000000e+00 : f32
    %32 = arith.divf %cst_12, %31 : f32
    %c0_13 = arith.constant 0 : index
    %c0_14 = arith.constant 0 : index
    %33 = vector.load %arg4[%c0_13, %c0_14] : memref<32x32xbf16, #tpu.memory_space<vmem>>, vector<32x32xbf16>
    %cst_15 = arith.constant dense<0.000000e+00> : vector<8x32xf32>
    %34 = tpu.matmul %30, %33, %cst_15 {dimension_numbers = #tpu.dot_dimension_numbers<[1], [0], [0], [1], [0, 0, 1, 1], [], []>} : vector<8x32xbf16>, vector<32x32xbf16>, vector<8x32xf32> -> vector<8x32xf32>
    %35 = vector.broadcast %32 : f32 to vector<8x32xf32>
    %36 = arith.mulf %34, %35 : vector<8x32xf32>
    %37 = arith.truncf %36 : vector<8x32xf32> to vector<8x32xbf16>
    %38 = tpu.iota {dimensions = array<i32: 0>} : vector<8x8xi32>
    %39 = vector.broadcast %0 : i32 to vector<8x8xi32>
    %40 = arith.addi %39, %38 : vector<8x8xi32>
    %41 = vector.extract_strided_slice %37 {offsets = [0, 0], sizes = [8, 8], strides = [1, 1]} : vector<8x32xbf16> to vector<8x8xbf16>
    %cst_16 = arith.constant -1.000000e+30 : f32
    %42 = vector.broadcast %cst_16 : f32 to vector<8x1xf32>
    %cst_17 = arith.constant 0.000000e+00 : f32
    %43 = vector.broadcast %cst_17 : f32 to vector<8x1xf32>
    %cst_18 = arith.constant 0.000000e+00 : f32
    %44 = vector.broadcast %cst_18 : f32 to vector<8x8xf32>
    %c1_i32 = arith.constant 1 : i32
    %45 = arith.addi %arg1, %c1_i32 : i32
    %cst_19 = arith.constant -1.000000e+30 : f32
    %c0_i32_20 = arith.constant 0 : i32
    %46 = arith.subi %45, %c0_i32_20 : i32
    %47 = arith.addi %c0_i32_20, %46 : i32
    %c1_i32_21 = arith.constant 1 : i32
    %48:3 = scf.for %arg19 = %c0_i32_20 to %47 step %c1_i32_21 iter_args(%arg20 = %42, %arg21 = %43, %arg22 = %44) -> (vector<8x1xf32>, vector<8x1xf32>, vector<8x8xf32>)  : i32 {
      %c8_i32_81 = arith.constant 8 : i32
      %154 = arith.muli %arg19, %c8_i32_81 : i32
      %155 = tpu.assume_multiple %154, 8 : i32
      %156 = arith.index_cast %155 : i32 to index
      %c0_82 = arith.constant 0 : index
      %157 = vector.load %arg17[%156, %c0_82] : memref<8x64xbf16, #tpu.memory_space<vmem>>, vector<8x8xbf16>
      %158 = arith.index_cast %155 : i32 to index
      %c32 = arith.constant 32 : index
      %159 = vector.load %arg17[%158, %c32] : memref<8x64xbf16, #tpu.memory_space<vmem>>, vector<8x8xbf16>
      %cst_83 = arith.constant dense<0.000000e+00> : vector<8x8xf32>
      %160 = tpu.matmul %41, %157, %cst_83 {dimension_numbers = #tpu.dot_dimension_numbers<[1], [1], [0], [0], [0, 0, 1, 0], [], []>} : vector<8x8xbf16>, vector<8x8xbf16>, vector<8x8xf32> -> vector<8x8xf32>
      %c8_i32_84 = arith.constant 8 : i32
      %161 = arith.muli %arg19, %c8_i32_84 : i32
      %162 = tpu.iota {dimensions = array<i32: 1>} : vector<8x8xi32>
      %163 = vector.broadcast %161 : i32 to vector<8x8xi32>
      %164 = arith.addi %163, %162 : vector<8x8xi32>
      %165 = arith.cmpi sgt, %164, %40 : vector<8x8xi32>
      %166 = vector.broadcast %cst_19 : f32 to vector<8x8xf32>
      %167 = arith.select %165, %166, %160 : vector<8x8xi1>, vector<8x8xf32>
      %cst_85 = arith.constant dense<0xFF800000> : vector<8xf32>
      %168 = vector.multi_reduction <maximumf>, %167, %cst_85 [1] : vector<8x8xf32> to vector<8xf32>
      %169 = vector.shape_cast %168 : vector<8xf32> to vector<8x1xf32>
      %170 = arith.maximumf %arg20, %169 : vector<8x1xf32>
      %171 = arith.subf %arg20, %170 : vector<8x1xf32>
      %172 = math.exp %171 : vector<8x1xf32>
      %173 = vector.broadcast %170 : vector<8x1xf32> to vector<8x8xf32>
      %174 = arith.subf %167, %173 : vector<8x8xf32>
      %175 = math.exp %174 : vector<8x8xf32>
      %176 = arith.mulf %172, %arg21 : vector<8x1xf32>
      %cst_86 = arith.constant dense<0.000000e+00> : vector<8xf32>
      %177 = vector.multi_reduction <add>, %175, %cst_86 [1] : vector<8x8xf32> to vector<8xf32>
      %178 = vector.shape_cast %177 : vector<8xf32> to vector<8x1xf32>
      %179 = arith.addf %176, %178 : vector<8x1xf32>
      %180 = vector.broadcast %172 : vector<8x1xf32> to vector<8x8xf32>
      %181 = arith.mulf %180, %arg22 : vector<8x8xf32>
      %182 = arith.truncf %175 : vector<8x8xf32> to vector<8x8xbf16>
      %cst_87 = arith.constant dense<0.000000e+00> : vector<8x8xf32>
      %183 = tpu.matmul %182, %159, %cst_87 {dimension_numbers = #tpu.dot_dimension_numbers<[1], [0], [0], [1], [0, 0, 1, 1], [], []>} : vector<8x8xbf16>, vector<8x8xbf16>, vector<8x8xf32> -> vector<8x8xf32>
      %184 = arith.addf %181, %183 : vector<8x8xf32>
      scf.yield %170, %179, %184 : vector<8x1xf32>, vector<8x1xf32>, vector<8x8xf32>
    }
    %49 = tpu.reciprocal %48#1 {approx = true} : vector<8x1xf32> -> vector<8x1xf32>
    %50 = vector.broadcast %49 : vector<8x1xf32> to vector<8x8xf32>
    %51 = arith.mulf %48#2, %50 : vector<8x8xf32>
    %52 = arith.truncf %51 : vector<8x8xf32> to vector<8x8xbf16>
    %c0_22 = arith.constant 0 : index
    %c0_23 = arith.constant 0 : index
    %53 = vector.load %arg18[%c0_22, %c0_23] : memref<8x32xbf16, #tpu.memory_space<vmem>>, vector<8x8xbf16>
    tpu.vector_store %arg18[%c0_22, %c0_23], %52 {strides = array<i32>} : memref<8x32xbf16, #tpu.memory_space<vmem>>, vector<8x8xbf16>,
    %54 = vector.extract_strided_slice %37 {offsets = [0, 8], sizes = [8, 8], strides = [1, 1]} : vector<8x32xbf16> to vector<8x8xbf16>
    %cst_24 = arith.constant -1.000000e+30 : f32
    %55 = vector.broadcast %cst_24 : f32 to vector<8x1xf32>
    %cst_25 = arith.constant 0.000000e+00 : f32
    %56 = vector.broadcast %cst_25 : f32 to vector<8x1xf32>
    %cst_26 = arith.constant 0.000000e+00 : f32
    %57 = vector.broadcast %cst_26 : f32 to vector<8x8xf32>
    %c1_i32_27 = arith.constant 1 : i32
    %58 = arith.addi %arg1, %c1_i32_27 : i32
    %cst_28 = arith.constant -1.000000e+30 : f32
    %c0_i32_29 = arith.constant 0 : i32
    %59 = arith.subi %58, %c0_i32_29 : i32
    %60 = arith.addi %c0_i32_29, %59 : i32
    %c1_i32_30 = arith.constant 1 : i32
    %61:3 = scf.for %arg19 = %c0_i32_29 to %60 step %c1_i32_30 iter_args(%arg20 = %55, %arg21 = %56, %arg22 = %57) -> (vector<8x1xf32>, vector<8x1xf32>, vector<8x8xf32>)  : i32 {
      %c8_i32_81 = arith.constant 8 : i32
      %154 = arith.muli %arg19, %c8_i32_81 : i32
      %155 = tpu.assume_multiple %154, 8 : i32
      %156 = arith.index_cast %155 : i32 to index
      %c8_82 = arith.constant 8 : index
      %157 = vector.load %arg17[%156, %c8_82] : memref<8x64xbf16, #tpu.memory_space<vmem>>, vector<8x8xbf16>
      %158 = arith.index_cast %155 : i32 to index
      %c40 = arith.constant 40 : index
      %159 = vector.load %arg17[%158, %c40] : memref<8x64xbf16, #tpu.memory_space<vmem>>, vector<8x8xbf16>
      %cst_83 = arith.constant dense<0.000000e+00> : vector<8x8xf32>
      %160 = tpu.matmul %54, %157, %cst_83 {dimension_numbers = #tpu.dot_dimension_numbers<[1], [1], [0], [0], [0, 0, 1, 0], [], []>} : vector<8x8xbf16>, vector<8x8xbf16>, vector<8x8xf32> -> vector<8x8xf32>
      %c8_i32_84 = arith.constant 8 : i32
      %161 = arith.muli %arg19, %c8_i32_84 : i32
      %162 = tpu.iota {dimensions = array<i32: 1>} : vector<8x8xi32>
      %163 = vector.broadcast %161 : i32 to vector<8x8xi32>
      %164 = arith.addi %163, %162 : vector<8x8xi32>
      %165 = arith.cmpi sgt, %164, %40 : vector<8x8xi32>
      %166 = vector.broadcast %cst_28 : f32 to vector<8x8xf32>
      %167 = arith.select %165, %166, %160 : vector<8x8xi1>, vector<8x8xf32>
      %cst_85 = arith.constant dense<0xFF800000> : vector<8xf32>
      %168 = vector.multi_reduction <maximumf>, %167, %cst_85 [1] : vector<8x8xf32> to vector<8xf32>
      %169 = vector.shape_cast %168 : vector<8xf32> to vector<8x1xf32>
      %170 = arith.maximumf %arg20, %169 : vector<8x1xf32>
      %171 = arith.subf %arg20, %170 : vector<8x1xf32>
      %172 = math.exp %171 : vector<8x1xf32>
      %173 = vector.broadcast %170 : vector<8x1xf32> to vector<8x8xf32>
      %174 = arith.subf %167, %173 : vector<8x8xf32>
      %175 = math.exp %174 : vector<8x8xf32>
      %176 = arith.mulf %172, %arg21 : vector<8x1xf32>
      %cst_86 = arith.constant dense<0.000000e+00> : vector<8xf32>
      %177 = vector.multi_reduction <add>, %175, %cst_86 [1] : vector<8x8xf32> to vector<8xf32>
      %178 = vector.shape_cast %177 : vector<8xf32> to vector<8x1xf32>
      %179 = arith.addf %176, %178 : vector<8x1xf32>
      %180 = vector.broadcast %172 : vector<8x1xf32> to vector<8x8xf32>
      %181 = arith.mulf %180, %arg22 : vector<8x8xf32>
      %182 = arith.truncf %175 : vector<8x8xf32> to vector<8x8xbf16>
      %cst_87 = arith.constant dense<0.000000e+00> : vector<8x8xf32>
      %183 = tpu.matmul %182, %159, %cst_87 {dimension_numbers = #tpu.dot_dimension_numbers<[1], [0], [0], [1], [0, 0, 1, 1], [], []>} : vector<8x8xbf16>, vector<8x8xbf16>, vector<8x8xf32> -> vector<8x8xf32>
      %184 = arith.addf %181, %183 : vector<8x8xf32>
      scf.yield %170, %179, %184 : vector<8x1xf32>, vector<8x1xf32>, vector<8x8xf32>
    }
    %62 = tpu.reciprocal %61#1 {approx = true} : vector<8x1xf32> -> vector<8x1xf32>
    %63 = vector.broadcast %62 : vector<8x1xf32> to vector<8x8xf32>
    %64 = arith.mulf %61#2, %63 : vector<8x8xf32>
    %65 = arith.truncf %64 : vector<8x8xf32> to vector<8x8xbf16>
    %c0_31 = arith.constant 0 : index
    %c8 = arith.constant 8 : index
    %66 = vector.load %arg18[%c0_31, %c8] : memref<8x32xbf16, #tpu.memory_space<vmem>>, vector<8x8xbf16>
    tpu.vector_store %arg18[%c0_31, %c8], %65 {strides = array<i32>} : memref<8x32xbf16, #tpu.memory_space<vmem>>, vector<8x8xbf16>,
    %67 = vector.extract_strided_slice %37 {offsets = [0, 16], sizes = [8, 8], strides = [1, 1]} : vector<8x32xbf16> to vector<8x8xbf16>
    %cst_32 = arith.constant -1.000000e+30 : f32
    %68 = vector.broadcast %cst_32 : f32 to vector<8x1xf32>
    %cst_33 = arith.constant 0.000000e+00 : f32
    %69 = vector.broadcast %cst_33 : f32 to vector<8x1xf32>
    %cst_34 = arith.constant 0.000000e+00 : f32
    %70 = vector.broadcast %cst_34 : f32 to vector<8x8xf32>
    %c1_i32_35 = arith.constant 1 : i32
    %71 = arith.addi %arg1, %c1_i32_35 : i32
    %cst_36 = arith.constant -1.000000e+30 : f32
    %c0_i32_37 = arith.constant 0 : i32
    %72 = arith.subi %71, %c0_i32_37 : i32
    %73 = arith.addi %c0_i32_37, %72 : i32
    %c1_i32_38 = arith.constant 1 : i32
    %74:3 = scf.for %arg19 = %c0_i32_37 to %73 step %c1_i32_38 iter_args(%arg20 = %68, %arg21 = %69, %arg22 = %70) -> (vector<8x1xf32>, vector<8x1xf32>, vector<8x8xf32>)  : i32 {
      %c8_i32_81 = arith.constant 8 : i32
      %154 = arith.muli %arg19, %c8_i32_81 : i32
      %155 = tpu.assume_multiple %154, 8 : i32
      %156 = arith.index_cast %155 : i32 to index
      %c16_82 = arith.constant 16 : index
      %157 = vector.load %arg17[%156, %c16_82] : memref<8x64xbf16, #tpu.memory_space<vmem>>, vector<8x8xbf16>
      %158 = arith.index_cast %155 : i32 to index
      %c48 = arith.constant 48 : index
      %159 = vector.load %arg17[%158, %c48] : memref<8x64xbf16, #tpu.memory_space<vmem>>, vector<8x8xbf16>
      %cst_83 = arith.constant dense<0.000000e+00> : vector<8x8xf32>
      %160 = tpu.matmul %67, %157, %cst_83 {dimension_numbers = #tpu.dot_dimension_numbers<[1], [1], [0], [0], [0, 0, 1, 0], [], []>} : vector<8x8xbf16>, vector<8x8xbf16>, vector<8x8xf32> -> vector<8x8xf32>
      %c8_i32_84 = arith.constant 8 : i32
      %161 = arith.muli %arg19, %c8_i32_84 : i32
      %162 = tpu.iota {dimensions = array<i32: 1>} : vector<8x8xi32>
      %163 = vector.broadcast %161 : i32 to vector<8x8xi32>
      %164 = arith.addi %163, %162 : vector<8x8xi32>
      %165 = arith.cmpi sgt, %164, %40 : vector<8x8xi32>
      %166 = vector.broadcast %cst_36 : f32 to vector<8x8xf32>
      %167 = arith.select %165, %166, %160 : vector<8x8xi1>, vector<8x8xf32>
      %cst_85 = arith.constant dense<0xFF800000> : vector<8xf32>
      %168 = vector.multi_reduction <maximumf>, %167, %cst_85 [1] : vector<8x8xf32> to vector<8xf32>
      %169 = vector.shape_cast %168 : vector<8xf32> to vector<8x1xf32>
      %170 = arith.maximumf %arg20, %169 : vector<8x1xf32>
      %171 = arith.subf %arg20, %170 : vector<8x1xf32>
      %172 = math.exp %171 : vector<8x1xf32>
      %173 = vector.broadcast %170 : vector<8x1xf32> to vector<8x8xf32>
      %174 = arith.subf %167, %173 : vector<8x8xf32>
      %175 = math.exp %174 : vector<8x8xf32>
      %176 = arith.mulf %172, %arg21 : vector<8x1xf32>
      %cst_86 = arith.constant dense<0.000000e+00> : vector<8xf32>
      %177 = vector.multi_reduction <add>, %175, %cst_86 [1] : vector<8x8xf32> to vector<8xf32>
      %178 = vector.shape_cast %177 : vector<8xf32> to vector<8x1xf32>
      %179 = arith.addf %176, %178 : vector<8x1xf32>
      %180 = vector.broadcast %172 : vector<8x1xf32> to vector<8x8xf32>
      %181 = arith.mulf %180, %arg22 : vector<8x8xf32>
      %182 = arith.truncf %175 : vector<8x8xf32> to vector<8x8xbf16>
      %cst_87 = arith.constant dense<0.000000e+00> : vector<8x8xf32>
      %183 = tpu.matmul %182, %159, %cst_87 {dimension_numbers = #tpu.dot_dimension_numbers<[1], [0], [0], [1], [0, 0, 1, 1], [], []>} : vector<8x8xbf16>, vector<8x8xbf16>, vector<8x8xf32> -> vector<8x8xf32>
      %184 = arith.addf %181, %183 : vector<8x8xf32>
      scf.yield %170, %179, %184 : vector<8x1xf32>, vector<8x1xf32>, vector<8x8xf32>
    }
    %75 = tpu.reciprocal %74#1 {approx = true} : vector<8x1xf32> -> vector<8x1xf32>
    %76 = vector.broadcast %75 : vector<8x1xf32> to vector<8x8xf32>
    %77 = arith.mulf %74#2, %76 : vector<8x8xf32>
    %78 = arith.truncf %77 : vector<8x8xf32> to vector<8x8xbf16>
    %c0_39 = arith.constant 0 : index
    %c16 = arith.constant 16 : index
    %79 = vector.load %arg18[%c0_39, %c16] : memref<8x32xbf16, #tpu.memory_space<vmem>>, vector<8x8xbf16>
    tpu.vector_store %arg18[%c0_39, %c16], %78 {strides = array<i32>} : memref<8x32xbf16, #tpu.memory_space<vmem>>, vector<8x8xbf16>,
    %80 = vector.extract_strided_slice %37 {offsets = [0, 24], sizes = [8, 8], strides = [1, 1]} : vector<8x32xbf16> to vector<8x8xbf16>
    %cst_40 = arith.constant -1.000000e+30 : f32
    %81 = vector.broadcast %cst_40 : f32 to vector<8x1xf32>
    %cst_41 = arith.constant 0.000000e+00 : f32
    %82 = vector.broadcast %cst_41 : f32 to vector<8x1xf32>
    %cst_42 = arith.constant 0.000000e+00 : f32
    %83 = vector.broadcast %cst_42 : f32 to vector<8x8xf32>
    %c1_i32_43 = arith.constant 1 : i32
    %84 = arith.addi %arg1, %c1_i32_43 : i32
    %cst_44 = arith.constant -1.000000e+30 : f32
    %c0_i32_45 = arith.constant 0 : i32
    %85 = arith.subi %84, %c0_i32_45 : i32
    %86 = arith.addi %c0_i32_45, %85 : i32
    %c1_i32_46 = arith.constant 1 : i32
    %87:3 = scf.for %arg19 = %c0_i32_45 to %86 step %c1_i32_46 iter_args(%arg20 = %81, %arg21 = %82, %arg22 = %83) -> (vector<8x1xf32>, vector<8x1xf32>, vector<8x8xf32>)  : i32 {
      %c8_i32_81 = arith.constant 8 : i32
      %154 = arith.muli %arg19, %c8_i32_81 : i32
      %155 = tpu.assume_multiple %154, 8 : i32
      %156 = arith.index_cast %155 : i32 to index
      %c24_82 = arith.constant 24 : index
      %157 = vector.load %arg17[%156, %c24_82] : memref<8x64xbf16, #tpu.memory_space<vmem>>, vector<8x8xbf16>
      %158 = arith.index_cast %155 : i32 to index
      %c56 = arith.constant 56 : index
      %159 = vector.load %arg17[%158, %c56] : memref<8x64xbf16, #tpu.memory_space<vmem>>, vector<8x8xbf16>
      %cst_83 = arith.constant dense<0.000000e+00> : vector<8x8xf32>
      %160 = tpu.matmul %80, %157, %cst_83 {dimension_numbers = #tpu.dot_dimension_numbers<[1], [1], [0], [0], [0, 0, 1, 0], [], []>} : vector<8x8xbf16>, vector<8x8xbf16>, vector<8x8xf32> -> vector<8x8xf32>
      %c8_i32_84 = arith.constant 8 : i32
      %161 = arith.muli %arg19, %c8_i32_84 : i32
      %162 = tpu.iota {dimensions = array<i32: 1>} : vector<8x8xi32>
      %163 = vector.broadcast %161 : i32 to vector<8x8xi32>
      %164 = arith.addi %163, %162 : vector<8x8xi32>
      %165 = arith.cmpi sgt, %164, %40 : vector<8x8xi32>
      %166 = vector.broadcast %cst_44 : f32 to vector<8x8xf32>
      %167 = arith.select %165, %166, %160 : vector<8x8xi1>, vector<8x8xf32>
      %cst_85 = arith.constant dense<0xFF800000> : vector<8xf32>
      %168 = vector.multi_reduction <maximumf>, %167, %cst_85 [1] : vector<8x8xf32> to vector<8xf32>
      %169 = vector.shape_cast %168 : vector<8xf32> to vector<8x1xf32>
      %170 = arith.maximumf %arg20, %169 : vector<8x1xf32>
      %171 = arith.subf %arg20, %170 : vector<8x1xf32>
      %172 = math.exp %171 : vector<8x1xf32>
      %173 = vector.broadcast %170 : vector<8x1xf32> to vector<8x8xf32>
      %174 = arith.subf %167, %173 : vector<8x8xf32>
      %175 = math.exp %174 : vector<8x8xf32>
      %176 = arith.mulf %172, %arg21 : vector<8x1xf32>
      %cst_86 = arith.constant dense<0.000000e+00> : vector<8xf32>
      %177 = vector.multi_reduction <add>, %175, %cst_86 [1] : vector<8x8xf32> to vector<8xf32>
      %178 = vector.shape_cast %177 : vector<8xf32> to vector<8x1xf32>
      %179 = arith.addf %176, %178 : vector<8x1xf32>
      %180 = vector.broadcast %172 : vector<8x1xf32> to vector<8x8xf32>
      %181 = arith.mulf %180, %arg22 : vector<8x8xf32>
      %182 = arith.truncf %175 : vector<8x8xf32> to vector<8x8xbf16>
      %cst_87 = arith.constant dense<0.000000e+00> : vector<8x8xf32>
      %183 = tpu.matmul %182, %159, %cst_87 {dimension_numbers = #tpu.dot_dimension_numbers<[1], [0], [0], [1], [0, 0, 1, 1], [], []>} : vector<8x8xbf16>, vector<8x8xbf16>, vector<8x8xf32> -> vector<8x8xf32>
      %184 = arith.addf %181, %183 : vector<8x8xf32>
      scf.yield %170, %179, %184 : vector<8x1xf32>, vector<8x1xf32>, vector<8x8xf32>
    }
    %88 = tpu.reciprocal %87#1 {approx = true} : vector<8x1xf32> -> vector<8x1xf32>
    %89 = vector.broadcast %88 : vector<8x1xf32> to vector<8x8xf32>
    %90 = arith.mulf %87#2, %89 : vector<8x8xf32>
    %91 = arith.truncf %90 : vector<8x8xf32> to vector<8x8xbf16>
    %c0_47 = arith.constant 0 : index
    %c24 = arith.constant 24 : index
    %92 = vector.load %arg18[%c0_47, %c24] : memref<8x32xbf16, #tpu.memory_space<vmem>>, vector<8x8xbf16>
    tpu.vector_store %arg18[%c0_47, %c24], %91 {strides = array<i32>} : memref<8x32xbf16, #tpu.memory_space<vmem>>, vector<8x8xbf16>,
    %c0_48 = arith.constant 0 : index
    %c0_49 = arith.constant 0 : index
    %93 = vector.load %arg18[%c0_48, %c0_49] : memref<8x32xbf16, #tpu.memory_space<vmem>>, vector<8x32xbf16>
    %c0_50 = arith.constant 0 : index
    %c0_51 = arith.constant 0 : index
    %94 = vector.load %arg6[%c0_50, %c0_51] : memref<32x32xbf16, #tpu.memory_space<vmem>>, vector<32x32xbf16>
    %cst_52 = arith.constant dense<0.000000e+00> : vector<8x32xf32>
    %95 = tpu.matmul %93, %94, %cst_52 {dimension_numbers = #tpu.dot_dimension_numbers<[1], [0], [0], [1], [0, 0, 1, 1], [], []>} : vector<8x32xbf16>, vector<32x32xbf16>, vector<8x32xf32> -> vector<8x32xf32>
    %c0_53 = arith.constant 0 : index
    %c0_54 = arith.constant 0 : index
    %96 = vector.load %arg7[%c0_53, %c0_54] : memref<1x32xf32, #tpu.memory_space<vmem>>, vector<1x32xf32>
    %97 = vector.broadcast %96 : vector<1x32xf32> to vector<8x32xf32>
    %98 = arith.addf %95, %97 : vector<8x32xf32>
    %99 = arith.addf %5, %98 : vector<8x32xf32>
    %c0_55 = arith.constant 0 : index
    %c0_56 = arith.constant 0 : index
    %100 = vector.load %arg14[%c0_55, %c0_56] : memref<1x32xf32, #tpu.memory_space<vmem>>, vector<1x32xf32>
    %c0_57 = arith.constant 0 : index
    %c0_58 = arith.constant 0 : index
    %101 = vector.load %arg15[%c0_57, %c0_58] : memref<1x32xf32, #tpu.memory_space<vmem>>, vector<1x32xf32>
    %cst_59 = arith.constant dense<0.000000e+00> : vector<8xf32>
    %102 = vector.multi_reduction <add>, %99, %cst_59 [1] : vector<8x32xf32> to vector<8xf32>
    %103 = vector.shape_cast %102 : vector<8xf32> to vector<8x1xf32>
    %cst_60 = arith.constant 3.200000e+01 : f32
    %104 = vector.broadcast %cst_60 : f32 to vector<8x1xf32>
    %105 = arith.divf %103, %104 : vector<8x1xf32>
    %106 = vector.broadcast %105 : vector<8x1xf32> to vector<8x32xf32>
    %107 = arith.subf %99, %106 : vector<8x32xf32>
    %108 = arith.mulf %107, %107 : vector<8x32xf32>
    %cst_61 = arith.constant dense<0.000000e+00> : vector<8xf32>
    %109 = vector.multi_reduction <add>, %108, %cst_61 [1] : vector<8x32xf32> to vector<8xf32>
    %110 = vector.shape_cast %109 : vector<8xf32> to vector<8x1xf32>
    %cst_62 = arith.constant 3.200000e+01 : f32
    %111 = vector.broadcast %cst_62 : f32 to vector<8x1xf32>
    %112 = arith.divf %110, %111 : vector<8x1xf32>
    %113 = vector.broadcast %105 : vector<8x1xf32> to vector<8x32xf32>
    %114 = arith.subf %99, %113 : vector<8x32xf32>
    %cst_63 = arith.constant 9.99999974E-6 : f32
    %115 = vector.broadcast %cst_63 : f32 to vector<8x1xf32>
    %116 = arith.addf %112, %115 : vector<8x1xf32>
    %117 = math.rsqrt %116 : vector<8x1xf32>
    %118 = vector.broadcast %117 : vector<8x1xf32> to vector<8x32xf32>
    %119 = arith.mulf %114, %118 : vector<8x32xf32>
    %120 = vector.broadcast %100 : vector<1x32xf32> to vector<8x32xf32>
    %121 = arith.mulf %119, %120 : vector<8x32xf32>
    %122 = vector.broadcast %101 : vector<1x32xf32> to vector<8x32xf32>
    %123 = arith.addf %121, %122 : vector<8x32xf32>
    %124 = arith.truncf %123 : vector<8x32xf32> to vector<8x32xbf16>
    %c0_64 = arith.constant 0 : index
    %c0_65 = arith.constant 0 : index
    %125 = vector.load %arg8[%c0_64, %c0_65] : memref<32x128xbf16, #tpu.memory_space<vmem>>, vector<32x128xbf16>
    %cst_66 = arith.constant dense<0.000000e+00> : vector<8x128xf32>
    %126 = tpu.matmul %124, %125, %cst_66 {dimension_numbers = #tpu.dot_dimension_numbers<[1], [0], [0], [1], [0, 0, 1, 1], [], []>} : vector<8x32xbf16>, vector<32x128xbf16>, vector<8x128xf32> -> vector<8x128xf32>
    %c0_67 = arith.constant 0 : index
    %c0_68 = arith.constant 0 : index
    %127 = vector.load %arg9[%c0_67, %c0_68] : memref<1x128xf32, #tpu.memory_space<vmem>>, vector<1x128xf32>
    %128 = vector.broadcast %127 : vector<1x128xf32> to vector<8x128xf32>
    %129 = arith.addf %126, %128 : vector<8x128xf32>
    %cst_69 = arith.constant 5.000000e-01 : f32
    %130 = vector.broadcast %cst_69 : f32 to vector<8x128xf32>
    %131 = arith.mulf %130, %129 : vector<8x128xf32>
    %cst_70 = arith.constant 0.636619746 : f32
    %132 = math.sqrt %cst_70 : f32
    %133 = arith.mulf %129, %129 : vector<8x128xf32>
    %134 = arith.mulf %129, %133 : vector<8x128xf32>
    %cst_71 = arith.constant 4.471500e-02 : f32
    %135 = vector.broadcast %cst_71 : f32 to vector<8x128xf32>
    %136 = arith.mulf %135, %134 : vector<8x128xf32>
    %137 = arith.addf %129, %136 : vector<8x128xf32>
    %138 = vector.broadcast %132 : f32 to vector<8x128xf32>
    %139 = arith.mulf %138, %137 : vector<8x128xf32>
    %140 = math.tanh %139 : vector<8x128xf32>
    %cst_72 = arith.constant 1.000000e+00 : f32
    %141 = vector.broadcast %cst_72 : f32 to vector<8x128xf32>
    %142 = arith.addf %141, %140 : vector<8x128xf32>
    %143 = arith.mulf %131, %142 : vector<8x128xf32>
    %144 = arith.truncf %143 : vector<8x128xf32> to vector<8x128xbf16>
    %c0_73 = arith.constant 0 : index
    %c0_74 = arith.constant 0 : index
    %145 = vector.load %arg10[%c0_73, %c0_74] : memref<128x32xbf16, #tpu.memory_space<vmem>>, vector<128x32xbf16>
    %cst_75 = arith.constant dense<0.000000e+00> : vector<8x32xf32>
    %146 = tpu.matmul %144, %145, %cst_75 {dimension_numbers = #tpu.dot_dimension_numbers<[1], [0], [0], [1], [0, 0, 1, 1], [], []>} : vector<8x128xbf16>, vector<128x32xbf16>, vector<8x32xf32> -> vector<8x32xf32>
    %c0_76 = arith.constant 0 : index
    %c0_77 = arith.constant 0 : index
    %147 = vector.load %arg11[%c0_76, %c0_77] : memref<1x32xf32, #tpu.memory_space<vmem>>, vector<1x32xf32>
    %148 = vector.broadcast %147 : vector<1x32xf32> to vector<8x32xf32>
    %149 = arith.addf %146, %148 : vector<8x32xf32>
    %150 = arith.addf %99, %149 : vector<8x32xf32>
    %c0_78 = arith.constant 0 : index
    %c0_79 = arith.constant 0 : index
    %c0_80 = arith.constant 0 : index
    %151 = vector.load %arg16[%c0_78, %c0_79, %c0_80] : memref<1x8x32xf32, #tpu.memory_space<vmem>>, vector<1x8x32xf32>
    %152 = vector.shape_cast %151 : vector<1x8x32xf32> to vector<8x32xf32>
    %153 = vector.shape_cast %150 : vector<8x32xf32> to vector<1x8x32xf32>
    tpu.vector_store %arg16[%c0_78, %c0_79, %c0_80], %153 {strides = array<i32>} : memref<1x8x32xf32, #tpu.memory_space<vmem>>, vector<1x8x32xf32>,
    return
  }
  func.func @transform_0(%arg0: i32, %arg1: i32) -> (i32, i32, i32) {
    %c0_i32 = arith.constant 0 : i32
    %c0_i32_0 = arith.constant 0 : i32
    %c0_i32_1 = arith.constant 0 : i32
    return %arg0, %c0_i32, %c0_i32_0 : i32, i32, i32
  }
  func.func @transform_1(%arg0: i32, %arg1: i32) -> (i32, i32, i32) {
    %c0_i32 = arith.constant 0 : i32
    %c0_i32_0 = arith.constant 0 : i32
    return %arg0, %arg1, %c0_i32 : i32, i32, i32
  }
  func.func @transform_2(%arg0: i32, %arg1: i32) -> (i32, i32) {
    %c0_i32 = arith.constant 0 : i32
    %c0_i32_0 = arith.constant 0 : i32
    %c0_i32_1 = arith.constant 0 : i32
    return %c0_i32, %c0_i32_0 : i32, i32
  }
  func.func @transform_3(%arg0: i32, %arg1: i32) -> (i32, i32) {
    %c0_i32 = arith.constant 0 : i32
    %c0_i32_0 = arith.constant 0 : i32
    %c0_i32_1 = arith.constant 0 : i32
    return %c0_i32, %c0_i32_0 : i32, i32
  }
  func.func @transform_4(%arg0: i32, %arg1: i32) -> (i32, i32) {
    %c0_i32 = arith.constant 0 : i32
    %c0_i32_0 = arith.constant 0 : i32
    %c0_i32_1 = arith.constant 0 : i32
    return %c0_i32, %c0_i32_0 : i32, i32
  }
  func.func @transform_5(%arg0: i32, %arg1: i32) -> (i32, i32) {
    %c0_i32 = arith.constant 0 : i32
    %c0_i32_0 = arith.constant 0 : i32
    %c0_i32_1 = arith.constant 0 : i32
    return %c0_i32, %c0_i32_0 : i32, i32
  }
  func.func @transform_6(%arg0: i32, %arg1: i32) -> (i32, i32) {
    %c0_i32 = arith.constant 0 : i32
    %c0_i32_0 = arith.constant 0 : i32
    %c0_i32_1 = arith.constant 0 : i32
    return %c0_i32, %c0_i32_0 : i32, i32
  }
  func.func @transform_7(%arg0: i32, %arg1: i32) -> (i32, i32) {
    %c0_i32 = arith.constant 0 : i32
    %c0_i32_0 = arith.constant 0 : i32
    %c0_i32_1 = arith.constant 0 : i32
    return %c0_i32, %c0_i32_0 : i32, i32
  }
  func.func @transform_8(%arg0: i32, %arg1: i32) -> (i32, i32) {
    %c0_i32 = arith.constant 0 : i32
    %c0_i32_0 = arith.constant 0 : i32
    %c0_i32_1 = arith.constant 0 : i32
    return %c0_i32, %c0_i32_0 : i32, i32
  }
  func.func @transform_9(%arg0: i32, %arg1: i32) -> (i32, i32) {
    %c0_i32 = arith.constant 0 : i32
    %c0_i32_0 = arith.constant 0 : i32
    %c0_i32_1 = arith.constant 0 : i32
    return %c0_i32, %c0_i32_0 : i32, i32
  }
  func.func @transform_10(%arg0: i32, %arg1: i32) -> (i32, i32) {
    %c0_i32 = arith.constant 0 : i32
    %c0_i32_0 = arith.constant 0 : i32
    %c0_i32_1 = arith.constant 0 : i32
    return %c0_i32, %c0_i32_0 : i32, i32
  }
  func.func @transform_11(%arg0: i32, %arg1: i32) -> (i32, i32) {
    %c0_i32 = arith.constant 0 : i32
    %c0_i32_0 = arith.constant 0 : i32
    %c0_i32_1 = arith.constant 0 : i32
    return %c0_i32, %c0_i32_0 : i32, i32
  }
  func.func @transform_12(%arg0: i32, %arg1: i32) -> (i32, i32) {
    %c0_i32 = arith.constant 0 : i32
    %c0_i32_0 = arith.constant 0 : i32
    %c0_i32_1 = arith.constant 0 : i32
    return %c0_i32, %c0_i32_0 : i32, i32
  }
  func.func @transform_13(%arg0: i32, %arg1: i32) -> (i32, i32) {
    %c0_i32 = arith.constant 0 : i32
    %c0_i32_0 = arith.constant 0 : i32
    %c0_i32_1 = arith.constant 0 : i32
    return %c0_i32, %c0_i32_0 : i32, i32
  }
  func.func @transform_14(%arg0: i32, %arg1: i32) -> (i32, i32, i32) {
    %c0_i32 = arith.constant 0 : i32
    %c0_i32_0 = arith.constant 0 : i32
    return %arg0, %arg1, %c0_i32 : i32, i32, i32
  }
}

module attributes {stable_mosaic.version = 11 : i64} {
  func.func @transformer_block_kernel(%arg0: i32, %arg1: i32, %arg2: memref<1x8x32xbf16, #tpu.memory_space<vmem>>, %arg3: memref<1x8x32xf32, #tpu.memory_space<vmem>>, %arg4: memref<32x32xbf16, #tpu.memory_space<vmem>>, %arg5: memref<32x64xbf16, #tpu.memory_space<vmem>>, %arg6: memref<32x32xbf16, #tpu.memory_space<vmem>>, %arg7: memref<1x32xf32, #tpu.memory_space<vmem>>, %arg8: memref<32x128xbf16, #tpu.memory_space<vmem>>, %arg9: memref<1x128xf32, #tpu.memory_space<vmem>>, %arg10: memref<128x32xbf16, #tpu.memory_space<vmem>>, %arg11: memref<1x32xf32, #tpu.memory_space<vmem>>, %arg12: memref<1x32xf32, #tpu.memory_space<vmem>>, %arg13: memref<1x32xf32, #tpu.memory_space<vmem>>, %arg14: memref<1x32xf32, #tpu.memory_space<vmem>>, %arg15: memref<1x32xf32, #tpu.memory_space<vmem>>, %arg16: memref<1x8x32xf32, #tpu.memory_space<vmem>>, %arg17: memref<8x64xbf16, #tpu.memory_space<vmem>>, %arg18: memref<8x32xbf16, #tpu.memory_space<vmem>>) attributes {dimension_semantics = [#tpu.dimension_semantics<parallel>, #tpu.dimension_semantics<arbitrary>], iteration_bounds = array<i64: 2, 1>, scalar_prefetch = 0 : i64, scratch_operands = 2 : i64, tpu.core_type = #tpu.core_type<tc>, window_params = [{transform_indices = @transform_0, window_bounds = array<i64: 1, 8, 32>}, {transform_indices = @transform_1, window_bounds = array<i64: 1, 8, 32>}, {pipeline_mode = #tpu.pipeline_mode<synchronous>, transform_indices = @transform_2, window_bounds = array<i64: 32, 32>}, {pipeline_mode = #tpu.pipeline_mode<synchronous>, transform_indices = @transform_3, window_bounds = array<i64: 32, 64>}, {pipeline_mode = #tpu.pipeline_mode<synchronous>, transform_indices = @transform_4, window_bounds = array<i64: 32, 32>}, {pipeline_mode = #tpu.pipeline_mode<synchronous>, transform_indices = @transform_5, window_bounds = array<i64: 1, 32>}, {pipeline_mode = #tpu.pipeline_mode<synchronous>, transform_indices = @transform_6, window_bounds = array<i64: 32, 128>}, {pipeline_mode = #tpu.pipeline_mode<synchronous>, transform_indices = @transform_7, window_bounds = array<i64: 1, 128>}, {pipeline_mode = #tpu.pipeline_mode<synchronous>, transform_indices = @transform_8, window_bounds = array<i64: 128, 32>}, {pipeline_mode = #tpu.pipeline_mode<synchronous>, transform_indices = @transform_9, window_bounds = array<i64: 1, 32>}, {pipeline_mode = #tpu.pipeline_mode<synchronous>, transform_indices = @transform_10, window_bounds = array<i64: 1, 32>}, {pipeline_mode = #tpu.pipeline_mode<synchronous>, transform_indices = @transform_11, window_bounds = array<i64: 1, 32>}, {pipeline_mode = #tpu.pipeline_mode<synchronous>, transform_indices = @transform_12, window_bounds = array<i64: 1, 32>}, {pipeline_mode = #tpu.pipeline_mode<synchronous>, transform_indices = @transform_13, window_bounds = array<i64: 1, 32>}, {transform_indices = @transform_14, window_bounds = array<i64: 1, 8, 32>}]} {
    %c8_i32 = arith.constant 8 : i32
    %0 = arith.muli %arg1, %c8_i32 : i32
    %c0_i32 = arith.constant 0 : i32
    %1 = arith.cmpi eq, %arg1, %c0_i32 : i32
    %2 = arith.extui %1 : i1 to i32
    %c0_i32_0 = arith.constant 0 : i32
    %3 = arith.cmpi ne, %2, %c0_i32_0 : i32
    scf.if %3 {
      %c0_81 = arith.constant 0 : index
      %c0_82 = arith.constant 0 : index
      %c0_83 = arith.constant 0 : index
      %154 = vector.load %arg2[%c0_81, %c0_82, %c0_83] : memref<1x8x32xbf16, #tpu.memory_space<vmem>>, vector<1x8x32xbf16>
      %155 = vector.shape_cast %154 : vector<1x8x32xbf16> to vector<8x32xbf16>
      %156 = arith.extf %155 : vector<8x32xbf16> to vector<8x32xf32>
      %c0_84 = arith.constant 0 : index
      %c0_85 = arith.constant 0 : index
      %157 = vector.load %arg12[%c0_84, %c0_85] : memref<1x32xf32, #tpu.memory_space<vmem>>, vector<1x32xf32>
      %c0_86 = arith.constant 0 : index
      %c0_87 = arith.constant 0 : index
      %158 = vector.load %arg13[%c0_86, %c0_87] : memref<1x32xf32, #tpu.memory_space<vmem>>, vector<1x32xf32>
      %cst_88 = arith.constant dense<0.000000e+00> : vector<8xf32>
      %159 = vector.multi_reduction <add>, %156, %cst_88 [1] : vector<8x32xf32> to vector<8xf32>
      %160 = vector.shape_cast %159 : vector<8xf32> to vector<8x1xf32>
      %cst_89 = arith.constant 3.200000e+01 : f32
      %161 = vector.broadcast %cst_89 : f32 to vector<8x1xf32>
      %162 = arith.divf %160, %161 : vector<8x1xf32>
      %163 = vector.broadcast %162 : vector<8x1xf32> to vector<8x32xf32>
      %164 = arith.subf %156, %163 : vector<8x32xf32>
      %165 = arith.mulf %164, %164 : vector<8x32xf32>
      %cst_90 = arith.constant dense<0.000000e+00> : vector<8xf32>
      %166 = vector.multi_reduction <add>, %165, %cst_90 [1] : vector<8x32xf32> to vector<8xf32>
      %167 = vector.shape_cast %166 : vector<8xf32> to vector<8x1xf32>
      %cst_91 = arith.constant 3.200000e+01 : f32
      %168 = vector.broadcast %cst_91 : f32 to vector<8x1xf32>
      %169 = arith.divf %167, %168 : vector<8x1xf32>
      %170 = vector.broadcast %162 : vector<8x1xf32> to vector<8x32xf32>
      %171 = arith.subf %156, %170 : vector<8x32xf32>
      %cst_92 = arith.constant 9.99999974E-6 : f32
      %172 = vector.broadcast %cst_92 : f32 to vector<8x1xf32>
      %173 = arith.addf %169, %172 : vector<8x1xf32>
      %174 = math.rsqrt %173 : vector<8x1xf32>
      %175 = vector.broadcast %174 : vector<8x1xf32> to vector<8x32xf32>
      %176 = arith.mulf %171, %175 : vector<8x32xf32>
      %177 = vector.broadcast %157 : vector<1x32xf32> to vector<8x32xf32>
      %178 = arith.mulf %176, %177 : vector<8x32xf32>
      %179 = vector.broadcast %158 : vector<1x32xf32> to vector<8x32xf32>
      %180 = arith.addf %178, %179 : vector<8x32xf32>
      %181 = arith.truncf %180 : vector<8x32xf32> to vector<8x32xbf16>
      %c0_93 = arith.constant 0 : index
      %c0_94 = arith.constant 0 : index
      %182 = vector.load %arg5[%c0_93, %c0_94] : memref<32x64xbf16, #tpu.memory_space<vmem>>, vector<32x64xbf16>
      %cst_95 = arith.constant dense<0.000000e+00> : vector<8x64xf32>
      %183 = tpu.matmul %181, %182, %cst_95 {dimension_numbers = #tpu.dot_dimension_numbers<[1], [0], [0], [1], [0, 0, 1, 1], [], []>} : vector<8x32xbf16>, vector<32x64xbf16>, vector<8x64xf32> -> vector<8x64xf32>
      %184 = arith.truncf %183 : vector<8x64xf32> to vector<8x64xbf16>
      %c0_96 = arith.constant 0 : index
      %c0_97 = arith.constant 0 : index
      %185 = vector.load %arg17[%c0_96, %c0_97] : memref<8x64xbf16, #tpu.memory_space<vmem>>, vector<8x64xbf16>
      tpu.vector_store %arg17[%c0_96, %c0_97], %184 {strides = array<i32>} : memref<8x64xbf16, #tpu.memory_space<vmem>>, vector<8x64xbf16>,
    } else {
    }
    %c0 = arith.constant 0 : index
    %c0_1 = arith.constant 0 : index
    %c0_2 = arith.constant 0 : index
    %4 = vector.load %arg3[%c0, %c0_1, %c0_2] : memref<1x8x32xf32, #tpu.memory_space<vmem>>, vector<1x8x32xf32>
    %5 = vector.shape_cast %4 : vector<1x8x32xf32> to vector<8x32xf32>
    %c0_3 = arith.constant 0 : index
    %c0_4 = arith.constant 0 : index
    %6 = vector.load %arg12[%c0_3, %c0_4] : memref<1x32xf32, #tpu.memory_space<vmem>>, vector<1x32xf32>
    %c0_5 = arith.constant 0 : index
    %c0_6 = arith.constant 0 : index
    %7 = vector.load %arg13[%c0_5, %c0_6] : memref<1x32xf32, #tpu.memory_space<vmem>>, vector<1x32xf32>
    %cst = arith.constant dense<0.000000e+00> : vector<8xf32>
    %8 = vector.multi_reduction <add>, %5, %cst [1] : vector<8x32xf32> to vector<8xf32>
    %9 = vector.shape_cast %8 : vector<8xf32> to vector<8x1xf32>
    %cst_7 = arith.constant 3.200000e+01 : f32
    %10 = vector.broadcast %cst_7 : f32 to vector<8x1xf32>
    %11 = arith.divf %9, %10 : vector<8x1xf32>
    %12 = vector.broadcast %11 : vector<8x1xf32> to vector<8x32xf32>
    %13 = arith.subf %5, %12 : vector<8x32xf32>
    %14 = arith.mulf %13, %13 : vector<8x32xf32>
    %cst_8 = arith.constant dense<0.000000e+00> : vector<8xf32>
    %15 = vector.multi_reduction <add>, %14, %cst_8 [1] : vector<8x32xf32> to vector<8xf32>
    %16 = vector.shape_cast %15 : vector<8xf32> to vector<8x1xf32>
    %cst_9 = arith.constant 3.200000e+01 : f32
    %17 = vector.broadcast %cst_9 : f32 to vector<8x1xf32>
    %18 = arith.divf %16, %17 : vector<8x1xf32>
    %19 = vector.broadcast %11 : vector<8x1xf32> to vector<8x32xf32>
    %20 = arith.subf %5, %19 : vector<8x32xf32>
    %cst_10 = arith.constant 9.99999974E-6 : f32
    %21 = vector.broadcast %cst_10 : f32 to vector<8x1xf32>
    %22 = arith.addf %18, %21 : vector<8x1xf32>
    %23 = math.rsqrt %22 : vector<8x1xf32>
    %24 = vector.broadcast %23 : vector<8x1xf32> to vector<8x32xf32>
    %25 = arith.mulf %20, %24 : vector<8x32xf32>
    %26 = vector.broadcast %6 : vector<1x32xf32> to vector<8x32xf32>
    %27 = arith.mulf %25, %26 : vector<8x32xf32>
    %28 = vector.broadcast %7 : vector<1x32xf32> to vector<8x32xf32>
    %29 = arith.addf %27, %28 : vector<8x32xf32>
    %30 = arith.truncf %29 : vector<8x32xf32> to vector<8x32xbf16>
    %cst_11 = arith.constant 8.000000e+00 : f32
    %31 = math.sqrt %cst_11 : f32
    %cst_12 = arith.constant 1.000000e+00 : f32
    %32 = arith.divf %cst_12, %31 : f32
    %c0_13 = arith.constant 0 : index
    %c0_14 = arith.constant 0 : index
    %33 = vector.load %arg4[%c0_13, %c0_14] : memref<32x32xbf16, #tpu.memory_space<vmem>>, vector<32x32xbf16>
    %cst_15 = arith.constant dense<0.000000e+00> : vector<8x32xf32>
    %34 = tpu.matmul %30, %33, %cst_15 {dimension_numbers = #tpu.dot_dimension_numbers<[1], [0], [0], [1], [0, 0, 1, 1], [], []>} : vector<8x32xbf16>, vector<32x32xbf16>, vector<8x32xf32> -> vector<8x32xf32>
    %35 = vector.broadcast %32 : f32 to vector<8x32xf32>
    %36 = arith.mulf %34, %35 : vector<8x32xf32>
    %37 = arith.truncf %36 : vector<8x32xf32> to vector<8x32xbf16>
    %38 = tpu.iota {dimensions = array<i32: 0>} : vector<8x8xi32>
    %39 = vector.broadcast %0 : i32 to vector<8x8xi32>
    %40 = arith.addi %39, %38 : vector<8x8xi32>
    %41 = vector.extract_strided_slice %37 {offsets = [0, 0], sizes = [8, 8], strides = [1, 1]} : vector<8x32xbf16> to vector<8x8xbf16>
    %cst_16 = arith.constant -1.000000e+30 : f32
    %42 = vector.broadcast %cst_16 : f32 to vector<8x1xf32>
    %cst_17 = arith.constant 0.000000e+00 : f32
    %43 = vector.broadcast %cst_17 : f32 to vector<8x1xf32>
    %cst_18 = arith.constant 0.000000e+00 : f32
    %44 = vector.broadcast %cst_18 : f32 to vector<8x8xf32>
    %c1_i32 = arith.constant 1 : i32
    %45 = arith.addi %arg1, %c1_i32 : i32
    %cst_19 = arith.constant -1.000000e+30 : f32
    %c0_i32_20 = arith.constant 0 : i32
    %46 = arith.subi %45, %c0_i32_20 : i32
    %47 = arith.addi %c0_i32_20, %46 : i32
    %c1_i32_21 = arith.constant 1 : i32
    %48:3 = scf.for %arg19 = %c0_i32_20 to %47 step %c1_i32_21 iter_args(%arg20 = %42, %arg21 = %43, %arg22 = %44) -> (vector<8x1xf32>, vector<8x1xf32>, vector<8x8xf32>)  : i32 {
      %c8_i32_81 = arith.constant 8 : i32
      %154 = arith.muli %arg19, %c8_i32_81 : i32
      %155 = tpu.assume_multiple %154, 8 : i32
      %156 = arith.index_cast %155 : i32 to index
      %c0_82 = arith.constant 0 : index
      %157 = vector.load %arg17[%156, %c0_82] : memref<8x64xbf16, #tpu.memory_space<vmem>>, vector<8x8xbf16>
      %158 = arith.index_cast %155 : i32 to index
      %c32 = arith.constant 32 : index
      %159 = vector.load %arg17[%158, %c32] : memref<8x64xbf16, #tpu.memory_space<vmem>>, vector<8x8xbf16>
      %cst_83 = arith.constant dense<0.000000e+00> : vector<8x8xf32>
      %160 = tpu.matmul %41, %157, %cst_83 {dimension_numbers = #tpu.dot_dimension_numbers<[1], [1], [0], [0], [0, 0, 1, 0], [], []>} : vector<8x8xbf16>, vector<8x8xbf16>, vector<8x8xf32> -> vector<8x8xf32>
      %c8_i32_84 = arith.constant 8 : i32
      %161 = arith.muli %arg19, %c8_i32_84 : i32
      %162 = tpu.iota {dimensions = array<i32: 1>} : vector<8x8xi32>
      %163 = vector.broadcast %161 : i32 to vector<8x8xi32>
      %164 = arith.addi %163, %162 : vector<8x8xi32>
      %165 = arith.cmpi sgt, %164, %40 : vector<8x8xi32>
      %166 = vector.broadcast %cst_19 : f32 to vector<8x8xf32>
      %167 = arith.select %165, %166, %160 : vector<8x8xi1>, vector<8x8xf32>
      %cst_85 = arith.constant dense<0xFF800000> : vector<8xf32>
      %168 = vector.multi_reduction <maximumf>, %167, %cst_85 [1] : vector<8x8xf32> to vector<8xf32>
      %169 = vector.shape_cast %168 : vector<8xf32> to vector<8x1xf32>
      %170 = arith.maximumf %arg20, %169 : vector<8x1xf32>
      %171 = arith.subf %arg20, %170 : vector<8x1xf32>
      %172 = math.exp %171 : vector<8x1xf32>
      %173 = vector.broadcast %170 : vector<8x1xf32> to vector<8x8xf32>
      %174 = arith.subf %167, %173 : vector<8x8xf32>
      %175 = math.exp %174 : vector<8x8xf32>
      %176 = arith.mulf %172, %arg21 : vector<8x1xf32>
      %cst_86 = arith.constant dense<0.000000e+00> : vector<8xf32>
      %177 = vector.multi_reduction <add>, %175, %cst_86 [1] : vector<8x8xf32> to vector<8xf32>
      %178 = vector.shape_cast %177 : vector<8xf32> to vector<8x1xf32>
      %179 = arith.addf %176, %178 : vector<8x1xf32>
      %180 = vector.broadcast %172 : vector<8x1xf32> to vector<8x8xf32>
      %181 = arith.mulf %180, %arg22 : vector<8x8xf32>
      %182 = arith.truncf %175 : vector<8x8xf32> to vector<8x8xbf16>
      %cst_87 = arith.constant dense<0.000000e+00> : vector<8x8xf32>
      %183 = tpu.matmul %182, %159, %cst_87 {dimension_numbers = #tpu.dot_dimension_numbers<[1], [0], [0], [1], [0, 0, 1, 1], [], []>} : vector<8x8xbf16>, vector<8x8xbf16>, vector<8x8xf32> -> vector<8x8xf32>
      %184 = arith.addf %181, %183 : vector<8x8xf32>
      scf.yield %170, %179, %184 : vector<8x1xf32>, vector<8x1xf32>, vector<8x8xf32>
    }
    %49 = tpu.reciprocal %48#1 {approx = true} : vector<8x1xf32> -> vector<8x1xf32>
    %50 = vector.broadcast %49 : vector<8x1xf32> to vector<8x8xf32>
    %51 = arith.mulf %48#2, %50 : vector<8x8xf32>
    %52 = arith.truncf %51 : vector<8x8xf32> to vector<8x8xbf16>
    %c0_22 = arith.constant 0 : index
    %c0_23 = arith.constant 0 : index
    %53 = vector.load %arg18[%c0_22, %c0_23] : memref<8x32xbf16, #tpu.memory_space<vmem>>, vector<8x8xbf16>
    tpu.vector_store %arg18[%c0_22, %c0_23], %52 {strides = array<i32>} : memref<8x32xbf16, #tpu.memory_space<vmem>>, vector<8x8xbf16>,
    %54 = vector.extract_strided_slice %37 {offsets = [0, 8], sizes = [8, 8], strides = [1, 1]} : vector<8x32xbf16> to vector<8x8xbf16>
    %cst_24 = arith.constant -1.000000e+30 : f32
    %55 = vector.broadcast %cst_24 : f32 to vector<8x1xf32>
    %cst_25 = arith.constant 0.000000e+00 : f32
    %56 = vector.broadcast %cst_25 : f32 to vector<8x1xf32>
    %cst_26 = arith.constant 0.000000e+00 : f32
    %57 = vector.broadcast %cst_26 : f32 to vector<8x8xf32>
    %c1_i32_27 = arith.constant 1 : i32
    %58 = arith.addi %arg1, %c1_i32_27 : i32
    %cst_28 = arith.constant -1.000000e+30 : f32
    %c0_i32_29 = arith.constant 0 : i32
    %59 = arith.subi %58, %c0_i32_29 : i32
    %60 = arith.addi %c0_i32_29, %59 : i32
    %c1_i32_30 = arith.constant 1 : i32
    %61:3 = scf.for %arg19 = %c0_i32_29 to %60 step %c1_i32_30 iter_args(%arg20 = %55, %arg21 = %56, %arg22 = %57) -> (vector<8x1xf32>, vector<8x1xf32>, vector<8x8xf32>)  : i32 {
      %c8_i32_81 = arith.constant 8 : i32
      %154 = arith.muli %arg19, %c8_i32_81 : i32
      %155 = tpu.assume_multiple %154, 8 : i32
      %156 = arith.index_cast %155 : i32 to index
      %c8_82 = arith.constant 8 : index
      %157 = vector.load %arg17[%156, %c8_82] : memref<8x64xbf16, #tpu.memory_space<vmem>>, vector<8x8xbf16>
      %158 = arith.index_cast %155 : i32 to index
      %c40 = arith.constant 40 : index
      %159 = vector.load %arg17[%158, %c40] : memref<8x64xbf16, #tpu.memory_space<vmem>>, vector<8x8xbf16>
      %cst_83 = arith.constant dense<0.000000e+00> : vector<8x8xf32>
      %160 = tpu.matmul %54, %157, %cst_83 {dimension_numbers = #tpu.dot_dimension_numbers<[1], [1], [0], [0], [0, 0, 1, 0], [], []>} : vector<8x8xbf16>, vector<8x8xbf16>, vector<8x8xf32> -> vector<8x8xf32>
      %c8_i32_84 = arith.constant 8 : i32
      %161 = arith.muli %arg19, %c8_i32_84 : i32
      %162 = tpu.iota {dimensions = array<i32: 1>} : vector<8x8xi32>
      %163 = vector.broadcast %161 : i32 to vector<8x8xi32>
      %164 = arith.addi %163, %162 : vector<8x8xi32>
      %165 = arith.cmpi sgt, %164, %40 : vector<8x8xi32>
      %166 = vector.broadcast %cst_28 : f32 to vector<8x8xf32>
      %167 = arith.select %165, %166, %160 : vector<8x8xi1>, vector<8x8xf32>
      %cst_85 = arith.constant dense<0xFF800000> : vector<8xf32>
      %168 = vector.multi_reduction <maximumf>, %167, %cst_85 [1] : vector<8x8xf32> to vector<8xf32>
      %169 = vector.shape_cast %168 : vector<8xf32> to vector<8x1xf32>
      %170 = arith.maximumf %arg20, %169 : vector<8x1xf32>
      %171 = arith.subf %arg20, %170 : vector<8x1xf32>
      %172 = math.exp %171 : vector<8x1xf32>
      %173 = vector.broadcast %170 : vector<8x1xf32> to vector<8x8xf32>
      %174 = arith.subf %167, %173 : vector<8x8xf32>
      %175 = math.exp %174 : vector<8x8xf32>
      %176 = arith.mulf %172, %arg21 : vector<8x1xf32>
      %cst_86 = arith.constant dense<0.000000e+00> : vector<8xf32>
      %177 = vector.multi_reduction <add>, %175, %cst_86 [1] : vector<8x8xf32> to vector<8xf32>
      %178 = vector.shape_cast %177 : vector<8xf32> to vector<8x1xf32>
      %179 = arith.addf %176, %178 : vector<8x1xf32>
      %180 = vector.broadcast %172 : vector<8x1xf32> to vector<8x8xf32>
      %181 = arith.mulf %180, %arg22 : vector<8x8xf32>
      %182 = arith.truncf %175 : vector<8x8xf32> to vector<8x8xbf16>
      %cst_87 = arith.constant dense<0.000000e+00> : vector<8x8xf32>
      %183 = tpu.matmul %182, %159, %cst_87 {dimension_numbers = #tpu.dot_dimension_numbers<[1], [0], [0], [1], [0, 0, 1, 1], [], []>} : vector<8x8xbf16>, vector<8x8xbf16>, vector<8x8xf32> -> vector<8x8xf32>
      %184 = arith.addf %181, %183 : vector<8x8xf32>
      scf.yield %170, %179, %184 : vector<8x1xf32>, vector<8x1xf32>, vector<8x8xf32>
    }
    %62 = tpu.reciprocal %61#1 {approx = true} : vector<8x1xf32> -> vector<8x1xf32>
    %63 = vector.broadcast %62 : vector<8x1xf32> to vector<8x8xf32>
    %64 = arith.mulf %61#2, %63 : vector<8x8xf32>
    %65 = arith.truncf %64 : vector<8x8xf32> to vector<8x8xbf16>
    %c0_31 = arith.constant 0 : index
    %c8 = arith.constant 8 : index
    %66 = vector.load %arg18[%c0_31, %c8] : memref<8x32xbf16, #tpu.memory_space<vmem>>, vector<8x8xbf16>
    tpu.vector_store %arg18[%c0_31, %c8], %65 {strides = array<i32>} : memref<8x32xbf16, #tpu.memory_space<vmem>>, vector<8x8xbf16>,
    %67 = vector.extract_strided_slice %37 {offsets = [0, 16], sizes = [8, 8], strides = [1, 1]} : vector<8x32xbf16> to vector<8x8xbf16>
    %cst_32 = arith.constant -1.000000e+30 : f32
    %68 = vector.broadcast %cst_32 : f32 to vector<8x1xf32>
    %cst_33 = arith.constant 0.000000e+00 : f32
    %69 = vector.broadcast %cst_33 : f32 to vector<8x1xf32>
    %cst_34 = arith.constant 0.000000e+00 : f32
    %70 = vector.broadcast %cst_34 : f32 to vector<8x8xf32>
    %c1_i32_35 = arith.constant 1 : i32
    %71 = arith.addi %arg1, %c1_i32_35 : i32
    %cst_36 = arith.constant -1.000000e+30 : f32
    %c0_i32_37 = arith.constant 0 : i32
    %72 = arith.subi %71, %c0_i32_37 : i32
    %73 = arith.addi %c0_i32_37, %72 : i32
    %c1_i32_38 = arith.constant 1 : i32
    %74:3 = scf.for %arg19 = %c0_i32_37 to %73 step %c1_i32_38 iter_args(%arg20 = %68, %arg21 = %69, %arg22 = %70) -> (vector<8x1xf32>, vector<8x1xf32>, vector<8x8xf32>)  : i32 {
      %c8_i32_81 = arith.constant 8 : i32
      %154 = arith.muli %arg19, %c8_i32_81 : i32
      %155 = tpu.assume_multiple %154, 8 : i32
      %156 = arith.index_cast %155 : i32 to index
      %c16_82 = arith.constant 16 : index
      %157 = vector.load %arg17[%156, %c16_82] : memref<8x64xbf16, #tpu.memory_space<vmem>>, vector<8x8xbf16>
      %158 = arith.index_cast %155 : i32 to index
      %c48 = arith.constant 48 : index
      %159 = vector.load %arg17[%158, %c48] : memref<8x64xbf16, #tpu.memory_space<vmem>>, vector<8x8xbf16>
      %cst_83 = arith.constant dense<0.000000e+00> : vector<8x8xf32>
      %160 = tpu.matmul %67, %157, %cst_83 {dimension_numbers = #tpu.dot_dimension_numbers<[1], [1], [0], [0], [0, 0, 1, 0], [], []>} : vector<8x8xbf16>, vector<8x8xbf16>, vector<8x8xf32> -> vector<8x8xf32>
      %c8_i32_84 = arith.constant 8 : i32
      %161 = arith.muli %arg19, %c8_i32_84 : i32
      %162 = tpu.iota {dimensions = array<i32: 1>} : vector<8x8xi32>
      %163 = vector.broadcast %161 : i32 to vector<8x8xi32>
      %164 = arith.addi %163, %162 : vector<8x8xi32>
      %165 = arith.cmpi sgt, %164, %40 : vector<8x8xi32>
      %166 = vector.broadcast %cst_36 : f32 to vector<8x8xf32>
      %167 = arith.select %165, %166, %160 : vector<8x8xi1>, vector<8x8xf32>
      %cst_85 = arith.constant dense<0xFF800000> : vector<8xf32>
      %168 = vector.multi_reduction <maximumf>, %167, %cst_85 [1] : vector<8x8xf32> to vector<8xf32>
      %169 = vector.shape_cast %168 : vector<8xf32> to vector<8x1xf32>
      %170 = arith.maximumf %arg20, %169 : vector<8x1xf32>
      %171 = arith.subf %arg20, %170 : vector<8x1xf32>
      %172 = math.exp %171 : vector<8x1xf32>
      %173 = vector.broadcast %170 : vector<8x1xf32> to vector<8x8xf32>
      %174 = arith.subf %167, %173 : vector<8x8xf32>
      %175 = math.exp %174 : vector<8x8xf32>
      %176 = arith.mulf %172, %arg21 : vector<8x1xf32>
      %cst_86 = arith.constant dense<0.000000e+00> : vector<8xf32>
      %177 = vector.multi_reduction <add>, %175, %cst_86 [1] : vector<8x8xf32> to vector<8xf32>
      %178 = vector.shape_cast %177 : vector<8xf32> to vector<8x1xf32>
      %179 = arith.addf %176, %178 : vector<8x1xf32>
      %180 = vector.broadcast %172 : vector<8x1xf32> to vector<8x8xf32>
      %181 = arith.mulf %180, %arg22 : vector<8x8xf32>
      %182 = arith.truncf %175 : vector<8x8xf32> to vector<8x8xbf16>
      %cst_87 = arith.constant dense<0.000000e+00> : vector<8x8xf32>
      %183 = tpu.matmul %182, %159, %cst_87 {dimension_numbers = #tpu.dot_dimension_numbers<[1], [0], [0], [1], [0, 0, 1, 1], [], []>} : vector<8x8xbf16>, vector<8x8xbf16>, vector<8x8xf32> -> vector<8x8xf32>
      %184 = arith.addf %181, %183 : vector<8x8xf32>
      scf.yield %170, %179, %184 : vector<8x1xf32>, vector<8x1xf32>, vector<8x8xf32>
    }
    %75 = tpu.reciprocal %74#1 {approx = true} : vector<8x1xf32> -> vector<8x1xf32>
    %76 = vector.broadcast %75 : vector<8x1xf32> to vector<8x8xf32>
    %77 = arith.mulf %74#2, %76 : vector<8x8xf32>
    %78 = arith.truncf %77 : vector<8x8xf32> to vector<8x8xbf16>
    %c0_39 = arith.constant 0 : index
    %c16 = arith.constant 16 : index
    %79 = vector.load %arg18[%c0_39, %c16] : memref<8x32xbf16, #tpu.memory_space<vmem>>, vector<8x8xbf16>
    tpu.vector_store %arg18[%c0_39, %c16], %78 {strides = array<i32>} : memref<8x32xbf16, #tpu.memory_space<vmem>>, vector<8x8xbf16>,
    %80 = vector.extract_strided_slice %37 {offsets = [0, 24], sizes = [8, 8], strides = [1, 1]} : vector<8x32xbf16> to vector<8x8xbf16>
    %cst_40 = arith.constant -1.000000e+30 : f32
    %81 = vector.broadcast %cst_40 : f32 to vector<8x1xf32>
    %cst_41 = arith.constant 0.000000e+00 : f32
    %82 = vector.broadcast %cst_41 : f32 to vector<8x1xf32>
    %cst_42 = arith.constant 0.000000e+00 : f32
    %83 = vector.broadcast %cst_42 : f32 to vector<8x8xf32>
    %c1_i32_43 = arith.constant 1 : i32
    %84 = arith.addi %arg1, %c1_i32_43 : i32
    %cst_44 = arith.constant -1.000000e+30 : f32
    %c0_i32_45 = arith.constant 0 : i32
    %85 = arith.subi %84, %c0_i32_45 : i32
    %86 = arith.addi %c0_i32_45, %85 : i32
    %c1_i32_46 = arith.constant 1 : i32
    %87:3 = scf.for %arg19 = %c0_i32_45 to %86 step %c1_i32_46 iter_args(%arg20 = %81, %arg21 = %82, %arg22 = %83) -> (vector<8x1xf32>, vector<8x1xf32>, vector<8x8xf32>)  : i32 {
      %c8_i32_81 = arith.constant 8 : i32
      %154 = arith.muli %arg19, %c8_i32_81 : i32
      %155 = tpu.assume_multiple %154, 8 : i32
      %156 = arith.index_cast %155 : i32 to index
      %c24_82 = arith.constant 24 : index
      %157 = vector.load %arg17[%156, %c24_82] : memref<8x64xbf16, #tpu.memory_space<vmem>>, vector<8x8xbf16>
      %158 = arith.index_cast %155 : i32 to index
      %c56 = arith.constant 56 : index
      %159 = vector.load %arg17[%158, %c56] : memref<8x64xbf16, #tpu.memory_space<vmem>>, vector<8x8xbf16>
      %cst_83 = arith.constant dense<0.000000e+00> : vector<8x8xf32>
      %160 = tpu.matmul %80, %157, %cst_83 {dimension_numbers = #tpu.dot_dimension_numbers<[1], [1], [0], [0], [0, 0, 1, 0], [], []>} : vector<8x8xbf16>, vector<8x8xbf16>, vector<8x8xf32> -> vector<8x8xf32>
      %c8_i32_84 = arith.constant 8 : i32
      %161 = arith.muli %arg19, %c8_i32_84 : i32
      %162 = tpu.iota {dimensions = array<i32: 1>} : vector<8x8xi32>
      %163 = vector.broadcast %161 : i32 to vector<8x8xi32>
      %164 = arith.addi %163, %162 : vector<8x8xi32>
      %165 = arith.cmpi sgt, %164, %40 : vector<8x8xi32>
      %166 = vector.broadcast %cst_44 : f32 to vector<8x8xf32>
      %167 = arith.select %165, %166, %160 : vector<8x8xi1>, vector<8x8xf32>
      %cst_85 = arith.constant dense<0xFF800000> : vector<8xf32>
      %168 = vector.multi_reduction <maximumf>, %167, %cst_85 [1] : vector<8x8xf32> to vector<8xf32>
      %169 = vector.shape_cast %168 : vector<8xf32> to vector<8x1xf32>
      %170 = arith.maximumf %arg20, %169 : vector<8x1xf32>
      %171 = arith.subf %arg20, %170 : vector<8x1xf32>
      %172 = math.exp %171 : vector<8x1xf32>
      %173 = vector.broadcast %170 : vector<8x1xf32> to vector<8x8xf32>
      %174 = arith.subf %167, %173 : vector<8x8xf32>
      %175 = math.exp %174 : vector<8x8xf32>
      %176 = arith.mulf %172, %arg21 : vector<8x1xf32>
      %cst_86 = arith.constant dense<0.000000e+00> : vector<8xf32>
      %177 = vector.multi_reduction <add>, %175, %cst_86 [1] : vector<8x8xf32> to vector<8xf32>
      %178 = vector.shape_cast %177 : vector<8xf32> to vector<8x1xf32>
      %179 = arith.addf %176, %178 : vector<8x1xf32>
      %180 = vector.broadcast %172 : vector<8x1xf32> to vector<8x8xf32>
      %181 = arith.mulf %180, %arg22 : vector<8x8xf32>
      %182 = arith.truncf %175 : vector<8x8xf32> to vector<8x8xbf16>
      %cst_87 = arith.constant dense<0.000000e+00> : vector<8x8xf32>
      %183 = tpu.matmul %182, %159, %cst_87 {dimension_numbers = #tpu.dot_dimension_numbers<[1], [0], [0], [1], [0, 0, 1, 1], [], []>} : vector<8x8xbf16>, vector<8x8xbf16>, vector<8x8xf32> -> vector<8x8xf32>
      %184 = arith.addf %181, %183 : vector<8x8xf32>
      scf.yield %170, %179, %184 : vector<8x1xf32>, vector<8x1xf32>, vector<8x8xf32>
    }
    %88 = tpu.reciprocal %87#1 {approx = true} : vector<8x1xf32> -> vector<8x1xf32>
    %89 = vector.broadcast %88 : vector<8x1xf32> to vector<8x8xf32>
    %90 = arith.mulf %87#2, %89 : vector<8x8xf32>
    %91 = arith.truncf %90 : vector<8x8xf32> to vector<8x8xbf16>
    %c0_47 = arith.constant 0 : index
    %c24 = arith.constant 24 : index
    %92 = vector.load %arg18[%c0_47, %c24] : memref<8x32xbf16, #tpu.memory_space<vmem>>, vector<8x8xbf16>
    tpu.vector_store %arg18[%c0_47, %c24], %91 {strides = array<i32>} : memref<8x32xbf16, #tpu.memory_space<vmem>>, vector<8x8xbf16>,
    %c0_48 = arith.constant 0 : index
    %c0_49 = arith.constant 0 : index
    %93 = vector.load %arg18[%c0_48, %c0_49] : memref<8x32xbf16, #tpu.memory_space<vmem>>, vector<8x32xbf16>
    %c0_50 = arith.constant 0 : index
    %c0_51 = arith.constant 0 : index
    %94 = vector.load %arg6[%c0_50, %c0_51] : memref<32x32xbf16, #tpu.memory_space<vmem>>, vector<32x32xbf16>
    %cst_52 = arith.constant dense<0.000000e+00> : vector<8x32xf32>
    %95 = tpu.matmul %93, %94, %cst_52 {dimension_numbers = #tpu.dot_dimension_numbers<[1], [0], [0], [1], [0, 0, 1, 1], [], []>} : vector<8x32xbf16>, vector<32x32xbf16>, vector<8x32xf32> -> vector<8x32xf32>
    %c0_53 = arith.constant 0 : index
    %c0_54 = arith.constant 0 : index
    %96 = vector.load %arg7[%c0_53, %c0_54] : memref<1x32xf32, #tpu.memory_space<vmem>>, vector<1x32xf32>
    %97 = vector.broadcast %96 : vector<1x32xf32> to vector<8x32xf32>
    %98 = arith.addf %95, %97 : vector<8x32xf32>
    %99 = arith.addf %5, %98 : vector<8x32xf32>
    %c0_55 = arith.constant 0 : index
    %c0_56 = arith.constant 0 : index
    %100 = vector.load %arg14[%c0_55, %c0_56] : memref<1x32xf32, #tpu.memory_space<vmem>>, vector<1x32xf32>
    %c0_57 = arith.constant 0 : index
    %c0_58 = arith.constant 0 : index
    %101 = vector.load %arg15[%c0_57, %c0_58] : memref<1x32xf32, #tpu.memory_space<vmem>>, vector<1x32xf32>
    %cst_59 = arith.constant dense<0.000000e+00> : vector<8xf32>
    %102 = vector.multi_reduction <add>, %99, %cst_59 [1] : vector<8x32xf32> to vector<8xf32>
    %103 = vector.shape_cast %102 : vector<8xf32> to vector<8x1xf32>
    %cst_60 = arith.constant 3.200000e+01 : f32
    %104 = vector.broadcast %cst_60 : f32 to vector<8x1xf32>
    %105 = arith.divf %103, %104 : vector<8x1xf32>
    %106 = vector.broadcast %105 : vector<8x1xf32> to vector<8x32xf32>
    %107 = arith.subf %99, %106 : vector<8x32xf32>
    %108 = arith.mulf %107, %107 : vector<8x32xf32>
    %cst_61 = arith.constant dense<0.000000e+00> : vector<8xf32>
    %109 = vector.multi_reduction <add>, %108, %cst_61 [1] : vector<8x32xf32> to vector<8xf32>
    %110 = vector.shape_cast %109 : vector<8xf32> to vector<8x1xf32>
    %cst_62 = arith.constant 3.200000e+01 : f32
    %111 = vector.broadcast %cst_62 : f32 to vector<8x1xf32>
    %112 = arith.divf %110, %111 : vector<8x1xf32>
    %113 = vector.broadcast %105 : vector<8x1xf32> to vector<8x32xf32>
    %114 = arith.subf %99, %113 : vector<8x32xf32>
    %cst_63 = arith.constant 9.99999974E-6 : f32
    %115 = vector.broadcast %cst_63 : f32 to vector<8x1xf32>
    %116 = arith.addf %112, %115 : vector<8x1xf32>
    %117 = math.rsqrt %116 : vector<8x1xf32>
    %118 = vector.broadcast %117 : vector<8x1xf32> to vector<8x32xf32>
    %119 = arith.mulf %114, %118 : vector<8x32xf32>
    %120 = vector.broadcast %100 : vector<1x32xf32> to vector<8x32xf32>
    %121 = arith.mulf %119, %120 : vector<8x32xf32>
    %122 = vector.broadcast %101 : vector<1x32xf32> to vector<8x32xf32>
    %123 = arith.addf %121, %122 : vector<8x32xf32>
    %124 = arith.truncf %123 : vector<8x32xf32> to vector<8x32xbf16>
    %c0_64 = arith.constant 0 : index
    %c0_65 = arith.constant 0 : index
    %125 = vector.load %arg8[%c0_64, %c0_65] : memref<32x128xbf16, #tpu.memory_space<vmem>>, vector<32x128xbf16>
    %cst_66 = arith.constant dense<0.000000e+00> : vector<8x128xf32>
    %126 = tpu.matmul %124, %125, %cst_66 {dimension_numbers = #tpu.dot_dimension_numbers<[1], [0], [0], [1], [0, 0, 1, 1], [], []>} : vector<8x32xbf16>, vector<32x128xbf16>, vector<8x128xf32> -> vector<8x128xf32>
    %c0_67 = arith.constant 0 : index
    %c0_68 = arith.constant 0 : index
    %127 = vector.load %arg9[%c0_67, %c0_68] : memref<1x128xf32, #tpu.memory_space<vmem>>, vector<1x128xf32>
    %128 = vector.broadcast %127 : vector<1x128xf32> to vector<8x128xf32>
    %129 = arith.addf %126, %128 : vector<8x128xf32>
    %cst_69 = arith.constant 5.000000e-01 : f32
    %130 = vector.broadcast %cst_69 : f32 to vector<8x128xf32>
    %131 = arith.mulf %130, %129 : vector<8x128xf32>
    %cst_70 = arith.constant 0.636619746 : f32
    %132 = math.sqrt %cst_70 : f32
    %133 = arith.mulf %129, %129 : vector<8x128xf32>
    %134 = arith.mulf %129, %133 : vector<8x128xf32>
    %cst_71 = arith.constant 4.471500e-02 : f32
    %135 = vector.broadcast %cst_71 : f32 to vector<8x128xf32>
    %136 = arith.mulf %135, %134 : vector<8x128xf32>
    %137 = arith.addf %129, %136 : vector<8x128xf32>
    %138 = vector.broadcast %132 : f32 to vector<8x128xf32>
    %139 = arith.mulf %138, %137 : vector<8x128xf32>
    %140 = math.tanh %139 : vector<8x128xf32>
    %cst_72 = arith.constant 1.000000e+00 : f32
    %141 = vector.broadcast %cst_72 : f32 to vector<8x128xf32>
    %142 = arith.addf %141, %140 : vector<8x128xf32>
    %143 = arith.mulf %131, %142 : vector<8x128xf32>
    %144 = arith.truncf %143 : vector<8x128xf32> to vector<8x128xbf16>
    %c0_73 = arith.constant 0 : index
    %c0_74 = arith.constant 0 : index
    %145 = vector.load %arg10[%c0_73, %c0_74] : memref<128x32xbf16, #tpu.memory_space<vmem>>, vector<128x32xbf16>
    %cst_75 = arith.constant dense<0.000000e+00> : vector<8x32xf32>
    %146 = tpu.matmul %144, %145, %cst_75 {dimension_numbers = #tpu.dot_dimension_numbers<[1], [0], [0], [1], [0, 0, 1, 1], [], []>} : vector<8x128xbf16>, vector<128x32xbf16>, vector<8x32xf32> -> vector<8x32xf32>
    %c0_76 = arith.constant 0 : index
    %c0_77 = arith.constant 0 : index
    %147 = vector.load %arg11[%c0_76, %c0_77] : memref<1x32xf32, #tpu.memory_space<vmem>>, vector<1x32xf32>
    %148 = vector.broadcast %147 : vector<1x32xf32> to vector<8x32xf32>
    %149 = arith.addf %146, %148 : vector<8x32xf32>
    %150 = arith.addf %99, %149 : vector<8x32xf32>
    %c0_78 = arith.constant 0 : index
    %c0_79 = arith.constant 0 : index
    %c0_80 = arith.constant 0 : index
    %151 = vector.load %arg16[%c0_78, %c0_79, %c0_80] : memref<1x8x32xf32, #tpu.memory_space<vmem>>, vector<1x8x32xf32>
    %152 = vector.shape_cast %151 : vector<1x8x32xf32> to vector<8x32xf32>
    %153 = vector.shape_cast %150 : vector<8x32xf32> to vector<1x8x32xf32>
    tpu.vector_store %arg16[%c0_78, %c0_79, %c0_80], %153 {strides = array<i32>} : memref<1x8x32xf32, #tpu.memory_space<vmem>>, vector<1x8x32xf32>,
    return
  }
  func.func @transform_0(%arg0: i32, %arg1: i32) -> (i32, i32, i32) {
    %c0_i32 = arith.constant 0 : i32
    %c0_i32_0 = arith.constant 0 : i32
    %c0_i32_1 = arith.constant 0 : i32
    return %arg0, %c0_i32, %c0_i32_0 : i32, i32, i32
  }
  func.func @transform_1(%arg0: i32, %arg1: i32) -> (i32, i32, i32) {
    %c0_i32 = arith.constant 0 : i32
    %c0_i32_0 = arith.constant 0 : i32
    return %arg0, %arg1, %c0_i32 : i32, i32, i32
  }
  func.func @transform_2(%arg0: i32, %arg1: i32) -> (i32, i32) {
    %c0_i32 = arith.constant 0 : i32
    %c0_i32_0 = arith.constant 0 : i32
    %c0_i32_1 = arith.constant 0 : i32
    return %c0_i32, %c0_i32_0 : i32, i32
  }
  func.func @transform_3(%arg0: i32, %arg1: i32) -> (i32, i32) {
    %c0_i32 = arith.constant 0 : i32
    %c0_i32_0 = arith.constant 0 : i32
    %c0_i32_1 = arith.constant 0 : i32
    return %c0_i32, %c0_i32_0 : i32, i32
  }
  func.func @transform_4(%arg0: i32, %arg1: i32) -> (i32, i32) {
    %c0_i32 = arith.constant 0 : i32
    %c0_i32_0 = arith.constant 0 : i32
    %c0_i32_1 = arith.constant 0 : i32
    return %c0_i32, %c0_i32_0 : i32, i32
  }
  func.func @transform_5(%arg0: i32, %arg1: i32) -> (i32, i32) {
    %c0_i32 = arith.constant 0 : i32
    %c0_i32_0 = arith.constant 0 : i32
    %c0_i32_1 = arith.constant 0 : i32
    return %c0_i32, %c0_i32_0 : i32, i32
  }
  func.func @transform_6(%arg0: i32, %arg1: i32) -> (i32, i32) {
    %c0_i32 = arith.constant 0 : i32
    %c0_i32_0 = arith.constant 0 : i32
    %c0_i32_1 = arith.constant 0 : i32
    return %c0_i32, %c0_i32_0 : i32, i32
  }
  func.func @transform_7(%arg0: i32, %arg1: i32) -> (i32, i32) {
    %c0_i32 = arith.constant 0 : i32
    %c0_i32_0 = arith.constant 0 : i32
    %c0_i32_1 = arith.constant 0 : i32
    return %c0_i32, %c0_i32_0 : i32, i32
  }
  func.func @transform_8(%arg0: i32, %arg1: i32) -> (i32, i32) {
    %c0_i32 = arith.constant 0 : i32
    %c0_i32_0 = arith.constant 0 : i32
    %c0_i32_1 = arith.constant 0 : i32
    return %c0_i32, %c0_i32_0 : i32, i32
  }
  func.func @transform_9(%arg0: i32, %arg1: i32) -> (i32, i32) {
    %c0_i32 = arith.constant 0 : i32
    %c0_i32_0 = arith.constant 0 : i32
    %c0_i32_1 = arith.constant 0 : i32
    return %c0_i32, %c0_i32_0 : i32, i32
  }
  func.func @transform_10(%arg0: i32, %arg1: i32) -> (i32, i32) {
    %c0_i32 = arith.constant 0 : i32
    %c0_i32_0 = arith.constant 0 : i32
    %c0_i32_1 = arith.constant 0 : i32
    return %c0_i32, %c0_i32_0 : i32, i32
  }
  func.func @transform_11(%arg0: i32, %arg1: i32) -> (i32, i32) {
    %c0_i32 = arith.constant 0 : i32
    %c0_i32_0 = arith.constant 0 : i32
    %c0_i32_1 = arith.constant 0 : i32
    return %c0_i32, %c0_i32_0 : i32, i32
  }
  func.func @transform_12(%arg0: i32, %arg1: i32) -> (i32, i32) {
    %c0_i32 = arith.constant 0 : i32
    %c0_i32_0 = arith.constant 0 : i32
    %c0_i32_1 = arith.constant 0 : i32
    return %c0_i32, %c0_i32_0 : i32, i32
  }
  func.func @transform_13(%arg0: i32, %arg1: i32) -> (i32, i32) {
    %c0_i32 = arith.constant 0 : i32
    %c0_i32_0 = arith.constant 0 : i32
    %c0_i32_1 = arith.constant 0 : i32
    return %c0_i32, %c0_i32_0 : i32, i32
  }
  func.func @transform_14(%arg0: i32, %arg1: i32) -> (i32, i32, i32) {
    %c0_i32 = arith.constant 0 : i32
    %c0_i32_0 = arith.constant 0 : i32
    return %arg0, %arg1, %c0_i32 : i32, i32, i32
  }
}

</mosaic_0001>

<bundles_post_ra>
// kernel: tpu_custom_call.1
= control target key start
LH: loop header
LB: loop body
LE: loop exit
PB: predicated region body
PF: predicated region fallthrough
CT: control target
= control target key end

     0   :  { %s3038_s0 = inlined_call_operand.hbm [shape: bf16[2,8,32], index: 0, kind: input, shape index: {}]   ;;  %s3039_s1 = inlined_call_operand.vmem [shape: f32[2,8,32], index: 1, kind: input, shape index: {}]   ;;  %s3040_s2 = inlined_call_operand.vmem [shape: bf16[32,32], index: 2, kind: input, shape index: {}]   ;;  %s3041_s3 = inlined_call_operand.vmem [shape: bf16[32,64], index: 3, kind: input, shape index: {}]   ;;  %s3042_s4 = inlined_call_operand.vmem [shape: bf16[32,32], index: 4, kind: input, shape index: {}]   ;;  %s3043_s5 = inlined_call_operand.vmem [shape: f32[1,32], index: 5, kind: input, shape index: {}]   ;;  %s3044_s6 = inlined_call_operand.vmem [shape: bf16[32,128], index: 6, kind: input, shape index: {}]   ;;  %s3045_s7 = inlined_call_operand.vmem [shape: f32[1,128], index: 7, kind: input, shape index: {}]   ;;  %s3046_s8 = inlined_call_operand.vmem [shape: bf16[128,32], index: 8, kind: input, shape index: {}]   ;;  %s3047_s9 = inlined_call_operand.vmem [shape: f32[1,32], index: 9, kind: input, shape index: {}]   ;;  %s3048_s10 = inlined_call_operand.vmem [shape: f32[1,32], index: 10, kind: input, shape index: {}]   ;;  %s3049_s11 = inlined_call_operand.vmem [shape: f32[1,32], index: 11, kind: input, shape index: {}]   ;;  %s3050_s12 = inlined_call_operand.vmem [shape: f32[1,32], index: 12, kind: input, shape index: {}]   ;;  %s3051_s13 = inlined_call_operand.vmem [shape: f32[1,32], index: 13, kind: input, shape index: {}]   ;;  %s3052_s14 = inlined_call_operand.hbm [shape: f32[2,8,32], index: 14, kind: output, shape index: {}]  }
   0x1   :  { %3058 = sst [smem:[#allocation14_spill]] %s3047_s9 }
   0x2   :  { %3059 = sst [smem:[#allocation15_spill]] %s3052_s14 }
   0x3   :  { %19 = vsyncpa [#allocation5], 0 }
   0x4   :  { %21 = vsyncpa [#allocation5 + $0x1], 0 }
   0x5   :  { %22 = vsyncpa [#allocation6], 0 }
   0x6   :  { %24 = vsyncpa [#allocation6 + $0x1], 0  ;;  %s2598_s29 = smov 0   ;;  %s2600_s30 = smov 0  }
   0x7   :  { %s2602_s15 = smov 0   ;;  %s2604_s16 = smov 0  }
   0x8   :  { %s2606_s17 = smov 0   ;;  %s2608_s18 = smov 0  }
   0x9 LB: > { %3060 = sst [smem:[#allocation10_spill]] %s2415_s29  ;;  %s1791_s19 = sadd.s32 4294967295, %s2435_s18   ;;  %s2435_s18 = sphi %s2608_s18, %s30_s18   ;;  %s2431_s17 = sphi %s2606_s17, %s3091_s17   ;;  %s2427_s16 = sphi %s2604_s16, %s3090_s16   ;;  %s2423_s15 = sphi %s2602_s15, %s3094_s15   ;;  %s2419_s30 = sphi %s2600_s30, %s3093_s30   ;;  %s2415_s29 = sphi %s2598_s29, %s3092_s29  }
   0xa   : > { %3061 = sst [smem:[#allocation11_spill]] %s2431_s17  ;;  %s1792_s20 = sadd.s32 4294967294, %s2435_s18  }
   0xb   : > { %s42_s21 = sadd.s32 1, %s2431_s17  ;;  %s49_s22 = sadd.s32 1, %s2423_s15 }
   0xc   : > { %p44_p0 = scmp.ge.s32.totalorder %s42_s21, 2  ;;  %p56_p1 = scmp.ne.s32.totalorder %s2423_s15, %s2419_s30 }
   0xd   : > { %p57_p2 = scmp.eq.s32.totalorder %s2435_s18, 0  ;;  %p62_p3 = scmp.ne.s32.totalorder %s2419_s30, %s2415_s29 }
   0xe   : > { %s3096_s21 = smov (%p44_p0, %s42_s21), 0  ;;  %p63_p5 = scmp.eq.s32.totalorder %s1791_s19, 0 }
   0xf   : > { %3062 = sst [smem:[#allocation12_spill]] %s3096_s21  ;;  %p2639_p4 = por %p57_p2, %p56_p1 }
  0x10   : > { %s46_s24 = ssub.s32 %s2431_s17, %s3096_s21  ;;  %p368_p6 = scmp.eq.s32.totalorder %s1791_s19, 1 }
  0x11   : > { %p47_p7 = scmp.eq.s32.totalorder %s46_s24, 0  ;;  %p2645_p8 = por %p63_p5, %p62_p3 }
  0x12   : > { %p2649_p9 = por %p368_p6, %p56_p1  ;;  %p374_p10 = scmp.eq.s32.totalorder %s1792_s20, 1 }
  0x13   : > { %s2654_s27 = scalar_select %p47_p7, %s2423_s15, %s49_s22  }
  0x14   : > { %s3065_s26 = scalar_select %p2649_p9, 1, 0 }
  0x15   : > { %3066 = sst [smem:[#allocation13_spill]] %s2654_s27  ;;  %p2656_p11 = por %p374_p10, %p62_p3 }
  0x16   : > { %p2009_p13 = scmp.lt.s32.totalorder %s2435_s18, 2  ;;  %s430_s19 = sand.u32 1, %s2423_s15  }
  0x17   : > { %s3067_s28 = scalar_select %p2656_p11, 1, 0 }
  0x18   : > { %s1795_s24 = sshll.u32 %s430_s19, 2  ;;  %s1796_s21 = sshll.u32 %s2431_s17, 6 }
  0x19   : > { %s2667_s9 = scalar_lea.hbm %s3038_s0, %s1796_s21  ;;  %s434_s20 = scalar_lea.vmem [#allocation4], %s1795_s24 }
  0x1a   : > { %s441_s22 = sshll.u32 %s434_s20, 4  ;;  %p2673_p0 = pnand %p2009_p13, %p2639_p4  ;;  %s2669_s22 = int_to_ptr.vmem [resolvable:$true] %s441_s22 }
  0x1b   : > { %s431_s14 = scalar_lea.sflag [#allocation5], %s430_s19  ;;  %s2259_s29 = scalar_lea.hbm %s2667_s9, 64 }
  0x1c   : > { %p2260_p3 = scmp.ne.s32.totalorder %s2667_s9, %s2259_s29  ;;  %p2261_p5 = pneg %p2673_p0 }
  0x1d   : > { %s2264_s23 = scalar_lea.hbm %s3038_s0, 128  ;;  %p2265_p4 = scmp.lt.u32.totalorder %s2667_s9, %s3038_s0 }
  0x1e   : > { %p2262_p6 = pnand %p2261_p5, %p2260_p3  ;;  %p2266_p10 = scmp.lt.u32.totalorder %s2264_s23, %s2259_s29 }
  0x1f   : > { %p2268_p12 = scmp.lt.u32.totalorder %s2259_s29, %s2667_s9 }
  0x20   : > { %p2263_p7 = pneg %p2262_p6  ;;  %p2267_p13 = por %p2266_p10, %p2265_p4 }
  0x22   : > { %p2269_p1 = por %p2268_p12, %p2267_p13 }
  0x24   : > { %p2270_p2 = pnand %p2269_p1, %p2263_p7 }
  0x26   : > { %2273 = shalt.err (!%p2270_p2)
}
  0x27   : > { %s2274_s19 = scalar_lea.vmem %s2669_s22, 64  ;;  %s2501_s21 = smov [#allocation4]  }
  0x28   : > { %p2275_p3 = scmp.ne.s32.totalorder %s2669_s22, %s2274_s19  ;;  %s2279_s24 = sshll.u32 %s2501_s21, 4  ;;  %s2280_s24 = int_to_ptr.vmem [resolvable:$false] %s2279_s24 }
  0x29   : > { %s2281_s17 = scalar_lea.vmem %s2280_s24, 128  ;;  %p2282_p9 = scmp.lt.s32.totalorder %s2669_s22, %s2280_s24 }
  0x2a   : > { %p2277_p6 = pnand %p2275_p3, %p2261_p5  ;;  %p2283_p4 = scmp.lt.s32.totalorder %s2281_s17, %s2274_s19 }
  0x2c   : > { %p2278_p11 = pneg %p2277_p6  ;;  %p2284_p10 = por %p2283_p4, %p2282_p9 }
  0x2e   : > { %p2285_p12 = pnand %p2284_p10, %p2278_p11 }
  0x30   : > { %2288 = shalt.err (!%p2285_p12)
}
  0x31   : > { %2004 = dma.hbm_to_vmem [thread:$0]  (!%p2673_p0), %s2667_s9, 64, %s2669_s22, %s431_s14  }
  0x32   : > { %p3069_p1 = scmp.lt.s32.totalorder %s2435_s18, 3  ;;  %p3070_p2 = scmp.ge.s32.totalorder %s2435_s18, 1 }
  0x34   : > { %p457_p5 = pnand %p3070_p2, %p3069_p1 }
  0x35   : > { %s2709_s29 = sand.u32 (!%p457_p5), 1, %s2419_s30  }
  0x36   : > { %460 = sbr.rel (%p457_p5) target bundleno = 4726 (0x1276), region = 76  ;;  %s1798_s23 = sshll.u32 (!%p457_p5), %s2709_s29, 2 }
  0x37   : > { %s463_s20 = scalar_lea.sflag (!%p457_p5), [#allocation5], %s2709_s29  ;;  %s466_s19 = scalar_lea.vmem (!%p457_p5), [#allocation4], %s1798_s23 }
  0x3d   : > { %2406 = dma.done.wait (%p2645_p8), %s463_s20, 64  }
  0x3e   : > { %2408 = vsyncadd (%p2645_p8), %s463_s20, 4294967232  ;;  %p518_p9 = scmp.lt.s32.totalorder %s2427_s16, 1  ;;  %v531_v0 = vld [vmem:[%s466_s19] sm:$0xf]  ;;  %vm535_vm0 = vcmask 261120   ;;  %v2207_v15 = vld [vmem:[%s3041_s3] sm:$0xff]   ;;  %v721_v38 = vlaneseq }
  0x3f   : > { %v532_v1 = vunpack.c.l.bf16 %v531_v0  ;;  %v2502_v16 = vmov 0.0   ;;  %v2208_v17 = vld [vmem:[%s3041_s3 + $0x8] sm:$0xff]   ;;  %v2209_v18 = vld [vmem:[%s3040_s2] sm:$0xff]   ;;  %vm2503_vm1 = vmmov 0   ;;  %vm625_vm2 = vcmask 519168   ;;  %s2774_s23 = smov 0  }
  0x40   : > { %s519_s9 = scalar_select %p518_p9, %s2427_s16, 1  ;;  %1897 = vmatprep.subr.bf16.mxu0 %v2502_v16  ;;  %1905 = vmatprep.subr.bf16.mxu1 %v2502_v16  ;;  %v2210_v19 = vld [vmem:[%s3040_s2 + $0x8] sm:$0xff]   ;;  %v1801_v27 = vld [vmem:[%s3048_s10] ss:$0 sm:$0xff]  ;;  %v2760_v39 = vshrl.u32 %v721_v38, 7  ;;  %v2768_v51 = vmov 0.0  }
  0x41   : > { %v536_v3 = vsel %vm535_vm0, %v532_v1, 0.0  ;;  %1898 = vmatpush3.bf16.msra.mxu0 %v2207_v15  ;;  %1906 = vmatpush3.bf16.msra.mxu1 %v2209_v18  ;;  %v1802_v29 = vld [vmem:[%s3049_s11] ss:$0 sm:$0xff]  ;;  %v2770_v52 = vmov 0.0   ;;  %v2772_v53 = vmov -1e+30  }
  0x42   : > { %s1800_s27 = sshll.u32 %s519_s9, 3  ;;  %537 = vadd.xlane.f32.xlu0 %v536_v3  ;;  %1899 = vmatprep.subr.bf16.mxu0 %v2502_v16  ;;  %s1799_s9 = sshll.u32 %s2709_s29, 3 }
  0x43   : > { %s524_s21 = scalar_lea.vmem %s3039_s1, %s1800_s27  ;;  %1901 = vmatprep.mubr.msk.bf16.mxu0 %vm2503_vm1, %v2502_v16  ;;  %1907 = vmatprep.subr.bf16.mxu1 %v2502_v16  ;;  %s2766_s17 = scalar_lea.vmem [#allocation7], %s1799_s9 }
  0x44   : > { %v2722_v2 = vld [vmem:[%s524_s21] sm:$0xff]  ;;  %1909 = vmatprep.mubr.msk.bf16.mxu1 %vm2503_vm1, %v2502_v16 }
  0x45   : > { %v631_v4 = vsel %vm535_vm0, %v2722_v2, 0.0  ;;  %1900 = vmatpush3.bf16.msra.mxu0 %v2208_v17  ;;  %1908 = vmatpush3.bf16.msra.mxu1 %v2210_v19 }
  0x46   : > { %632 = vadd.xlane.f32.xlu0 %v631_v4 }
  0xcf   : > { %v538_v5 = vpop.xlane.xlu0 %537 }
  0xd0   : > { %v540_v6 = vmul.f32 0.03125, %v538_v5 }
  0xd2   : > { %v541_v7 = vsub.f32 %v532_v1, %v540_v6 }
  0xd3   : > { %v633_v8 = vpop.xlane.xlu0 %632 }
  0xd4   : > { %v635_v9 = vmul.f32 0.03125, %v633_v8  ;;  %v542_v10 = vmul.f32 %v541_v7, %v541_v7 }
  0xd6   : > { %v636_v11 = vsub.f32 %v2722_v2, %v635_v9  ;;  %v543_v12 = vsel %vm535_vm0, %v542_v10, 0.0 }
  0xd7   : > { %544 = vadd.xlane.f32.xlu1 %v543_v12 }
  0xd8   : > { %v637_v13 = vmul.f32 %v636_v11, %v636_v11 }
  0xda   : > { %v638_v14 = vsel %vm535_vm0, %v637_v13, 0.0 }
  0xdb   : > { %639 = vadd.xlane.f32.xlu1 %v638_v14 }
 0x164   : > { %v545_v20 = vpop.xlane.xlu1 %544 }
 0x165   : > { %v546_v21 = vmul.f32 0.03125, %v545_v20 }
 0x167   : > { %v547_v22 = vadd.f32 1e-05, %v546_v21 }
 0x168   : > { %v640_v23 = vpop.xlane.xlu1 %639 }
 0x169   : > { %2211 = vrsqrt.f32 %v547_v22  ;;  %v641_v24 = vmul.f32 0.03125, %v640_v23 }
 0x16b   : > { %v642_v25 = vadd.f32 1e-05, %v641_v24 }
 0x16d   : > { %2213 = vrsqrt.f32 %v642_v25 }
 0x173   : > { %v2212_v26 = vpop.eup %2211 }
 0x174   : > { %v549_v28 = vmul.f32 %v2212_v26, %v541_v7 }
 0x176   : > { %v556_v30 = vmul.f32 %v1801_v27, %v549_v28 }
 0x177   : > { %v2214_v31 = vpop.eup %2213 }
 0x178   : > { %v644_v32 = vmul.f32 %v2214_v31, %v636_v11  ;;  %v563_v33 = vadd.f32 %v1802_v29, %v556_v30 }
 0x17a   : > { %v564_v34 = vpack.c.bf16 %v563_v33, %v563_v33  ;;  %v651_v35 = vmul.f32 %v1801_v27, %v644_v32 }
 0x17c   : > { %1902 = vmatmul.mubr.msk.bf16.vlgmr.msra.gmra.mrb[0].mxu0 %vm535_vm0, %v564_v34  ;;  %v658_v36 = vadd.f32 %v1802_v29, %v651_v35 }
 0x17e   : > { %v659_v37 = vpack.c.bf16 %v658_v36, %v658_v36 }
 0x180   : > { %1910 = vmatmul.mubr.msk.bf16.vlgmr.msra.gmra.mrb[0].mxu1 %vm535_vm0, %v659_v37 }
 0x24f   : > { %v618_v40 = vpop.f32.mrb[0].mxu0 }
 0x250   : > { %v624_v41 = vpack.c.bf16 %v618_v40, %v618_v40  ;;  %v1903_v42 = vpop.f32.mrb[1].mxu0 }
 0x251   : > { %v621_v43 = vpop.f32.mrb[2].mxu0 }
 0x252   : > { %626 = vst.msk [vmem:[#allocation2] sm:$0xf] %vm625_vm2, %v624_v41  ;;  %v1904_v44 = vpop.f32.mrb[3].mxu0 }
 0x253   : > { %v713_v45 = vpop.f32.mrb[0].mxu1 }
 0x254   : > { %v719_v46 = vmul.f32 0.35355338, %v713_v45  ;;  %v1911_v47 = vpop.f32.mrb[1].mxu1 }
 0x255   : > { %v716_v48 = vpop.f32.mrb[2].mxu1 }
 0x256   : > { %v2762_v49 = vpack.c.bf16 %v719_v46, %v719_v46  ;;  %v1912_v50 = vpop.f32.mrb[3].mxu1 }
 0x257 LB: >> { %v2504_v54 = vmov 0.0   ;;  %vm2505_vm3 = vmmov 0   ;;  %s1811_s20 = sshll.u32 %s2451_s23, 3  ;;  %vm741_vm4 = vcmask 64512   ;;  %v2787_v57 = vand.u32 127, %v721_v38  ;;  %s2506_s22 = smov 96   ;;  %s2451_s23 = sphi %s2774_s23, %s729_s23   ;;  %v2447_v53 = vphi %v2772_v53, %v3073_v53   ;;  %v2443_v52 = vphi %v2770_v52, %v3072_v52   ;;  %v2439_v51 = vphi %v2768_v51, %v3071_v51  }
 0x258   : >> { %1913 = vmatprep.subr.bf16.mxu0 %v2504_v54  ;;  %1915 = vmatprep.mubr.msk.bf16.mxu0 %vm2505_vm3, %v2504_v54  ;;  %s736_s19 = sshra.s32 %s1811_s20, 3  ;;  %v790_v58 = vstv %s1811_s20  ;;  %vm819_vm6 = vcmask 1043456   ;;  %s729_s23 = sadd.s32 1, %s2451_s23  }
 0x259   : >> { %1919 = vmatprep.subr.bf16.mxu1 %v2504_v54  ;;  %1921 = vmatprep.mubr.msk.bf16.mxu1 %vm2505_vm3, %v2504_v54  ;;  %s1812_s9 = sshll.u32 %s736_s19, 2  ;;  %v791_v59 = vadd.s32 %v790_v58, %v2787_v57  ;;  %p728_p8 = scmp.ge.s32.totalorder %s729_s23, 1 }
 0x25a   : >> { %s739_s27 = scalar_lea.vmem [#allocation2], %s1812_s9  ;;  %vm867_vm7 = vcmask (%p728_p8), 60416   ;;  %v2804_v29 = vmov (%p728_p8), 0.0   ;;  %v2806_v30 = vmov (%p728_p8), 0.0   ;;  %v2808_v31 = vmov (%p728_p8), -1e+30  }
 0x25b   : >> { %v740_v55 = vld [vmem:[%s739_s27] sm:$0xf]  ;;  %vm792_vm5 = vcmp.gt.s32.totalorder %v791_v59, %v2760_v39  ;;  %s2810_s14 = smov (%p728_p8), 0  }
 0x25c   : >> { %v746_v56 = vsel %vm741_vm4, %v740_v55, 0  ;;  %v1814_v3 = vcombine.low %v740_v55, %v740_v55 }
 0x25d   : >> { %1914 = vmatpush3.bf16.xpose.msra.mxu0 %v746_v56 }
 0x264   : >> { %1916 = vmatmul.mubr.msk.bf16.vlgmr.msra.gmra.mrb[0].mxu0 %vm741_vm4, %v2762_v49 }
 0x337   : >> { %v782_v60 = vpop.f32.mrb[0].mxu0 }
 0x338   : >> { %v793_v61 = vsel %vm792_vm5, -1e+30, %v782_v60  ;;  %v1917_v62 = vpop.f32.mrb[1].mxu0 }
 0x339   : >> { %v785_v63 = vpop.f32.mrb[2].mxu0  ;;  %v794_v0 = vsel %vm741_vm4, %v793_v61, -inf }
 0x33a   : >> { %795 = vmax.xlane.f32.xlu0 %v794_v0  ;;  %v1918_v1 = vpop.f32.mrb[3].mxu0 }
 0x350   : >> { %814 = vrot.lane.b32.xlu0 %v1814_v3, %s2506_s22 }
 0x3c7   : >> { %v796_v4 = vpop.xlane.xlu0 %795 }
 0x3c8   : >> { %v797_v5 = vmax.f32 %v2447_v53, %v796_v4  }
 0x3ca   : >> { %v798_v6 = vsub.f32 %v2447_v53, %v797_v5  ;;  %v801_v7 = vsub.f32 %v793_v61, %v797_v5  ;;  %v3073_v53 = vmov %v797_v5 }
 0x3cb   : >> { %v815_v8 = vpop.permute.xlu0 %814 }
 0x3cc   : >> { %v802_v9 = vmul.f32 1.442695, %v801_v7  ;;  %v821_v10 = vsel %vm819_vm6, %v815_v8, 0  ;;  %v799_v14 = vmul.f32 1.442695, %v798_v6 }
 0x3cd   : >> { %1920 = vmatpush3.bf16.msra.mxu1 %v821_v10 }
 0x3ce   : >> { %2216 = vpow2.f32 %v802_v9 }
 0x3cf   : >> { %2218 = vpow2.f32 %v799_v14 }
 0x3d8   : >> { %v2217_v11 = vpop.eup %2216 }
 0x3d9   : >> { %v805_v12 = vsel %vm741_vm4, %v2217_v11, 0.0  ;;  %v810_v13 = vpack.c.bf16 %v2217_v11, %v2217_v11  ;;  %v2219_v15 = vpop.eup %2218 }
 0x3da   : >> { %806 = vadd.xlane.f32.xlu1 %v805_v12  ;;  %v804_v17 = vmul.f32 %v2443_v52, %v2219_v15  ;;  %v809_v20 = vmul.f32 %v2439_v51, %v2219_v15 }
 0x3db   : >> { %1922 = vmatmul.mubr.msk.bf16.vlgmr.msra.gmra.mrb[0].mxu1 %vm741_vm4, %v810_v13 }
 0x467   : >> { %v807_v18 = vpop.xlane.xlu1 %806 }
 0x468   : >> { %v808_v19 = vadd.f32 %v807_v18, %v804_v17  }
 0x46a   : >> { %v3072_v52 = vmov %v808_v19  ;;  %2220 = vrcp.f32 (%p728_p8), %v808_v19 }
 0x474   : > { %v2221_v26 = vpop.eup (%p728_p8), %2220 }
 0x4ab   : > { %731 = sbr.rel (!%p728_p8) target bundleno = 599 (0x257), region = 160 }
 0x4ae   : >> { %v857_v21 = vpop.f32.mrb[0].mxu1 }
 0x4af   : >> { %v863_v22 = vadd.f32 %v857_v21, %v809_v20   ;;  %v1923_v23 = vpop.f32.mrb[1].mxu1 }
 0x4b0   : >> { %v860_v24 = vpop.f32.mrb[2].mxu1 }
 0x4b1   : >> { %v1924_v25 = vpop.f32.mrb[3].mxu1  ;;  %v3071_v51 = vmov %v863_v22  ;;  %v865_v27 = vmul.f32 (%p728_p8), %v2221_v26, %v863_v22 }
 0x4b3   : > { %v866_v28 = vpack.c.bf16 %v865_v27, %v865_v27 }
 0x4b5   : > { %868 = vst.msk [vmem:[#allocation3] sm:$0xf] %vm867_vm7, %v866_v28 }
 0x4b6 LB: >> { %v2507_v32 = vmov 0.0   ;;  %vm2508_vm8 = vmmov 0   ;;  %s1816_s21 = sshll.u32 %s2467_s14, 3  ;;  %s2509_s20 = smov 120   ;;  %s2467_s14 = sphi %s2810_s14, %s872_s14   ;;  %v2463_v31 = vphi %v2808_v31, %v3076_v31   ;;  %v2459_v30 = vphi %v2806_v30, %v3075_v30   ;;  %v2455_v29 = vphi %v2804_v29, %v3074_v29  }
 0x4b7   : >> { %1925 = vmatprep.subr.bf16.mxu0 %v2507_v32  ;;  %1927 = vmatprep.mubr.msk.bf16.mxu0 %vm2508_vm8, %v2507_v32  ;;  %s879_s25 = sshra.s32 %s1816_s21, 3  ;;  %v941_v37 = vstv %s1816_s21  ;;  %s2510_s19 = smov 88  }
 0x4b8   : >> { %1931 = vmatprep.subr.bf16.mxu1 %v2507_v32  ;;  %1933 = vmatprep.mubr.msk.bf16.mxu1 %vm2508_vm8, %v2507_v32  ;;  %s1817_s24 = sshll.u32 %s879_s25, 2  ;;  %v942_v38 = vadd.s32 %v941_v37, %v2787_v57  ;;  %s872_s14 = sadd.s32 1, %s2467_s14  }
 0x4b9   : >> { %s882_s23 = scalar_lea.vmem [#allocation2], %s1817_s24  ;;  %p871_p11 = scmp.ge.s32.totalorder %s872_s14, 1 }
 0x4ba   : >> { %v2222_v33 = vld [vmem:[%s882_s23] ss:$0 sps:$4 sm:$0xff]   ;;  %vm943_vm9 = vcmp.gt.s32.totalorder %v942_v38, %v2760_v39  ;;  %s2511_s9 = smov (%p871_p11), 8   ;;  %vm1021_vm10 = vcmask (%p871_p11), 126016   ;;  %v2837_v10 = vmov (%p871_p11), 0.0   ;;  %v2839_v11 = vmov (%p871_p11), 0.0  }
 0x4bb   : >> { %890 = vrot.lane.b32.xlu0 %v2222_v33, %s2509_s20  ;;  %v2841_v12 = vmov (%p871_p11), -1e+30   ;;  %s2843_s27 = smov (%p871_p11), 0  }
 0x4bf   : >> { %885 = vrot.lane.b32.xlu0 %v2762_v49, %s2509_s20 }
 0x52d   : >> { %v891_v34 = vpop.permute.xlu0 %890 }
 0x52e   : >> { %v897_v35 = vsel %vm741_vm4, %v891_v34, 0 }
 0x52f   : >> { %1926 = vmatpush3.bf16.xpose.msra.mxu0 %v897_v35 }
 0x531   : >> { %v886_v36 = vpop.permute.xlu0 %885 }
 0x536   : >> { %1928 = vmatmul.mubr.msk.bf16.vlgmr.msra.gmra.mrb[0].mxu0 %vm741_vm4, %v886_v36 }
 0x609   : >> { %v933_v40 = vpop.f32.mrb[0].mxu0 }
 0x60a   : >> { %v944_v41 = vsel %vm943_vm9, -1e+30, %v933_v40  ;;  %v1929_v42 = vpop.f32.mrb[1].mxu0 }
 0x60b   : >> { %v936_v43 = vpop.f32.mrb[2].mxu0  ;;  %v945_v44 = vsel %vm741_vm4, %v944_v41, -inf }
 0x60c   : >> { %946 = vmax.xlane.f32.xlu1 %v945_v44  ;;  %v1930_v45 = vpop.f32.mrb[3].mxu0 }
 0x61d   : >> { %962 = vrot.lane.b32.xlu1 %v2222_v33, %s2510_s19 }
 0x699   : >> { %v947_v46 = vpop.xlane.xlu1 %946 }
 0x69a   : >> { %v948_v47 = vmax.f32 %v2463_v31, %v947_v46  }
 0x69c   : >> { %v949_v48 = vsub.f32 %v2463_v31, %v948_v47  ;;  %v952_v50 = vsub.f32 %v944_v41, %v948_v47  ;;  %v3076_v31 = vmov %v948_v47 }
 0x69d   : >> { %v963_v51 = vpop.permute.xlu1 %962 }
 0x69e   : >> { %v953_v52 = vmul.f32 1.442695, %v952_v50  ;;  %v969_v53 = vsel %vm819_vm6, %v963_v51, 0  ;;  %v950_v58 = vmul.f32 1.442695, %v949_v48 }
 0x69f   : >> { %1932 = vmatpush3.bf16.msra.mxu1 %v969_v53 }
 0x6a0   : >> { %2223 = vpow2.f32 %v953_v52 }
 0x6a1   : >> { %2225 = vpow2.f32 %v950_v58 }
 0x6aa   : >> { %v2224_v54 = vpop.eup %2223 }
 0x6ab   : >> { %v956_v55 = vsel %vm741_vm4, %v2224_v54, 0.0  ;;  %v961_v56 = vpack.c.bf16 %v2224_v54, %v2224_v54  ;;  %v2226_v59 = vpop.eup %2225 }
 0x6ac   : >> { %957 = vadd.xlane.f32.xlu0 %v956_v55  ;;  %v955_v60 = vmul.f32 %v2459_v30, %v2226_v59  ;;  %v960_v63 = vmul.f32 %v2455_v29, %v2226_v59 }
 0x6ad   : >> { %1934 = vmatmul.mubr.msk.bf16.vlgmr.msra.gmra.mrb[0].mxu1 %vm741_vm4, %v961_v56 }
 0x739   : >> { %v958_v61 = vpop.xlane.xlu0 %957 }
 0x73a   : >> { %v959_v62 = vadd.f32 %v958_v61, %v955_v60  }
 0x73c   : >> { %v3075_v30 = vmov %v959_v62  ;;  %2227 = vrcp.f32 (%p871_p11), %v959_v62 }
 0x746   : > { %v2228_v6 = vpop.eup (%p871_p11), %2227 }
 0x77d   : > { %874 = sbr.rel (!%p871_p11) target bundleno = 1206 (0x4b6), region = 171 }
 0x780   : >> { %v1005_v0 = vpop.f32.mrb[0].mxu1 }
 0x781   : >> { %v1011_v1 = vadd.f32 %v1005_v0, %v960_v63   ;;  %v1935_v3 = vpop.f32.mrb[1].mxu1 }
 0x782   : >> { %v1008_v4 = vpop.f32.mrb[2].mxu1 }
 0x783   : >> { %v1936_v5 = vpop.f32.mrb[3].mxu1  ;;  %v3074_v29 = vmov %v1011_v1  ;;  %v1013_v7 = vmul.f32 (%p871_p11), %v2228_v6, %v1011_v1 }
 0x785   : > { %v1857_v8 = vpack.c.bf16 %v1013_v7, %v1013_v7 }
 0x787   : > { %1018 = vrot.lane.b32.xlu0 %v1857_v8, %s2511_s9 }
 0x7f9   : > { %v1019_v9 = vpop.permute.xlu0 %1018 }
 0x7fa   : > { %1022 = vst.msk [vmem:[#allocation3] sm:$0xf] %vm1021_vm10, %v1019_v9 }
 0x7fb LB: >> { %v2512_v13 = vmov 0.0   ;;  %vm2513_vm11 = vmmov 0   ;;  %s1822_s22 = sshll.u32 %s2483_s27, 3  ;;  %s2514_s24 = smov 112   ;;  %s2483_s27 = sphi %s2843_s27, %s1026_s27   ;;  %v2479_v12 = vphi %v2841_v12, %v3079_v12   ;;  %v2475_v11 = vphi %v2839_v11, %v3078_v11   ;;  %v2471_v10 = vphi %v2837_v10, %v3077_v10  }
 0x7fc   : >> { %1937 = vmatprep.subr.bf16.mxu0 %v2512_v13  ;;  %1939 = vmatprep.mubr.msk.bf16.mxu0 %vm2513_vm11, %v2512_v13  ;;  %s1033_s14 = sshra.s32 %s1822_s22, 3  ;;  %v1095_v19 = vstv %s1822_s22  ;;  %s2515_s23 = smov 80  }
 0x7fd   : >> { %1943 = vmatprep.subr.bf16.mxu1 %v2512_v13  ;;  %1945 = vmatprep.mubr.msk.bf16.mxu1 %vm2513_vm11, %v2512_v13  ;;  %s1823_s21 = sshll.u32 %s1033_s14, 2  ;;  %v1096_v20 = vadd.s32 %v1095_v19, %v2787_v57  ;;  %s1026_s27 = sadd.s32 1, %s2483_s27  }
 0x7fe   : >> { %s1036_s25 = scalar_lea.vmem [#allocation2], %s1823_s21  ;;  %p1025_p0 = scmp.ge.s32.totalorder %s1026_s27, 1 }
 0x7ff   : >> { %v2229_v14 = vld [vmem:[%s1036_s25] ss:$0 sps:$4 sm:$0xff]   ;;  %vm1097_vm12 = vcmp.gt.s32.totalorder %v1096_v20, %v2760_v39  ;;  %s2516_s20 = smov (%p1025_p0), 16   ;;  %vm1175_vm13 = vcmask (%p1025_p0), 191616   ;;  %v2870_v54 = vmov (%p1025_p0), 0.0   ;;  %v2872_v55 = vmov (%p1025_p0), 0.0  }
 0x800   : >> { %1044 = vrot.lane.b32.xlu0 %v2229_v14, %s2514_s24  ;;  %v2874_v56 = vmov (%p1025_p0), -1e+30   ;;  %s2876_s19 = smov (%p1025_p0), 0  }
 0x804   : >> { %1039 = vrot.lane.b32.xlu0 %v2762_v49, %s2514_s24 }
 0x872   : >> { %v1045_v15 = vpop.permute.xlu0 %1044 }
 0x873   : >> { %v1051_v17 = vsel %vm741_vm4, %v1045_v15, 0 }
 0x874   : >> { %1938 = vmatpush3.bf16.xpose.msra.mxu0 %v1051_v17 }
 0x876   : >> { %v1040_v18 = vpop.permute.xlu0 %1039 }
 0x87b   : >> { %1940 = vmatmul.mubr.msk.bf16.vlgmr.msra.gmra.mrb[0].mxu0 %vm741_vm4, %v1040_v18 }
 0x94e   : >> { %v1087_v21 = vpop.f32.mrb[0].mxu0 }
 0x94f   : >> { %v1098_v22 = vsel %vm1097_vm12, -1e+30, %v1087_v21  ;;  %v1941_v23 = vpop.f32.mrb[1].mxu0 }
 0x950   : >> { %v1090_v24 = vpop.f32.mrb[2].mxu0  ;;  %v1099_v25 = vsel %vm741_vm4, %v1098_v22, -inf }
 0x951   : >> { %1100 = vmax.xlane.f32.xlu1 %v1099_v25  ;;  %v1942_v26 = vpop.f32.mrb[3].mxu0 }
 0x962   : >> { %1116 = vrot.lane.b32.xlu1 %v2229_v14, %s2515_s23 }
 0x9de   : >> { %v1101_v27 = vpop.xlane.xlu1 %1100 }
 0x9df   : >> { %v1102_v28 = vmax.f32 %v2479_v12, %v1101_v27  }
 0x9e1   : >> { %v1103_v29 = vsub.f32 %v2479_v12, %v1102_v28  ;;  %v1106_v30 = vsub.f32 %v1098_v22, %v1102_v28  ;;  %v3079_v12 = vmov %v1102_v28 }
 0x9e2   : >> { %v1117_v31 = vpop.permute.xlu1 %1116 }
 0x9e3   : >> { %v1107_v32 = vmul.f32 1.442695, %v1106_v30  ;;  %v1123_v33 = vsel %vm819_vm6, %v1117_v31, 0  ;;  %v1104_v37 = vmul.f32 1.442695, %v1103_v29 }
 0x9e4   : >> { %1944 = vmatpush3.bf16.msra.mxu1 %v1123_v33 }
 0x9e5   : >> { %2230 = vpow2.f32 %v1107_v32 }
 0x9e6   : >> { %2232 = vpow2.f32 %v1104_v37 }
 0x9ef   : >> { %v2231_v34 = vpop.eup %2230 }
 0x9f0   : >> { %v1110_v35 = vsel %vm741_vm4, %v2231_v34, 0.0  ;;  %v1115_v36 = vpack.c.bf16 %v2231_v34, %v2231_v34  ;;  %v2233_v38 = vpop.eup %2232 }
 0x9f1   : >> { %1111 = vadd.xlane.f32.xlu0 %v1110_v35  ;;  %v1109_v40 = vmul.f32 %v2475_v11, %v2233_v38  ;;  %v1114_v43 = vmul.f32 %v2471_v10, %v2233_v38 }
 0x9f2   : >> { %1946 = vmatmul.mubr.msk.bf16.vlgmr.msra.gmra.mrb[0].mxu1 %vm741_vm4, %v1115_v36 }
 0xa7e   : >> { %v1112_v41 = vpop.xlane.xlu0 %1111 }
 0xa7f   : >> { %v1113_v42 = vadd.f32 %v1112_v41, %v1109_v40  }
 0xa81   : >> { %v3078_v11 = vmov %v1113_v42  ;;  %2234 = vrcp.f32 (%p1025_p0), %v1113_v42 }
 0xa8b   : > { %v2235_v50 = vpop.eup (%p1025_p0), %2234 }
 0xac2   : > { %1028 = sbr.rel (!%p1025_p0) target bundleno = 2043 (0x7fb), region = 182 }
 0xac5   : >> { %v1159_v44 = vpop.f32.mrb[0].mxu1 }
 0xac6   : >> { %v1165_v45 = vadd.f32 %v1159_v44, %v1114_v43   ;;  %v1947_v46 = vpop.f32.mrb[1].mxu1 }
 0xac7   : >> { %v1162_v47 = vpop.f32.mrb[2].mxu1 }
 0xac8   : >> { %v1948_v48 = vpop.f32.mrb[3].mxu1  ;;  %v3077_v10 = vmov %v1165_v45  ;;  %v1167_v51 = vmul.f32 (%p1025_p0), %v2235_v50, %v1165_v45 }
 0xaca   : > { %v1858_v52 = vpack.c.bf16 %v1167_v51, %v1167_v51 }
 0xacc   : > { %1172 = vrot.lane.b32.xlu0 %v1858_v52, %s2516_s20 }
 0xb3e   : > { %v1173_v53 = vpop.permute.xlu0 %1172 }
 0xb3f   : > { %1176 = vst.msk [vmem:[#allocation3] sm:$0xf] %vm1175_vm13, %v1173_v53 }
 0xb40 LB: >> { %v2517_v58 = vmov 0.0   ;;  %vm2518_vm14 = vmmov 0   ;;  %s1828_s9 = sshll.u32 %s2499_s19, 3  ;;  %s2519_s21 = smov 104   ;;  %s2499_s19 = sphi %s2876_s19, %s1180_s19   ;;  %v2495_v56 = vphi %v2874_v56, %v3082_v56   ;;  %v2491_v55 = vphi %v2872_v55, %v3081_v55   ;;  %v2487_v54 = vphi %v2870_v54, %v3080_v54  }
 0xb41   : >> { %1949 = vmatprep.subr.bf16.mxu0 %v2517_v58  ;;  %1951 = vmatprep.mubr.msk.bf16.mxu0 %vm2518_vm14, %v2517_v58  ;;  %s1187_s27 = sshra.s32 %s1828_s9, 3  ;;  %v1249_v63 = vstv %s1828_s9  ;;  %s2520_s25 = smov 72  }
 0xb42   : >> { %1955 = vmatprep.subr.bf16.mxu1 %v2517_v58  ;;  %1957 = vmatprep.mubr.msk.bf16.mxu1 %vm2518_vm14, %v2517_v58  ;;  %s1829_s22 = sshll.u32 %s1187_s27, 2  ;;  %v1250_v0 = vadd.s32 %v1249_v63, %v2787_v57  ;;  %s1180_s19 = sadd.s32 1, %s2499_s19  }
 0xb43   : >> { %s1190_s14 = scalar_lea.vmem [#allocation2], %s1829_s22  ;;  %p1179_p7 = scmp.ge.s32.totalorder %s1180_s19, 1 }
 0xb44   : >> { %v2236_v59 = vld [vmem:[%s1190_s14] ss:$0 sps:$4 sm:$0xff]   ;;  %vm1251_vm15 = vcmp.gt.s32.totalorder %v1250_v0, %v2760_v39  ;;  %v2242_v31 = vld [vmem:[%s3042_s4 + $0x8] sm:$0xff] (%p1179_p7)   ;;  %s2521_s19 = smov (%p1179_p7), 24   ;;  %vm1329_vm2 = vcmask (%p1179_p7), 257216   ;;  %v2247_v63 = vld [vmem:[%s3046_s8 + $0x10] sm:$0xff] (%p1179_p7)  }
 0xb45   : >> { %1198 = vrot.lane.b32.xlu0 %v2236_v59, %s2519_s21  ;;  %v2241_v30 = vld [vmem:[%s3042_s4] sm:$0xff] (%p1179_p7)   ;;  %v2248_v0 = vld [vmem:[%s3046_s8 + $0x18] sm:$0xff] (%p1179_p7)   ;;  %s3083_s27 = sld [smem:[#allocation14_spill]] (%p1179_p7)  ;;  %s1854_s22 = sshll.u32 (%p1179_p7), %s2427_s16, 7 }
 0xb46   : > { %v1834_v34 = vld [vmem:[%s3043_s5] ss:$0 sm:$0xff] (%p1179_p7)  ;;  %s1633_s14 = sshll.u32 (%p1179_p7), %s2766_s17, 4  ;;  %s3084_s24 = sld [smem:[#allocation15_spill]] (%p1179_p7)  ;;  %s2989_s14 = int_to_ptr.vmem [resolvable:$true] %s1633_s14 }
 0xb47   : > { %v2243_v48 = vld [vmem:[%s3044_s6] sm:$0xff] (%p1179_p7)   ;;  %s1619_s16 = scalar_lea.sflag (%p1179_p7), [#allocation6], %s2709_s29  ;;  %s2289_s20 = scalar_lea.vmem (%p1179_p7), %s2989_s14, 128 }
 0xb48   : > { %v2245_v50 = vld [vmem:[%s3046_s8] sm:$0xff] (%p1179_p7)   ;;  %p2290_p13 = scmp.ne.s32.totalorder (%p1179_p7), %s2989_s14, %s2289_s20  ;;  %p3085_p3 = scmp.ne.s32.totalorder (%p1179_p7), %s3065_s26, 0 }
 0xb49   : >> { %1193 = vrot.lane.b32.xlu0 %v2762_v49, %s2519_s21  ;;  %v1839_v58 = vld [vmem:[%s3051_s13] ss:$0 sm:$0xff] (%p1179_p7)  ;;  %s2522_s9 = smov (%p1179_p7), [#allocation7]  }
 0xb4a   : > { %p2291_p6 = pnand (%p1179_p7), %p2290_p13, %p3085_p3 }
 0xb4c   : > { %s2987_s23 = scalar_lea.hbm (%p1179_p7), %s3084_s24, %s1854_s22  ;;  %p2292_p4 = pneg (%p1179_p7), %p2291_p6 }
 0xbb7   : >> { %v1199_v60 = vpop.permute.xlu0 %1198 }
 0xbb8   : >> { %v1205_v61 = vsel %vm741_vm4, %v1199_v60, 0 }
 0xbb9   : >> { %1950 = vmatpush3.bf16.xpose.msra.mxu0 %v1205_v61 }
 0xbba   : > { %1977 = vmatprep.subr.bf16.mxu0 (%p1179_p7), %v2502_v16 }
 0xbbb   : >> { %v1194_v62 = vpop.permute.xlu0 %1193 }
 0xbc0   : >> { %1952 = vmatmul.mubr.msk.bf16.vlgmr.msra.gmra.mrb[0].mxu0 %vm741_vm4, %v1194_v62  ;;  %v2246_v62 = vld [vmem:[%s3046_s8 + $0x8] sm:$0xff] (%p1179_p7)  }
 0xbc1   : > { %1993 = vmatprep.mubr.msk.bf16.mxu0 (%p1179_p7), %vm2503_vm1, %v2502_v16  ;;  %1978 = vmatpush3.bf16.msra.mxu0 (%p1179_p7), %v2245_v50 }
 0xbc2   : > { %1979 = vmatprep.subr.bf16.mxu0 (%p1179_p7), %v2502_v16 }
 0xbc5   : > { %1980 = vmatpush3.bf16.msra.mxu0 (%p1179_p7), %v2246_v62 }
 0xbc6   : > { %1981 = vmatprep.subr.bf16.mxu0 (%p1179_p7), %v2502_v16 }
 0xbc9   : > { %1982 = vmatpush3.bf16.msra.mxu0 (%p1179_p7), %v2247_v63 }
 0xbca   : > { %1983 = vmatprep.subr.bf16.mxu0 (%p1179_p7), %v2502_v16 }
 0xbcd   : > { %1984 = vmatpush3.bf16.msra.mxu0 (%p1179_p7), %v2248_v0 }
 0xbce   : > { %1985 = vmatprep.subr.bf16.mxu0 (%p1179_p7), %v2502_v16 }
 0xc93   : >> { %v1241_v1 = vpop.f32.mrb[0].mxu0 }
 0xc94   : >> { %v1252_v3 = vsel %vm1251_vm15, -1e+30, %v1241_v1  ;;  %v1953_v4 = vpop.f32.mrb[1].mxu0  ;;  %v2249_v1 = vld [vmem:[%s3046_s8 + $0x20] sm:$0xff] (%p1179_p7)  }
 0xc95   : >> { %v1244_v5 = vpop.f32.mrb[2].mxu0  ;;  %v1253_v6 = vsel %vm741_vm4, %v1252_v3, -inf  ;;  %1986 = vmatpush3.bf16.msra.mxu0 (%p1179_p7), %v2249_v1  ;;  %v2251_v4 = vld [vmem:[%s3046_s8 + $0x30] sm:$0xff] (%p1179_p7)  }
 0xc96   : >> { %1254 = vmax.xlane.f32.xlu1 %v1253_v6  ;;  %v1954_v7 = vpop.f32.mrb[3].mxu0  ;;  %1987 = vmatprep.subr.bf16.mxu0 (%p1179_p7), %v2502_v16  ;;  %v2252_v5 = vld [vmem:[%s3046_s8 + $0x38] sm:$0xff] (%p1179_p7)   ;;  %v1840_v6 = vld [vmem:[%s3045_s7] ss:$0 sm:$0xff] (%p1179_p7) }
 0xca7   : >> { %1270 = vrot.lane.b32.xlu1 %v2236_v59, %s2520_s25 }
 0xd23   : >> { %v1255_v8 = vpop.xlane.xlu1 %1254 }
 0xd24   : >> { %v1256_v9 = vmax.f32 %v2495_v56, %v1255_v8  }
 0xd26   : >> { %v1257_v10 = vsub.f32 %v2495_v56, %v1256_v9  ;;  %v1260_v11 = vsub.f32 %v1252_v3, %v1256_v9  ;;  %v3082_v56 = vmov %v1256_v9  ;;  %v2250_v3 = vld [vmem:[%s3046_s8 + $0x28] sm:$0xff] (%p1179_p7)  }
 0xd27   : >> { %v1271_v12 = vpop.permute.xlu1 %1270  ;;  %1988 = vmatpush3.bf16.msra.mxu0 (%p1179_p7), %v2250_v3 }
 0xd28   : >> { %v1261_v13 = vmul.f32 1.442695, %v1260_v11  ;;  %v1277_v14 = vsel %vm819_vm6, %v1271_v12, 0  ;;  %v1258_v19 = vmul.f32 1.442695, %v1257_v10  ;;  %1989 = vmatprep.subr.bf16.mxu0 (%p1179_p7), %v2502_v16 }
 0xd29   : >> { %1956 = vmatpush3.bf16.msra.mxu1 %v1277_v14 }
 0xd2a   : >> { %2237 = vpow2.f32 %v1261_v13  ;;  %1961 = vmatprep.subr.bf16.mxu1 (%p1179_p7), %v2502_v16 }
 0xd2b   : >> { %2239 = vpow2.f32 %v1258_v19  ;;  %1990 = vmatpush3.bf16.msra.mxu0 (%p1179_p7), %v2251_v4 }
 0xd2c   : > { %1991 = vmatprep.subr.bf16.mxu0 (%p1179_p7), %v2502_v16 }
 0xd2f   : > { %1992 = vmatpush3.bf16.msra.mxu0 (%p1179_p7), %v2252_v5 }
 0xd34   : >> { %v2238_v15 = vpop.eup %2237 }
 0xd35   : >> { %v1264_v17 = vsel %vm741_vm4, %v2238_v15, 0.0  ;;  %v1269_v18 = vpack.c.bf16 %v2238_v15, %v2238_v15  ;;  %v2240_v20 = vpop.eup %2239 }
 0xd36   : >> { %1265 = vadd.xlane.f32.xlu0 %v1264_v17  ;;  %v1263_v21 = vmul.f32 %v2491_v55, %v2240_v20  ;;  %v1268_v24 = vmul.f32 %v2487_v54, %v2240_v20 }
 0xd37   : >> { %1958 = vmatmul.mubr.msk.bf16.vlgmr.msra.gmra.mrb[0].mxu1 %vm741_vm4, %v1269_v18 }
 0xd38   : > { %1965 = vmatprep.mubr.msk.bf16.mxu1 (%p1179_p7), %vm2503_vm1, %v2502_v16  ;;  %1962 = vmatpush3.bf16.msra.mxu1 (%p1179_p7), %v2241_v30 }
 0xd39   : > { %1963 = vmatprep.subr.bf16.mxu1 (%p1179_p7), %v2502_v16 }
 0xd3c   : > { %1964 = vmatpush3.bf16.msra.mxu1 (%p1179_p7), %v2242_v31 }
 0xd3d   : > { %1969 = vmatprep.subr.bf16.mxu1 (%p1179_p7), %v2502_v16 }
 0xdc3   : >> { %v1266_v22 = vpop.xlane.xlu0 %1265 }
 0xdc4   : >> { %v1267_v23 = vadd.f32 %v1266_v22, %v1263_v21   ;;  %v1844_v22 = vld [vmem:[%s3083_s27] ss:$0 sm:$0xff] (%p1179_p7) }
 0xdc6   : >> { %v3081_v55 = vmov %v1267_v23  ;;  %2253 = vrcp.f32 (%p1179_p7), %v1267_v23 }
 0xdc7   : > { %v1838_v55 = vld [vmem:[%s3050_s12] ss:$0 sm:$0xff] (%p1179_p7) }
 0xdd0   : > { %v2254_v39 = vpop.eup (%p1179_p7), %2253 }
 0xe07   : > { %1182 = sbr.rel (!%p1179_p7) target bundleno = 2880 (0xb40), region = 193 }
 0xe0a   : >> { %v1313_v25 = vpop.f32.mrb[0].mxu1 }
 0xe0b   : >> { %v1319_v26 = vadd.f32 %v1313_v25, %v1268_v24   ;;  %v1959_v27 = vpop.f32.mrb[1].mxu1 }
 0xe0c   : >> { %v1316_v28 = vpop.f32.mrb[2].mxu1 }
 0xe0d   : >> { %v1960_v29 = vpop.f32.mrb[3].mxu1  ;;  %v3080_v54 = vmov %v1319_v26  ;;  %v1321_v49 = vmul.f32 (%p1179_p7), %v2254_v39, %v1319_v26 }
 0xe0f   : > { %v1859_v57 = vpack.c.bf16 %v1321_v49, %v1321_v49 }
 0xe11   : > { %1326 = vrot.lane.b32.xlu0 %v1859_v57, %s2521_s19  ;;  %s2293_s19 = sshll.u32 %s2522_s9, 4  ;;  %s2294_s19 = int_to_ptr.vmem [resolvable:$false] %s2293_s19 }
 0xe12   : > { %s2295_s27 = scalar_lea.vmem %s2294_s19, 256  ;;  %p2296_p10 = scmp.lt.s32.totalorder %s2989_s14, %s2294_s19 }
 0xe13   : > { %p2297_p12 = scmp.lt.s32.totalorder %s2295_s27, %s2289_s20 }
 0xe15   : > { %p2298_p1 = por %p2297_p12, %p2296_p10 }
 0xe17   : > { %p2299_p2 = pnand %p2298_p1, %p2292_p4 }
 0xe83   : > { %v1327_v32 = vpop.permute.xlu0 %1326 }
 0xe84   : > { %1330 = vst.msk [vmem:[#allocation3] sm:$0xf] %vm1329_vm2, %v1327_v32 }
 0xe8b   : > { %v1331_v33 = vld [vmem:[#allocation3] sm:$0xf] }
 0xe8c   : > { %1966 = vmatmul.mubr.msk.bf16.vlgmr.msra.gmra.mrb[0].mxu1 %vm535_vm0, %v1331_v33 }
 0xe8d   : > { %1973 = vmatprep.mubr.msk.bf16.mxu1 %vm2503_vm1, %v2502_v16  ;;  %1970 = vmatpush3.bf16.msra.mxu1 %v2243_v48 }
 0xe8e   : > { %1971 = vmatprep.subr.bf16.mxu1 %v2502_v16 }
 0xf5f   : > { %v1392_v35 = vpop.f32.mrb[0].mxu1 }
 0xf60   : > { %v1393_v36 = vadd.f32 %v1834_v34, %v1392_v35  ;;  %v1967_v37 = vpop.f32.mrb[1].mxu1 }
 0xf61   : > { %v1395_v38 = vpop.f32.mrb[2].mxu1 }
 0xf62   : > { %v2924_v40 = vadd.f32 %v1393_v36, %v2722_v2  ;;  %v1968_v41 = vpop.f32.mrb[3].mxu1  ;;  %v2244_v2 = vld [vmem:[%s3044_s6 + $0x8] sm:$0xff]  }
 0xf63   : > { %1972 = vmatpush3.bf16.msra.mxu1 %v2244_v2 }
 0xf64   : > { %v1401_v42 = vsel %vm535_vm0, %v2924_v40, 0.0 }
 0xf65   : > { %1402 = vadd.xlane.f32.xlu0 %v1401_v42 }
 0xff2   : > { %v1403_v43 = vpop.xlane.xlu0 %1402 }
 0xff3   : > { %v1404_v44 = vmul.f32 0.03125, %v1403_v43 }
 0xff5   : > { %v1405_v45 = vsub.f32 %v2924_v40, %v1404_v44 }
 0xff7   : > { %v1406_v46 = vmul.f32 %v1405_v45, %v1405_v45 }
 0xff9   : > { %v1407_v47 = vsel %vm535_vm0, %v1406_v46, 0.0 }
 0xffa   : > { %1408 = vadd.xlane.f32.xlu1 %v1407_v47 }
0x1087   : > { %v1409_v51 = vpop.xlane.xlu1 %1408 }
0x1088   : > { %v1410_v52 = vmul.f32 0.03125, %v1409_v51 }
0x108a   : > { %v1411_v53 = vadd.f32 1e-05, %v1410_v52 }
0x108c   : > { %2255 = vrsqrt.f32 %v1411_v53 }
0x1096   : > { %v2256_v54 = vpop.eup %2255 }
0x1097   : > { %v1413_v56 = vmul.f32 %v2256_v54, %v1405_v45 }
0x1099   : > { %v1420_v59 = vmul.f32 %v1838_v55, %v1413_v56 }
0x109b   : > { %v1427_v60 = vadd.f32 %v1839_v58, %v1420_v59 }
0x109d   : > { %v1428_v61 = vpack.c.bf16 %v1427_v60, %v1427_v60 }
0x109f   : > { %1974 = vmatmul.mubr.msk.bf16.vlgmr.msra.gmra.mrb[4].mxu1 %vm535_vm0, %v1428_v61 }
0x1172   : > { %v1489_v7 = vpop.f32.mrb[4].mxu1 }
0x1173   : > { %v1490_v8 = vadd.f32 %v1840_v6, %v1489_v7  ;;  %v1975_v9 = vpop.f32.mrb[5].mxu1 }
0x1174   : > { %v1492_v10 = vpop.f32.mrb[6].mxu1 }
0x1175   : > { %v1496_v11 = vmul.f32 %v1490_v8, %v1490_v8  ;;  %v1976_v12 = vpop.f32.mrb[7].mxu1  ;;  %v1495_v16 = vmul.f32 0.5, %v1490_v8 }
0x1177   : > { %v1497_v13 = vmul.f32 %v1496_v11, %v1490_v8 }
0x1179   : > { %v1498_v14 = vmul.f32 0.044715, %v1497_v13 }
0x117b   : > { %v1499_v15 = vadd.f32 %v1498_v14, %v1490_v8 }
0x117d   : > { %v1500_v17 = vmul.f32 0.7978845, %v1499_v15 }
0x117f   : > { %2257 = vtanh.f32 %v1500_v17 }
0x1189   : > { %v2258_v18 = vpop.eup %2257 }
0x118a   : > { %v1502_v19 = vadd.f32 1.0, %v2258_v18 }
0x118c   : > { %v1503_v20 = vmul.f32 %v1502_v19, %v1495_v16 }
0x118e   : > { %v1504_v21 = vpack.c.bf16 %v1503_v20, %v1503_v20 }
0x1190   : > { %1994 = vmatmul.mubr.bf16.vlgmr.msra.gmra.mrb[0].mxu0 %v1504_v21 }
0x1263   : > { %v1610_v23 = vpop.f32.mrb[0].mxu0 }
0x1264   : > { %v1611_v24 = vadd.f32 %v1844_v22, %v1610_v23  ;;  %v1995_v25 = vpop.f32.mrb[1].mxu0 }
0x1265   : > { %v1613_v26 = vpop.f32.mrb[2].mxu0 }
0x1266   : > { %v1616_v27 = vadd.f32 %v1611_v24, %v2924_v40  ;;  %v1996_v28 = vpop.f32.mrb[3].mxu0 }
0x1268   : > { %1617 = vst.msk [vmem:[%s2766_s17] sm:$0xff] %vm535_vm0, %v1616_v27 }
0x1269   : > { %2302 = shalt.err (!%p2299_p2)
}
0x126a   : > { %s2303_s29 = scalar_lea.hbm %s2987_s23, 128  ;;  %s2307_s21 = scalar_lea.hbm %s3084_s24, 256 }
0x126b   : > { %p2304_p5 = scmp.ne.s32.totalorder %s2987_s23, %s2303_s29  ;;  %p2308_p11 = scmp.lt.u32.totalorder %s2987_s23, %s3084_s24 }
0x126c   : > { %p2309_p0 = scmp.lt.u32.totalorder %s2307_s21, %s2303_s29  ;;  %p2311_p13 = scmp.lt.u32.totalorder %s2303_s29, %s2987_s23 }
0x126d   : > { %p2305_p9 = pnand %p2304_p5, %p3085_p3 }
0x126e   : > { %p2310_p7 = por %p2309_p0, %p2308_p11 }
0x126f   : > { %p2306_p8 = pneg %p2305_p9 }
0x1270   : > { %p2312_p6 = por %p2311_p13, %p2310_p7 }
0x1272   : > { %p2313_p4 = pnand %p2312_p6, %p2306_p8 }
0x1274   : > { %2316 = shalt.err (!%p2313_p4)
}
0x1275   : > { %1999 = dma.vmem_to_hbm [thread:$0]  (%p3085_p3), %s2989_s14, 128, %s2987_s23, %s1619_s16  }
0x1276 PF: > { %s3086_s20 = sld [smem:[#allocation10_spill]]  ;;  %p3087_p10 = scmp.ne.s32.totalorder %s3067_s28, 0 }
0x1277   : > { %p3088_p12 = scmp.ge.s32.totalorder %s2435_s18, 2 }
0x1279   : > { %p2006_p1 = pnand %p3088_p12, %p3087_p10 }
0x127c   : > { %s1645_s19 = sand.u32 1, %s3086_s20  }
0x127d   : > { %s1646_s27 = scalar_lea.sflag [#allocation6], %s1645_s19 }
0x127e   : > { %2410 = dma.done.wait (!%p2006_p1), %s1646_s27, 128  }
0x127f   : > { %2412 = vsyncadd (!%p2006_p1), %s1646_s27, 4294967168  ;;  %s30_s18 = sadd.s32 1, %s2435_s18   ;;  %s3089_s26 = sld [smem:[#allocation13_spill]] }
0x1280   : > { %p27_p2 = scmp.ge.s32.totalorder %s30_s18, 4   ;;  %s3090_s16 = sld [smem:[#allocation11_spill]] }
0x1281   : > { %s3091_s17 = sld [smem:[#allocation12_spill]]  ;;  %s3092_s29 = smov %s2419_s30 }
0x1282   : > { %s3093_s30 = smov %s2423_s15  ;;  %29 = sbr.rel (!%p27_p2) target bundleno = 9 (0x9), region = 204 }
0x1285   : > { %s3094_s15 = smov %s3089_s26 }
0x1289   :  { %1651 = vsyncpa [#allocation5], 1 }
0x128a   :  { %1653 = vsyncpa [#allocation5 + $0x1], 1 }
0x128b   :  { %1654 = vsyncpa [#allocation6], 1 }
0x128c   :  { %1656 = vsyncpa [#allocation6 + $0x1], 1 }

// kernel: tpu_custom_call.1
= control target key start
LH: loop header
LB: loop body
LE: loop exit
PB: predicated region body
PF: predicated region fallthrough
CT: control target
= control target key end

     0   :  { %s3038_s0 = inlined_call_operand.hbm [shape: bf16[2,8,32], index: 0, kind: input, shape index: {}]   ;;  %s3039_s1 = inlined_call_operand.vmem [shape: f32[2,8,32], index: 1, kind: input, shape index: {}]   ;;  %s3040_s2 = inlined_call_operand.vmem [shape: bf16[32,32], index: 2, kind: input, shape index: {}]   ;;  %s3041_s3 = inlined_call_operand.vmem [shape: bf16[32,64], index: 3, kind: input, shape index: {}]   ;;  %s3042_s4 = inlined_call_operand.vmem [shape: bf16[32,32], index: 4, kind: input, shape index: {}]   ;;  %s3043_s5 = inlined_call_operand.vmem [shape: f32[1,32], index: 5, kind: input, shape index: {}]   ;;  %s3044_s6 = inlined_call_operand.vmem [shape: bf16[32,128], index: 6, kind: input, shape index: {}]   ;;  %s3045_s7 = inlined_call_operand.vmem [shape: f32[1,128], index: 7, kind: input, shape index: {}]   ;;  %s3046_s8 = inlined_call_operand.vmem [shape: bf16[128,32], index: 8, kind: input, shape index: {}]   ;;  %s3047_s9 = inlined_call_operand.vmem [shape: f32[1,32], index: 9, kind: input, shape index: {}]   ;;  %s3048_s10 = inlined_call_operand.vmem [shape: f32[1,32], index: 10, kind: input, shape index: {}]   ;;  %s3049_s11 = inlined_call_operand.vmem [shape: f32[1,32], index: 11, kind: input, shape index: {}]   ;;  %s3050_s12 = inlined_call_operand.vmem [shape: f32[1,32], index: 12, kind: input, shape index: {}]   ;;  %s3051_s13 = inlined_call_operand.vmem [shape: f32[1,32], index: 13, kind: input, shape index: {}]   ;;  %s3052_s14 = inlined_call_operand.hbm [shape: f32[2,8,32], index: 14, kind: output, shape index: {}]  }
   0x1   :  { %3058 = sst [smem:[#allocation14_spill]] %s3047_s9 }
   0x2   :  { %3059 = sst [smem:[#allocation15_spill]] %s3052_s14 }
   0x3   :  { %19 = vsyncpa [#allocation5], 0 }
   0x4   :  { %21 = vsyncpa [#allocation5 + $0x1], 0 }
   0x5   :  { %22 = vsyncpa [#allocation6], 0 }
   0x6   :  { %24 = vsyncpa [#allocation6 + $0x1], 0  ;;  %s2598_s29 = smov 0   ;;  %s2600_s30 = smov 0  }
   0x7   :  { %s2602_s15 = smov 0   ;;  %s2604_s16 = smov 0  }
   0x8   :  { %s2606_s17 = smov 0   ;;  %s2608_s18 = smov 0  }
   0x9 LB: > { %3060 = sst [smem:[#allocation10_spill]] %s2415_s29  ;;  %s1791_s19 = sadd.s32 4294967295, %s2435_s18   ;;  %s2435_s18 = sphi %s2608_s18, %s30_s18   ;;  %s2431_s17 = sphi %s2606_s17, %s3091_s17   ;;  %s2427_s16 = sphi %s2604_s16, %s3090_s16   ;;  %s2423_s15 = sphi %s2602_s15, %s3094_s15   ;;  %s2419_s30 = sphi %s2600_s30, %s3093_s30   ;;  %s2415_s29 = sphi %s2598_s29, %s3092_s29  }
   0xa   : > { %3061 = sst [smem:[#allocation11_spill]] %s2431_s17  ;;  %s1792_s20 = sadd.s32 4294967294, %s2435_s18  }
   0xb   : > { %s42_s21 = sadd.s32 1, %s2431_s17  ;;  %s49_s22 = sadd.s32 1, %s2423_s15 }
   0xc   : > { %p44_p0 = scmp.ge.s32.totalorder %s42_s21, 2  ;;  %p56_p1 = scmp.ne.s32.totalorder %s2423_s15, %s2419_s30 }
   0xd   : > { %p57_p2 = scmp.eq.s32.totalorder %s2435_s18, 0  ;;  %p62_p3 = scmp.ne.s32.totalorder %s2419_s30, %s2415_s29 }
   0xe   : > { %s3096_s21 = smov (%p44_p0, %s42_s21), 0  ;;  %p63_p5 = scmp.eq.s32.totalorder %s1791_s19, 0 }
   0xf   : > { %3062 = sst [smem:[#allocation12_spill]] %s3096_s21  ;;  %p2639_p4 = por %p57_p2, %p56_p1 }
  0x10   : > { %s46_s24 = ssub.s32 %s2431_s17, %s3096_s21  ;;  %p368_p6 = scmp.eq.s32.totalorder %s1791_s19, 1 }
  0x11   : > { %p47_p7 = scmp.eq.s32.totalorder %s46_s24, 0  ;;  %p2645_p8 = por %p63_p5, %p62_p3 }
  0x12   : > { %p2649_p9 = por %p368_p6, %p56_p1  ;;  %p374_p10 = scmp.eq.s32.totalorder %s1792_s20, 1 }
  0x13   : > { %s2654_s27 = scalar_select %p47_p7, %s2423_s15, %s49_s22  }
  0x14   : > { %s3065_s26 = scalar_select %p2649_p9, 1, 0 }
  0x15   : > { %3066 = sst [smem:[#allocation13_spill]] %s2654_s27  ;;  %p2656_p11 = por %p374_p10, %p62_p3 }
  0x16   : > { %p2009_p13 = scmp.lt.s32.totalorder %s2435_s18, 2  ;;  %s430_s19 = sand.u32 1, %s2423_s15  }
  0x17   : > { %s3067_s28 = scalar_select %p2656_p11, 1, 0 }
  0x18   : > { %s1795_s24 = sshll.u32 %s430_s19, 2  ;;  %s1796_s21 = sshll.u32 %s2431_s17, 6 }
  0x19   : > { %s2667_s9 = scalar_lea.hbm %s3038_s0, %s1796_s21  ;;  %s434_s20 = scalar_lea.vmem [#allocation4], %s1795_s24 }
  0x1a   : > { %s441_s22 = sshll.u32 %s434_s20, 4  ;;  %p2673_p0 = pnand %p2009_p13, %p2639_p4  ;;  %s2669_s22 = int_to_ptr.vmem [resolvable:$true] %s441_s22 }
  0x1b   : > { %s431_s14 = scalar_lea.sflag [#allocation5], %s430_s19  ;;  %s2259_s29 = scalar_lea.hbm %s2667_s9, 64 }
  0x1c   : > { %p2260_p3 = scmp.ne.s32.totalorder %s2667_s9, %s2259_s29  ;;  %p2261_p5 = pneg %p2673_p0 }
  0x1d   : > { %s2264_s23 = scalar_lea.hbm %s3038_s0, 128  ;;  %p2265_p4 = scmp.lt.u32.totalorder %s2667_s9, %s3038_s0 }
  0x1e   : > { %p2262_p6 = pnand %p2261_p5, %p2260_p3  ;;  %p2266_p10 = scmp.lt.u32.totalorder %s2264_s23, %s2259_s29 }
  0x1f   : > { %p2268_p12 = scmp.lt.u32.totalorder %s2259_s29, %s2667_s9 }
  0x20   : > { %p2263_p7 = pneg %p2262_p6  ;;  %p2267_p13 = por %p2266_p10, %p2265_p4 }
  0x22   : > { %p2269_p1 = por %p2268_p12, %p2267_p13 }
  0x24   : > { %p2270_p2 = pnand %p2269_p1, %p2263_p7 }
  0x26   : > { %2273 = shalt.err (!%p2270_p2)
}
  0x27   : > { %s2274_s19 = scalar_lea.vmem %s2669_s22, 64  ;;  %s2501_s21 = smov [#allocation4]  }
  0x28   : > { %p2275_p3 = scmp.ne.s32.totalorder %s2669_s22, %s2274_s19  ;;  %s2279_s24 = sshll.u32 %s2501_s21, 4  ;;  %s2280_s24 = int_to_ptr.vmem [resolvable:$false] %s2279_s24 }
  0x29   : > { %s2281_s17 = scalar_lea.vmem %s2280_s24, 128  ;;  %p2282_p9 = scmp.lt.s32.totalorder %s2669_s22, %s2280_s24 }
  0x2a   : > { %p2277_p6 = pnand %p2275_p3, %p2261_p5  ;;  %p2283_p4 = scmp.lt.s32.totalorder %s2281_s17, %s2274_s19 }
  0x2c   : > { %p2278_p11 = pneg %p2277_p6  ;;  %p2284_p10 = por %p2283_p4, %p2282_p9 }
  0x2e   : > { %p2285_p12 = pnand %p2284_p10, %p2278_p11 }
  0x30   : > { %2288 = shalt.err (!%p2285_p12)
}
  0x31   : > { %2004 = dma.hbm_to_vmem [thread:$0]  (!%p2673_p0), %s2667_s9, 64, %s2669_s22, %s431_s14  }
  0x32   : > { %p3069_p1 = scmp.lt.s32.totalorder %s2435_s18, 3  ;;  %p3070_p2 = scmp.ge.s32.totalorder %s2435_s18, 1 }
  0x34   : > { %p457_p5 = pnand %p3070_p2, %p3069_p1 }
  0x35   : > { %s2709_s29 = sand.u32 (!%p457_p5), 1, %s2419_s30  }
  0x36   : > { %460 = sbr.rel (%p457_p5) target bundleno = 4726 (0x1276), region = 76  ;;  %s1798_s23 = sshll.u32 (!%p457_p5), %s2709_s29, 2 }
  0x37   : > { %s463_s20 = scalar_lea.sflag (!%p457_p5), [#allocation5], %s2709_s29  ;;  %s466_s19 = scalar_lea.vmem (!%p457_p5), [#allocation4], %s1798_s23 }
  0x3d   : > { %2406 = dma.done.wait (%p2645_p8), %s463_s20, 64  }
  0x3e   : > { %2408 = vsyncadd (%p2645_p8), %s463_s20, 4294967232  ;;  %p518_p9 = scmp.lt.s32.totalorder %s2427_s16, 1  ;;  %v531_v0 = vld [vmem:[%s466_s19] sm:$0xf]  ;;  %vm535_vm0 = vcmask 261120   ;;  %v2207_v15 = vld [vmem:[%s3041_s3] sm:$0xff]   ;;  %v721_v38 = vlaneseq }
  0x3f   : > { %v532_v1 = vunpack.c.l.bf16 %v531_v0  ;;  %v2502_v16 = vmov 0.0   ;;  %v2208_v17 = vld [vmem:[%s3041_s3 + $0x8] sm:$0xff]   ;;  %v2209_v18 = vld [vmem:[%s3040_s2] sm:$0xff]   ;;  %vm2503_vm1 = vmmov 0   ;;  %vm625_vm2 = vcmask 519168   ;;  %s2774_s23 = smov 0  }
  0x40   : > { %s519_s9 = scalar_select %p518_p9, %s2427_s16, 1  ;;  %1897 = vmatprep.subr.bf16.mxu0 %v2502_v16  ;;  %1905 = vmatprep.subr.bf16.mxu1 %v2502_v16  ;;  %v2210_v19 = vld [vmem:[%s3040_s2 + $0x8] sm:$0xff]   ;;  %v1801_v27 = vld [vmem:[%s3048_s10] ss:$0 sm:$0xff]  ;;  %v2760_v39 = vshrl.u32 %v721_v38, 7  ;;  %v2768_v51 = vmov 0.0  }
  0x41   : > { %v536_v3 = vsel %vm535_vm0, %v532_v1, 0.0  ;;  %1898 = vmatpush3.bf16.msra.mxu0 %v2207_v15  ;;  %1906 = vmatpush3.bf16.msra.mxu1 %v2209_v18  ;;  %v1802_v29 = vld [vmem:[%s3049_s11] ss:$0 sm:$0xff]  ;;  %v2770_v52 = vmov 0.0   ;;  %v2772_v53 = vmov -1e+30  }
  0x42   : > { %s1800_s27 = sshll.u32 %s519_s9, 3  ;;  %537 = vadd.xlane.f32.xlu0 %v536_v3  ;;  %1899 = vmatprep.subr.bf16.mxu0 %v2502_v16  ;;  %s1799_s9 = sshll.u32 %s2709_s29, 3 }
  0x43   : > { %s524_s21 = scalar_lea.vmem %s3039_s1, %s1800_s27  ;;  %1901 = vmatprep.mubr.msk.bf16.mxu0 %vm2503_vm1, %v2502_v16  ;;  %1907 = vmatprep.subr.bf16.mxu1 %v2502_v16  ;;  %s2766_s17 = scalar_lea.vmem [#allocation7], %s1799_s9 }
  0x44   : > { %v2722_v2 = vld [vmem:[%s524_s21] sm:$0xff]  ;;  %1909 = vmatprep.mubr.msk.bf16.mxu1 %vm2503_vm1, %v2502_v16 }
  0x45   : > { %v631_v4 = vsel %vm535_vm0, %v2722_v2, 0.0  ;;  %1900 = vmatpush3.bf16.msra.mxu0 %v2208_v17  ;;  %1908 = vmatpush3.bf16.msra.mxu1 %v2210_v19 }
  0x46   : > { %632 = vadd.xlane.f32.xlu0 %v631_v4 }
  0xcf   : > { %v538_v5 = vpop.xlane.xlu0 %537 }
  0xd0   : > { %v540_v6 = vmul.f32 0.03125, %v538_v5 }
  0xd2   : > { %v541_v7 = vsub.f32 %v532_v1, %v540_v6 }
  0xd3   : > { %v633_v8 = vpop.xlane.xlu0 %632 }
  0xd4   : > { %v635_v9 = vmul.f32 0.03125, %v633_v8  ;;  %v542_v10 = vmul.f32 %v541_v7, %v541_v7 }
  0xd6   : > { %v636_v11 = vsub.f32 %v2722_v2, %v635_v9  ;;  %v543_v12 = vsel %vm535_vm0, %v542_v10, 0.0 }
  0xd7   : > { %544 = vadd.xlane.f32.xlu1 %v543_v12 }
  0xd8   : > { %v637_v13 = vmul.f32 %v636_v11, %v636_v11 }
  0xda   : > { %v638_v14 = vsel %vm535_vm0, %v637_v13, 0.0 }
  0xdb   : > { %639 = vadd.xlane.f32.xlu1 %v638_v14 }
 0x164   : > { %v545_v20 = vpop.xlane.xlu1 %544 }
 0x165   : > { %v546_v21 = vmul.f32 0.03125, %v545_v20 }
 0x167   : > { %v547_v22 = vadd.f32 1e-05, %v546_v21 }
 0x168   : > { %v640_v23 = vpop.xlane.xlu1 %639 }
 0x169   : > { %2211 = vrsqrt.f32 %v547_v22  ;;  %v641_v24 = vmul.f32 0.03125, %v640_v23 }
 0x16b   : > { %v642_v25 = vadd.f32 1e-05, %v641_v24 }
 0x16d   : > { %2213 = vrsqrt.f32 %v642_v25 }
 0x173   : > { %v2212_v26 = vpop.eup %2211 }
 0x174   : > { %v549_v28 = vmul.f32 %v2212_v26, %v541_v7 }
 0x176   : > { %v556_v30 = vmul.f32 %v1801_v27, %v549_v28 }
 0x177   : > { %v2214_v31 = vpop.eup %2213 }
 0x178   : > { %v644_v32 = vmul.f32 %v2214_v31, %v636_v11  ;;  %v563_v33 = vadd.f32 %v1802_v29, %v556_v30 }
 0x17a   : > { %v564_v34 = vpack.c.bf16 %v563_v33, %v563_v33  ;;  %v651_v35 = vmul.f32 %v1801_v27, %v644_v32 }
 0x17c   : > { %1902 = vmatmul.mubr.msk.bf16.vlgmr.msra.gmra.mrb[0].mxu0 %vm535_vm0, %v564_v34  ;;  %v658_v36 = vadd.f32 %v1802_v29, %v651_v35 }
 0x17e   : > { %v659_v37 = vpack.c.bf16 %v658_v36, %v658_v36 }
 0x180   : > { %1910 = vmatmul.mubr.msk.bf16.vlgmr.msra.gmra.mrb[0].mxu1 %vm535_vm0, %v659_v37 }
 0x24f   : > { %v618_v40 = vpop.f32.mrb[0].mxu0 }
 0x250   : > { %v624_v41 = vpack.c.bf16 %v618_v40, %v618_v40  ;;  %v1903_v42 = vpop.f32.mrb[1].mxu0 }
 0x251   : > { %v621_v43 = vpop.f32.mrb[2].mxu0 }
 0x252   : > { %626 = vst.msk [vmem:[#allocation2] sm:$0xf] %vm625_vm2, %v624_v41  ;;  %v1904_v44 = vpop.f32.mrb[3].mxu0 }
 0x253   : > { %v713_v45 = vpop.f32.mrb[0].mxu1 }
 0x254   : > { %v719_v46 = vmul.f32 0.35355338, %v713_v45  ;;  %v1911_v47 = vpop.f32.mrb[1].mxu1 }
 0x255   : > { %v716_v48 = vpop.f32.mrb[2].mxu1 }
 0x256   : > { %v2762_v49 = vpack.c.bf16 %v719_v46, %v719_v46  ;;  %v1912_v50 = vpop.f32.mrb[3].mxu1 }
 0x257 LB: >> { %v2504_v54 = vmov 0.0   ;;  %vm2505_vm3 = vmmov 0   ;;  %s1811_s20 = sshll.u32 %s2451_s23, 3  ;;  %vm741_vm4 = vcmask 64512   ;;  %v2787_v57 = vand.u32 127, %v721_v38  ;;  %s2506_s22 = smov 96   ;;  %s2451_s23 = sphi %s2774_s23, %s729_s23   ;;  %v2447_v53 = vphi %v2772_v53, %v3073_v53   ;;  %v2443_v52 = vphi %v2770_v52, %v3072_v52   ;;  %v2439_v51 = vphi %v2768_v51, %v3071_v51  }
 0x258   : >> { %1913 = vmatprep.subr.bf16.mxu0 %v2504_v54  ;;  %1915 = vmatprep.mubr.msk.bf16.mxu0 %vm2505_vm3, %v2504_v54  ;;  %s736_s19 = sshra.s32 %s1811_s20, 3  ;;  %v790_v58 = vstv %s1811_s20  ;;  %vm819_vm6 = vcmask 1043456   ;;  %s729_s23 = sadd.s32 1, %s2451_s23  }
 0x259   : >> { %1919 = vmatprep.subr.bf16.mxu1 %v2504_v54  ;;  %1921 = vmatprep.mubr.msk.bf16.mxu1 %vm2505_vm3, %v2504_v54  ;;  %s1812_s9 = sshll.u32 %s736_s19, 2  ;;  %v791_v59 = vadd.s32 %v790_v58, %v2787_v57  ;;  %p728_p8 = scmp.ge.s32.totalorder %s729_s23, 1 }
 0x25a   : >> { %s739_s27 = scalar_lea.vmem [#allocation2], %s1812_s9  ;;  %vm867_vm7 = vcmask (%p728_p8), 60416   ;;  %v2804_v29 = vmov (%p728_p8), 0.0   ;;  %v2806_v30 = vmov (%p728_p8), 0.0   ;;  %v2808_v31 = vmov (%p728_p8), -1e+30  }
 0x25b   : >> { %v740_v55 = vld [vmem:[%s739_s27] sm:$0xf]  ;;  %vm792_vm5 = vcmp.gt.s32.totalorder %v791_v59, %v2760_v39  ;;  %s2810_s14 = smov (%p728_p8), 0  }
 0x25c   : >> { %v746_v56 = vsel %vm741_vm4, %v740_v55, 0  ;;  %v1814_v3 = vcombine.low %v740_v55, %v740_v55 }
 0x25d   : >> { %1914 = vmatpush3.bf16.xpose.msra.mxu0 %v746_v56 }
 0x264   : >> { %1916 = vmatmul.mubr.msk.bf16.vlgmr.msra.gmra.mrb[0].mxu0 %vm741_vm4, %v2762_v49 }
 0x337   : >> { %v782_v60 = vpop.f32.mrb[0].mxu0 }
 0x338   : >> { %v793_v61 = vsel %vm792_vm5, -1e+30, %v782_v60  ;;  %v1917_v62 = vpop.f32.mrb[1].mxu0 }
 0x339   : >> { %v785_v63 = vpop.f32.mrb[2].mxu0  ;;  %v794_v0 = vsel %vm741_vm4, %v793_v61, -inf }
 0x33a   : >> { %795 = vmax.xlane.f32.xlu0 %v794_v0  ;;  %v1918_v1 = vpop.f32.mrb[3].mxu0 }
 0x350   : >> { %814 = vrot.lane.b32.xlu0 %v1814_v3, %s2506_s22 }
 0x3c7   : >> { %v796_v4 = vpop.xlane.xlu0 %795 }
 0x3c8   : >> { %v797_v5 = vmax.f32 %v2447_v53, %v796_v4  }
 0x3ca   : >> { %v798_v6 = vsub.f32 %v2447_v53, %v797_v5  ;;  %v801_v7 = vsub.f32 %v793_v61, %v797_v5  ;;  %v3073_v53 = vmov %v797_v5 }
 0x3cb   : >> { %v815_v8 = vpop.permute.xlu0 %814 }
 0x3cc   : >> { %v802_v9 = vmul.f32 1.442695, %v801_v7  ;;  %v821_v10 = vsel %vm819_vm6, %v815_v8, 0  ;;  %v799_v14 = vmul.f32 1.442695, %v798_v6 }
 0x3cd   : >> { %1920 = vmatpush3.bf16.msra.mxu1 %v821_v10 }
 0x3ce   : >> { %2216 = vpow2.f32 %v802_v9 }
 0x3cf   : >> { %2218 = vpow2.f32 %v799_v14 }
 0x3d8   : >> { %v2217_v11 = vpop.eup %2216 }
 0x3d9   : >> { %v805_v12 = vsel %vm741_vm4, %v2217_v11, 0.0  ;;  %v810_v13 = vpack.c.bf16 %v2217_v11, %v2217_v11  ;;  %v2219_v15 = vpop.eup %2218 }
 0x3da   : >> { %806 = vadd.xlane.f32.xlu1 %v805_v12  ;;  %v804_v17 = vmul.f32 %v2443_v52, %v2219_v15  ;;  %v809_v20 = vmul.f32 %v2439_v51, %v2219_v15 }
 0x3db   : >> { %1922 = vmatmul.mubr.msk.bf16.vlgmr.msra.gmra.mrb[0].mxu1 %vm741_vm4, %v810_v13 }
 0x467   : >> { %v807_v18 = vpop.xlane.xlu1 %806 }
 0x468   : >> { %v808_v19 = vadd.f32 %v807_v18, %v804_v17  }
 0x46a   : >> { %v3072_v52 = vmov %v808_v19  ;;  %2220 = vrcp.f32 (%p728_p8), %v808_v19 }
 0x474   : > { %v2221_v26 = vpop.eup (%p728_p8), %2220 }
 0x4ab   : > { %731 = sbr.rel (!%p728_p8) target bundleno = 599 (0x257), region = 160 }
 0x4ae   : >> { %v857_v21 = vpop.f32.mrb[0].mxu1 }
 0x4af   : >> { %v863_v22 = vadd.f32 %v857_v21, %v809_v20   ;;  %v1923_v23 = vpop.f32.mrb[1].mxu1 }
 0x4b0   : >> { %v860_v24 = vpop.f32.mrb[2].mxu1 }
 0x4b1   : >> { %v1924_v25 = vpop.f32.mrb[3].mxu1  ;;  %v3071_v51 = vmov %v863_v22  ;;  %v865_v27 = vmul.f32 (%p728_p8), %v2221_v26, %v863_v22 }
 0x4b3   : > { %v866_v28 = vpack.c.bf16 %v865_v27, %v865_v27 }
 0x4b5   : > { %868 = vst.msk [vmem:[#allocation3] sm:$0xf] %vm867_vm7, %v866_v28 }
 0x4b6 LB: >> { %v2507_v32 = vmov 0.0   ;;  %vm2508_vm8 = vmmov 0   ;;  %s1816_s21 = sshll.u32 %s2467_s14, 3  ;;  %s2509_s20 = smov 120   ;;  %s2467_s14 = sphi %s2810_s14, %s872_s14   ;;  %v2463_v31 = vphi %v2808_v31, %v3076_v31   ;;  %v2459_v30 = vphi %v2806_v30, %v3075_v30   ;;  %v2455_v29 = vphi %v2804_v29, %v3074_v29  }
 0x4b7   : >> { %1925 = vmatprep.subr.bf16.mxu0 %v2507_v32  ;;  %1927 = vmatprep.mubr.msk.bf16.mxu0 %vm2508_vm8, %v2507_v32  ;;  %s879_s25 = sshra.s32 %s1816_s21, 3  ;;  %v941_v37 = vstv %s1816_s21  ;;  %s2510_s19 = smov 88  }
 0x4b8   : >> { %1931 = vmatprep.subr.bf16.mxu1 %v2507_v32  ;;  %1933 = vmatprep.mubr.msk.bf16.mxu1 %vm2508_vm8, %v2507_v32  ;;  %s1817_s24 = sshll.u32 %s879_s25, 2  ;;  %v942_v38 = vadd.s32 %v941_v37, %v2787_v57  ;;  %s872_s14 = sadd.s32 1, %s2467_s14  }
 0x4b9   : >> { %s882_s23 = scalar_lea.vmem [#allocation2], %s1817_s24  ;;  %p871_p11 = scmp.ge.s32.totalorder %s872_s14, 1 }
 0x4ba   : >> { %v2222_v33 = vld [vmem:[%s882_s23] ss:$0 sps:$4 sm:$0xff]   ;;  %vm943_vm9 = vcmp.gt.s32.totalorder %v942_v38, %v2760_v39  ;;  %s2511_s9 = smov (%p871_p11), 8   ;;  %vm1021_vm10 = vcmask (%p871_p11), 126016   ;;  %v2837_v10 = vmov (%p871_p11), 0.0   ;;  %v2839_v11 = vmov (%p871_p11), 0.0  }
 0x4bb   : >> { %890 = vrot.lane.b32.xlu0 %v2222_v33, %s2509_s20  ;;  %v2841_v12 = vmov (%p871_p11), -1e+30   ;;  %s2843_s27 = smov (%p871_p11), 0  }
 0x4bf   : >> { %885 = vrot.lane.b32.xlu0 %v2762_v49, %s2509_s20 }
 0x52d   : >> { %v891_v34 = vpop.permute.xlu0 %890 }
 0x52e   : >> { %v897_v35 = vsel %vm741_vm4, %v891_v34, 0 }
 0x52f   : >> { %1926 = vmatpush3.bf16.xpose.msra.mxu0 %v897_v35 }
 0x531   : >> { %v886_v36 = vpop.permute.xlu0 %885 }
 0x536   : >> { %1928 = vmatmul.mubr.msk.bf16.vlgmr.msra.gmra.mrb[0].mxu0 %vm741_vm4, %v886_v36 }
 0x609   : >> { %v933_v40 = vpop.f32.mrb[0].mxu0 }
 0x60a   : >> { %v944_v41 = vsel %vm943_vm9, -1e+30, %v933_v40  ;;  %v1929_v42 = vpop.f32.mrb[1].mxu0 }
 0x60b   : >> { %v936_v43 = vpop.f32.mrb[2].mxu0  ;;  %v945_v44 = vsel %vm741_vm4, %v944_v41, -inf }
 0x60c   : >> { %946 = vmax.xlane.f32.xlu1 %v945_v44  ;;  %v1930_v45 = vpop.f32.mrb[3].mxu0 }
 0x61d   : >> { %962 = vrot.lane.b32.xlu1 %v2222_v33, %s2510_s19 }
 0x699   : >> { %v947_v46 = vpop.xlane.xlu1 %946 }
 0x69a   : >> { %v948_v47 = vmax.f32 %v2463_v31, %v947_v46  }
 0x69c   : >> { %v949_v48 = vsub.f32 %v2463_v31, %v948_v47  ;;  %v952_v50 = vsub.f32 %v944_v41, %v948_v47  ;;  %v3076_v31 = vmov %v948_v47 }
 0x69d   : >> { %v963_v51 = vpop.permute.xlu1 %962 }
 0x69e   : >> { %v953_v52 = vmul.f32 1.442695, %v952_v50  ;;  %v969_v53 = vsel %vm819_vm6, %v963_v51, 0  ;;  %v950_v58 = vmul.f32 1.442695, %v949_v48 }
 0x69f   : >> { %1932 = vmatpush3.bf16.msra.mxu1 %v969_v53 }
 0x6a0   : >> { %2223 = vpow2.f32 %v953_v52 }
 0x6a1   : >> { %2225 = vpow2.f32 %v950_v58 }
 0x6aa   : >> { %v2224_v54 = vpop.eup %2223 }
 0x6ab   : >> { %v956_v55 = vsel %vm741_vm4, %v2224_v54, 0.0  ;;  %v961_v56 = vpack.c.bf16 %v2224_v54, %v2224_v54  ;;  %v2226_v59 = vpop.eup %2225 }
 0x6ac   : >> { %957 = vadd.xlane.f32.xlu0 %v956_v55  ;;  %v955_v60 = vmul.f32 %v2459_v30, %v2226_v59  ;;  %v960_v63 = vmul.f32 %v2455_v29, %v2226_v59 }
 0x6ad   : >> { %1934 = vmatmul.mubr.msk.bf16.vlgmr.msra.gmra.mrb[0].mxu1 %vm741_vm4, %v961_v56 }
 0x739   : >> { %v958_v61 = vpop.xlane.xlu0 %957 }
 0x73a   : >> { %v959_v62 = vadd.f32 %v958_v61, %v955_v60  }
 0x73c   : >> { %v3075_v30 = vmov %v959_v62  ;;  %2227 = vrcp.f32 (%p871_p11), %v959_v62 }
 0x746   : > { %v2228_v6 = vpop.eup (%p871_p11), %2227 }
 0x77d   : > { %874 = sbr.rel (!%p871_p11) target bundleno = 1206 (0x4b6), region = 171 }
 0x780   : >> { %v1005_v0 = vpop.f32.mrb[0].mxu1 }
 0x781   : >> { %v1011_v1 = vadd.f32 %v1005_v0, %v960_v63   ;;  %v1935_v3 = vpop.f32.mrb[1].mxu1 }
 0x782   : >> { %v1008_v4 = vpop.f32.mrb[2].mxu1 }
 0x783   : >> { %v1936_v5 = vpop.f32.mrb[3].mxu1  ;;  %v3074_v29 = vmov %v1011_v1  ;;  %v1013_v7 = vmul.f32 (%p871_p11), %v2228_v6, %v1011_v1 }
 0x785   : > { %v1857_v8 = vpack.c.bf16 %v1013_v7, %v1013_v7 }
 0x787   : > { %1018 = vrot.lane.b32.xlu0 %v1857_v8, %s2511_s9 }
 0x7f9   : > { %v1019_v9 = vpop.permute.xlu0 %1018 }
 0x7fa   : > { %1022 = vst.msk [vmem:[#allocation3] sm:$0xf] %vm1021_vm10, %v1019_v9 }
 0x7fb LB: >> { %v2512_v13 = vmov 0.0   ;;  %vm2513_vm11 = vmmov 0   ;;  %s1822_s22 = sshll.u32 %s2483_s27, 3  ;;  %s2514_s24 = smov 112   ;;  %s2483_s27 = sphi %s2843_s27, %s1026_s27   ;;  %v2479_v12 = vphi %v2841_v12, %v3079_v12   ;;  %v2475_v11 = vphi %v2839_v11, %v3078_v11   ;;  %v2471_v10 = vphi %v2837_v10, %v3077_v10  }
 0x7fc   : >> { %1937 = vmatprep.subr.bf16.mxu0 %v2512_v13  ;;  %1939 = vmatprep.mubr.msk.bf16.mxu0 %vm2513_vm11, %v2512_v13  ;;  %s1033_s14 = sshra.s32 %s1822_s22, 3  ;;  %v1095_v19 = vstv %s1822_s22  ;;  %s2515_s23 = smov 80  }
 0x7fd   : >> { %1943 = vmatprep.subr.bf16.mxu1 %v2512_v13  ;;  %1945 = vmatprep.mubr.msk.bf16.mxu1 %vm2513_vm11, %v2512_v13  ;;  %s1823_s21 = sshll.u32 %s1033_s14, 2  ;;  %v1096_v20 = vadd.s32 %v1095_v19, %v2787_v57  ;;  %s1026_s27 = sadd.s32 1, %s2483_s27  }
 0x7fe   : >> { %s1036_s25 = scalar_lea.vmem [#allocation2], %s1823_s21  ;;  %p1025_p0 = scmp.ge.s32.totalorder %s1026_s27, 1 }
 0x7ff   : >> { %v2229_v14 = vld [vmem:[%s1036_s25] ss:$0 sps:$4 sm:$0xff]   ;;  %vm1097_vm12 = vcmp.gt.s32.totalorder %v1096_v20, %v2760_v39  ;;  %s2516_s20 = smov (%p1025_p0), 16   ;;  %vm1175_vm13 = vcmask (%p1025_p0), 191616   ;;  %v2870_v54 = vmov (%p1025_p0), 0.0   ;;  %v2872_v55 = vmov (%p1025_p0), 0.0  }
 0x800   : >> { %1044 = vrot.lane.b32.xlu0 %v2229_v14, %s2514_s24  ;;  %v2874_v56 = vmov (%p1025_p0), -1e+30   ;;  %s2876_s19 = smov (%p1025_p0), 0  }
 0x804   : >> { %1039 = vrot.lane.b32.xlu0 %v2762_v49, %s2514_s24 }
 0x872   : >> { %v1045_v15 = vpop.permute.xlu0 %1044 }
 0x873   : >> { %v1051_v17 = vsel %vm741_vm4, %v1045_v15, 0 }
 0x874   : >> { %1938 = vmatpush3.bf16.xpose.msra.mxu0 %v1051_v17 }
 0x876   : >> { %v1040_v18 = vpop.permute.xlu0 %1039 }
 0x87b   : >> { %1940 = vmatmul.mubr.msk.bf16.vlgmr.msra.gmra.mrb[0].mxu0 %vm741_vm4, %v1040_v18 }
 0x94e   : >> { %v1087_v21 = vpop.f32.mrb[0].mxu0 }
 0x94f   : >> { %v1098_v22 = vsel %vm1097_vm12, -1e+30, %v1087_v21  ;;  %v1941_v23 = vpop.f32.mrb[1].mxu0 }
 0x950   : >> { %v1090_v24 = vpop.f32.mrb[2].mxu0  ;;  %v1099_v25 = vsel %vm741_vm4, %v1098_v22, -inf }
 0x951   : >> { %1100 = vmax.xlane.f32.xlu1 %v1099_v25  ;;  %v1942_v26 = vpop.f32.mrb[3].mxu0 }
 0x962   : >> { %1116 = vrot.lane.b32.xlu1 %v2229_v14, %s2515_s23 }
 0x9de   : >> { %v1101_v27 = vpop.xlane.xlu1 %1100 }
 0x9df   : >> { %v1102_v28 = vmax.f32 %v2479_v12, %v1101_v27  }
 0x9e1   : >> { %v1103_v29 = vsub.f32 %v2479_v12, %v1102_v28  ;;  %v1106_v30 = vsub.f32 %v1098_v22, %v1102_v28  ;;  %v3079_v12 = vmov %v1102_v28 }
 0x9e2   : >> { %v1117_v31 = vpop.permute.xlu1 %1116 }
 0x9e3   : >> { %v1107_v32 = vmul.f32 1.442695, %v1106_v30  ;;  %v1123_v33 = vsel %vm819_vm6, %v1117_v31, 0  ;;  %v1104_v37 = vmul.f32 1.442695, %v1103_v29 }
 0x9e4   : >> { %1944 = vmatpush3.bf16.msra.mxu1 %v1123_v33 }
 0x9e5   : >> { %2230 = vpow2.f32 %v1107_v32 }
 0x9e6   : >> { %2232 = vpow2.f32 %v1104_v37 }
 0x9ef   : >> { %v2231_v34 = vpop.eup %2230 }
 0x9f0   : >> { %v1110_v35 = vsel %vm741_vm4, %v2231_v34, 0.0  ;;  %v1115_v36 = vpack.c.bf16 %v2231_v34, %v2231_v34  ;;  %v2233_v38 = vpop.eup %2232 }
 0x9f1   : >> { %1111 = vadd.xlane.f32.xlu0 %v1110_v35  ;;  %v1109_v40 = vmul.f32 %v2475_v11, %v2233_v38  ;;  %v1114_v43 = vmul.f32 %v2471_v10, %v2233_v38 }
 0x9f2   : >> { %1946 = vmatmul.mubr.msk.bf16.vlgmr.msra.gmra.mrb[0].mxu1 %vm741_vm4, %v1115_v36 }
 0xa7e   : >> { %v1112_v41 = vpop.xlane.xlu0 %1111 }
 0xa7f   : >> { %v1113_v42 = vadd.f32 %v1112_v41, %v1109_v40  }
 0xa81   : >> { %v3078_v11 = vmov %v1113_v42  ;;  %2234 = vrcp.f32 (%p1025_p0), %v1113_v42 }
 0xa8b   : > { %v2235_v50 = vpop.eup (%p1025_p0), %2234 }
 0xac2   : > { %1028 = sbr.rel (!%p1025_p0) target bundleno = 2043 (0x7fb), region = 182 }
 0xac5   : >> { %v1159_v44 = vpop.f32.mrb[0].mxu1 }
 0xac6   : >> { %v1165_v45 = vadd.f32 %v1159_v44, %v1114_v43   ;;  %v1947_v46 = vpop.f32.mrb[1].mxu1 }
 0xac7   : >> { %v1162_v47 = vpop.f32.mrb[2].mxu1 }
 0xac8   : >> { %v1948_v48 = vpop.f32.mrb[3].mxu1  ;;  %v3077_v10 = vmov %v1165_v45  ;;  %v1167_v51 = vmul.f32 (%p1025_p0), %v2235_v50, %v1165_v45 }
 0xaca   : > { %v1858_v52 = vpack.c.bf16 %v1167_v51, %v1167_v51 }
 0xacc   : > { %1172 = vrot.lane.b32.xlu0 %v1858_v52, %s2516_s20 }
 0xb3e   : > { %v1173_v53 = vpop.permute.xlu0 %1172 }
 0xb3f   : > { %1176 = vst.msk [vmem:[#allocation3] sm:$0xf] %vm1175_vm13, %v1173_v53 }
 0xb40 LB: >> { %v2517_v58 = vmov 0.0   ;;  %vm2518_vm14 = vmmov 0   ;;  %s1828_s9 = sshll.u32 %s2499_s19, 3  ;;  %s2519_s21 = smov 104   ;;  %s2499_s19 = sphi %s2876_s19, %s1180_s19   ;;  %v2495_v56 = vphi %v2874_v56, %v3082_v56   ;;  %v2491_v55 = vphi %v2872_v55, %v3081_v55   ;;  %v2487_v54 = vphi %v2870_v54, %v3080_v54  }
 0xb41   : >> { %1949 = vmatprep.subr.bf16.mxu0 %v2517_v58  ;;  %1951 = vmatprep.mubr.msk.bf16.mxu0 %vm2518_vm14, %v2517_v58  ;;  %s1187_s27 = sshra.s32 %s1828_s9, 3  ;;  %v1249_v63 = vstv %s1828_s9  ;;  %s2520_s25 = smov 72  }
 0xb42   : >> { %1955 = vmatprep.subr.bf16.mxu1 %v2517_v58  ;;  %1957 = vmatprep.mubr.msk.bf16.mxu1 %vm2518_vm14, %v2517_v58  ;;  %s1829_s22 = sshll.u32 %s1187_s27, 2  ;;  %v1250_v0 = vadd.s32 %v1249_v63, %v2787_v57  ;;  %s1180_s19 = sadd.s32 1, %s2499_s19  }
 0xb43   : >> { %s1190_s14 = scalar_lea.vmem [#allocation2], %s1829_s22  ;;  %p1179_p7 = scmp.ge.s32.totalorder %s1180_s19, 1 }
 0xb44   : >> { %v2236_v59 = vld [vmem:[%s1190_s14] ss:$0 sps:$4 sm:$0xff]   ;;  %vm1251_vm15 = vcmp.gt.s32.totalorder %v1250_v0, %v2760_v39  ;;  %v2242_v31 = vld [vmem:[%s3042_s4 + $0x8] sm:$0xff] (%p1179_p7)   ;;  %s2521_s19 = smov (%p1179_p7), 24   ;;  %vm1329_vm2 = vcmask (%p1179_p7), 257216   ;;  %v2247_v63 = vld [vmem:[%s3046_s8 + $0x10] sm:$0xff] (%p1179_p7)  }
 0xb45   : >> { %1198 = vrot.lane.b32.xlu0 %v2236_v59, %s2519_s21  ;;  %v2241_v30 = vld [vmem:[%s3042_s4] sm:$0xff] (%p1179_p7)   ;;  %v2248_v0 = vld [vmem:[%s3046_s8 + $0x18] sm:$0xff] (%p1179_p7)   ;;  %s3083_s27 = sld [smem:[#allocation14_spill]] (%p1179_p7)  ;;  %s1854_s22 = sshll.u32 (%p1179_p7), %s2427_s16, 7 }
 0xb46   : > { %v1834_v34 = vld [vmem:[%s3043_s5] ss:$0 sm:$0xff] (%p1179_p7)  ;;  %s1633_s14 = sshll.u32 (%p1179_p7), %s2766_s17, 4  ;;  %s3084_s24 = sld [smem:[#allocation15_spill]] (%p1179_p7)  ;;  %s2989_s14 = int_to_ptr.vmem [resolvable:$true] %s1633_s14 }
 0xb47   : > { %v2243_v48 = vld [vmem:[%s3044_s6] sm:$0xff] (%p1179_p7)   ;;  %s1619_s16 = scalar_lea.sflag (%p1179_p7), [#allocation6], %s2709_s29  ;;  %s2289_s20 = scalar_lea.vmem (%p1179_p7), %s2989_s14, 128 }
 0xb48   : > { %v2245_v50 = vld [vmem:[%s3046_s8] sm:$0xff] (%p1179_p7)   ;;  %p2290_p13 = scmp.ne.s32.totalorder (%p1179_p7), %s2989_s14, %s2289_s20  ;;  %p3085_p3 = scmp.ne.s32.totalorder (%p1179_p7), %s3065_s26, 0 }
 0xb49   : >> { %1193 = vrot.lane.b32.xlu0 %v2762_v49, %s2519_s21  ;;  %v1839_v58 = vld [vmem:[%s3051_s13] ss:$0 sm:$0xff] (%p1179_p7)  ;;  %s2522_s9 = smov (%p1179_p7), [#allocation7]  }
 0xb4a   : > { %p2291_p6 = pnand (%p1179_p7), %p2290_p13, %p3085_p3 }
 0xb4c   : > { %s2987_s23 = scalar_lea.hbm (%p1179_p7), %s3084_s24, %s1854_s22  ;;  %p2292_p4 = pneg (%p1179_p7), %p2291_p6 }
 0xbb7   : >> { %v1199_v60 = vpop.permute.xlu0 %1198 }
 0xbb8   : >> { %v1205_v61 = vsel %vm741_vm4, %v1199_v60, 0 }
 0xbb9   : >> { %1950 = vmatpush3.bf16.xpose.msra.mxu0 %v1205_v61 }
 0xbba   : > { %1977 = vmatprep.subr.bf16.mxu0 (%p1179_p7), %v2502_v16 }
 0xbbb   : >> { %v1194_v62 = vpop.permute.xlu0 %1193 }
 0xbc0   : >> { %1952 = vmatmul.mubr.msk.bf16.vlgmr.msra.gmra.mrb[0].mxu0 %vm741_vm4, %v1194_v62  ;;  %v2246_v62 = vld [vmem:[%s3046_s8 + $0x8] sm:$0xff] (%p1179_p7)  }
 0xbc1   : > { %1993 = vmatprep.mubr.msk.bf16.mxu0 (%p1179_p7), %vm2503_vm1, %v2502_v16  ;;  %1978 = vmatpush3.bf16.msra.mxu0 (%p1179_p7), %v2245_v50 }
 0xbc2   : > { %1979 = vmatprep.subr.bf16.mxu0 (%p1179_p7), %v2502_v16 }
 0xbc5   : > { %1980 = vmatpush3.bf16.msra.mxu0 (%p1179_p7), %v2246_v62 }
 0xbc6   : > { %1981 = vmatprep.subr.bf16.mxu0 (%p1179_p7), %v2502_v16 }
 0xbc9   : > { %1982 = vmatpush3.bf16.msra.mxu0 (%p1179_p7), %v2247_v63 }
 0xbca   : > { %1983 = vmatprep.subr.bf16.mxu0 (%p1179_p7), %v2502_v16 }
 0xbcd   : > { %1984 = vmatpush3.bf16.msra.mxu0 (%p1179_p7), %v2248_v0 }
 0xbce   : > { %1985 = vmatprep.subr.bf16.mxu0 (%p1179_p7), %v2502_v16 }
 0xc93   : >> { %v1241_v1 = vpop.f32.mrb[0].mxu0 }
 0xc94   : >> { %v1252_v3 = vsel %vm1251_vm15, -1e+30, %v1241_v1  ;;  %v1953_v4 = vpop.f32.mrb[1].mxu0  ;;  %v2249_v1 = vld [vmem:[%s3046_s8 + $0x20] sm:$0xff] (%p1179_p7)  }
 0xc95   : >> { %v1244_v5 = vpop.f32.mrb[2].mxu0  ;;  %v1253_v6 = vsel %vm741_vm4, %v1252_v3, -inf  ;;  %1986 = vmatpush3.bf16.msra.mxu0 (%p1179_p7), %v2249_v1  ;;  %v2251_v4 = vld [vmem:[%s3046_s8 + $0x30] sm:$0xff] (%p1179_p7)  }
 0xc96   : >> { %1254 = vmax.xlane.f32.xlu1 %v1253_v6  ;;  %v1954_v7 = vpop.f32.mrb[3].mxu0  ;;  %1987 = vmatprep.subr.bf16.mxu0 (%p1179_p7), %v2502_v16  ;;  %v2252_v5 = vld [vmem:[%s3046_s8 + $0x38] sm:$0xff] (%p1179_p7)   ;;  %v1840_v6 = vld [vmem:[%s3045_s7] ss:$0 sm:$0xff] (%p1179_p7) }
 0xca7   : >> { %1270 = vrot.lane.b32.xlu1 %v2236_v59, %s2520_s25 }
 0xd23   : >> { %v1255_v8 = vpop.xlane.xlu1 %1254 }
 0xd24   : >> { %v1256_v9 = vmax.f32 %v2495_v56, %v1255_v8  }
 0xd26   : >> { %v1257_v10 = vsub.f32 %v2495_v56, %v1256_v9  ;;  %v1260_v11 = vsub.f32 %v1252_v3, %v1256_v9  ;;  %v3082_v56 = vmov %v1256_v9  ;;  %v2250_v3 = vld [vmem:[%s3046_s8 + $0x28] sm:$0xff] (%p1179_p7)  }
 0xd27   : >> { %v1271_v12 = vpop.permute.xlu1 %1270  ;;  %1988 = vmatpush3.bf16.msra.mxu0 (%p1179_p7), %v2250_v3 }
 0xd28   : >> { %v1261_v13 = vmul.f32 1.442695, %v1260_v11  ;;  %v1277_v14 = vsel %vm819_vm6, %v1271_v12, 0  ;;  %v1258_v19 = vmul.f32 1.442695, %v1257_v10  ;;  %1989 = vmatprep.subr.bf16.mxu0 (%p1179_p7), %v2502_v16 }
 0xd29   : >> { %1956 = vmatpush3.bf16.msra.mxu1 %v1277_v14 }
 0xd2a   : >> { %2237 = vpow2.f32 %v1261_v13  ;;  %1961 = vmatprep.subr.bf16.mxu1 (%p1179_p7), %v2502_v16 }
 0xd2b   : >> { %2239 = vpow2.f32 %v1258_v19  ;;  %1990 = vmatpush3.bf16.msra.mxu0 (%p1179_p7), %v2251_v4 }
 0xd2c   : > { %1991 = vmatprep.subr.bf16.mxu0 (%p1179_p7), %v2502_v16 }
 0xd2f   : > { %1992 = vmatpush3.bf16.msra.mxu0 (%p1179_p7), %v2252_v5 }
 0xd34   : >> { %v2238_v15 = vpop.eup %2237 }
 0xd35   : >> { %v1264_v17 = vsel %vm741_vm4, %v2238_v15, 0.0  ;;  %v1269_v18 = vpack.c.bf16 %v2238_v15, %v2238_v15  ;;  %v2240_v20 = vpop.eup %2239 }
 0xd36   : >> { %1265 = vadd.xlane.f32.xlu0 %v1264_v17  ;;  %v1263_v21 = vmul.f32 %v2491_v55, %v2240_v20  ;;  %v1268_v24 = vmul.f32 %v2487_v54, %v2240_v20 }
 0xd37   : >> { %1958 = vmatmul.mubr.msk.bf16.vlgmr.msra.gmra.mrb[0].mxu1 %vm741_vm4, %v1269_v18 }
 0xd38   : > { %1965 = vmatprep.mubr.msk.bf16.mxu1 (%p1179_p7), %vm2503_vm1, %v2502_v16  ;;  %1962 = vmatpush3.bf16.msra.mxu1 (%p1179_p7), %v2241_v30 }
 0xd39   : > { %1963 = vmatprep.subr.bf16.mxu1 (%p1179_p7), %v2502_v16 }
 0xd3c   : > { %1964 = vmatpush3.bf16.msra.mxu1 (%p1179_p7), %v2242_v31 }
 0xd3d   : > { %1969 = vmatprep.subr.bf16.mxu1 (%p1179_p7), %v2502_v16 }
 0xdc3   : >> { %v1266_v22 = vpop.xlane.xlu0 %1265 }
 0xdc4   : >> { %v1267_v23 = vadd.f32 %v1266_v22, %v1263_v21   ;;  %v1844_v22 = vld [vmem:[%s3083_s27] ss:$0 sm:$0xff] (%p1179_p7) }
 0xdc6   : >> { %v3081_v55 = vmov %v1267_v23  ;;  %2253 = vrcp.f32 (%p1179_p7), %v1267_v23 }
 0xdc7   : > { %v1838_v55 = vld [vmem:[%s3050_s12] ss:$0 sm:$0xff] (%p1179_p7) }
 0xdd0   : > { %v2254_v39 = vpop.eup (%p1179_p7), %2253 }
 0xe07   : > { %1182 = sbr.rel (!%p1179_p7) target bundleno = 2880 (0xb40), region = 193 }
 0xe0a   : >> { %v1313_v25 = vpop.f32.mrb[0].mxu1 }
 0xe0b   : >> { %v1319_v26 = vadd.f32 %v1313_v25, %v1268_v24   ;;  %v1959_v27 = vpop.f32.mrb[1].mxu1 }
 0xe0c   : >> { %v1316_v28 = vpop.f32.mrb[2].mxu1 }
 0xe0d   : >> { %v1960_v29 = vpop.f32.mrb[3].mxu1  ;;  %v3080_v54 = vmov %v1319_v26  ;;  %v1321_v49 = vmul.f32 (%p1179_p7), %v2254_v39, %v1319_v26 }
 0xe0f   : > { %v1859_v57 = vpack.c.bf16 %v1321_v49, %v1321_v49 }
 0xe11   : > { %1326 = vrot.lane.b32.xlu0 %v1859_v57, %s2521_s19  ;;  %s2293_s19 = sshll.u32 %s2522_s9, 4  ;;  %s2294_s19 = int_to_ptr.vmem [resolvable:$false] %s2293_s19 }
 0xe12   : > { %s2295_s27 = scalar_lea.vmem %s2294_s19, 256  ;;  %p2296_p10 = scmp.lt.s32.totalorder %s2989_s14, %s2294_s19 }
 0xe13   : > { %p2297_p12 = scmp.lt.s32.totalorder %s2295_s27, %s2289_s20 }
 0xe15   : > { %p2298_p1 = por %p2297_p12, %p2296_p10 }
 0xe17   : > { %p2299_p2 = pnand %p2298_p1, %p2292_p4 }
 0xe83   : > { %v1327_v32 = vpop.permute.xlu0 %1326 }
 0xe84   : > { %1330 = vst.msk [vmem:[#allocation3] sm:$0xf] %vm1329_vm2, %v1327_v32 }
 0xe8b   : > { %v1331_v33 = vld [vmem:[#allocation3] sm:$0xf] }
 0xe8c   : > { %1966 = vmatmul.mubr.msk.bf16.vlgmr.msra.gmra.mrb[0].mxu1 %vm535_vm0, %v1331_v33 }
 0xe8d   : > { %1973 = vmatprep.mubr.msk.bf16.mxu1 %vm2503_vm1, %v2502_v16  ;;  %1970 = vmatpush3.bf16.msra.mxu1 %v2243_v48 }
 0xe8e   : > { %1971 = vmatprep.subr.bf16.mxu1 %v2502_v16 }
 0xf5f   : > { %v1392_v35 = vpop.f32.mrb[0].mxu1 }
 0xf60   : > { %v1393_v36 = vadd.f32 %v1834_v34, %v1392_v35  ;;  %v1967_v37 = vpop.f32.mrb[1].mxu1 }
 0xf61   : > { %v1395_v38 = vpop.f32.mrb[2].mxu1 }
 0xf62   : > { %v2924_v40 = vadd.f32 %v1393_v36, %v2722_v2  ;;  %v1968_v41 = vpop.f32.mrb[3].mxu1  ;;  %v2244_v2 = vld [vmem:[%s3044_s6 + $0x8] sm:$0xff]  }
 0xf63   : > { %1972 = vmatpush3.bf16.msra.mxu1 %v2244_v2 }
 0xf64   : > { %v1401_v42 = vsel %vm535_vm0, %v2924_v40, 0.0 }
 0xf65   : > { %1402 = vadd.xlane.f32.xlu0 %v1401_v42 }
 0xff2   : > { %v1403_v43 = vpop.xlane.xlu0 %1402 }
 0xff3   : > { %v1404_v44 = vmul.f32 0.03125, %v1403_v43 }
 0xff5   : > { %v1405_v45 = vsub.f32 %v2924_v40, %v1404_v44 }
 0xff7   : > { %v1406_v46 = vmul.f32 %v1405_v45, %v1405_v45 }
 0xff9   : > { %v1407_v47 = vsel %vm535_vm0, %v1406_v46, 0.0 }
 0xffa   : > { %1408 = vadd.xlane.f32.xlu1 %v1407_v47 }
0x1087   : > { %v1409_v51 = vpop.xlane.xlu1 %1408 }
0x1088   : > { %v1410_v52 = vmul.f32 0.03125, %v1409_v51 }
0x108a   : > { %v1411_v53 = vadd.f32 1e-05, %v1410_v52 }
0x108c   : > { %2255 = vrsqrt.f32 %v1411_v53 }
0x1096   : > { %v2256_v54 = vpop.eup %2255 }
0x1097   : > { %v1413_v56 = vmul.f32 %v2256_v54, %v1405_v45 }
0x1099   : > { %v1420_v59 = vmul.f32 %v1838_v55, %v1413_v56 }
0x109b   : > { %v1427_v60 = vadd.f32 %v1839_v58, %v1420_v59 }
0x109d   : > { %v1428_v61 = vpack.c.bf16 %v1427_v60, %v1427_v60 }
0x109f   : > { %1974 = vmatmul.mubr.msk.bf16.vlgmr.msra.gmra.mrb[4].mxu1 %vm535_vm0, %v1428_v61 }
0x1172   : > { %v1489_v7 = vpop.f32.mrb[4].mxu1 }
0x1173   : > { %v1490_v8 = vadd.f32 %v1840_v6, %v1489_v7  ;;  %v1975_v9 = vpop.f32.mrb[5].mxu1 }
0x1174   : > { %v1492_v10 = vpop.f32.mrb[6].mxu1 }
0x1175   : > { %v1496_v11 = vmul.f32 %v1490_v8, %v1490_v8  ;;  %v1976_v12 = vpop.f32.mrb[7].mxu1  ;;  %v1495_v16 = vmul.f32 0.5, %v1490_v8 }
0x1177   : > { %v1497_v13 = vmul.f32 %v1496_v11, %v1490_v8 }
0x1179   : > { %v1498_v14 = vmul.f32 0.044715, %v1497_v13 }
0x117b   : > { %v1499_v15 = vadd.f32 %v1498_v14, %v1490_v8 }
0x117d   : > { %v1500_v17 = vmul.f32 0.7978845, %v1499_v15 }
0x117f   : > { %2257 = vtanh.f32 %v1500_v17 }
0x1189   : > { %v2258_v18 = vpop.eup %2257 }
0x118a   : > { %v1502_v19 = vadd.f32 1.0, %v2258_v18 }
0x118c   : > { %v1503_v20 = vmul.f32 %v1502_v19, %v1495_v16 }
0x118e   : > { %v1504_v21 = vpack.c.bf16 %v1503_v20, %v1503_v20 }
0x1190   : > { %1994 = vmatmul.mubr.bf16.vlgmr.msra.gmra.mrb[0].mxu0 %v1504_v21 }
0x1263   : > { %v1610_v23 = vpop.f32.mrb[0].mxu0 }
0x1264   : > { %v1611_v24 = vadd.f32 %v1844_v22, %v1610_v23  ;;  %v1995_v25 = vpop.f32.mrb[1].mxu0 }
0x1265   : > { %v1613_v26 = vpop.f32.mrb[2].mxu0 }
0x1266   : > { %v1616_v27 = vadd.f32 %v1611_v24, %v2924_v40  ;;  %v1996_v28 = vpop.f32.mrb[3].mxu0 }
0x1268   : > { %1617 = vst.msk [vmem:[%s2766_s17] sm:$0xff] %vm535_vm0, %v1616_v27 }
0x1269   : > { %2302 = shalt.err (!%p2299_p2)
}
0x126a   : > { %s2303_s29 = scalar_lea.hbm %s2987_s23, 128  ;;  %s2307_s21 = scalar_lea.hbm %s3084_s24, 256 }
0x126b   : > { %p2304_p5 = scmp.ne.s32.totalorder %s2987_s23, %s2303_s29  ;;  %p2308_p11 = scmp.lt.u32.totalorder %s2987_s23, %s3084_s24 }
0x126c   : > { %p2309_p0 = scmp.lt.u32.totalorder %s2307_s21, %s2303_s29  ;;  %p2311_p13 = scmp.lt.u32.totalorder %s2303_s29, %s2987_s23 }
0x126d   : > { %p2305_p9 = pnand %p2304_p5, %p3085_p3 }
0x126e   : > { %p2310_p7 = por %p2309_p0, %p2308_p11 }
0x126f   : > { %p2306_p8 = pneg %p2305_p9 }
0x1270   : > { %p2312_p6 = por %p2311_p13, %p2310_p7 }
0x1272   : > { %p2313_p4 = pnand %p2312_p6, %p2306_p8 }
0x1274   : > { %2316 = shalt.err (!%p2313_p4)
}
0x1275   : > { %1999 = dma.vmem_to_hbm [thread:$0]  (%p3085_p3), %s2989_s14, 128, %s2987_s23, %s1619_s16  }
0x1276 PF: > { %s3086_s20 = sld [smem:[#allocation10_spill]]  ;;  %p3087_p10 = scmp.ne.s32.totalorder %s3067_s28, 0 }
0x1277   : > { %p3088_p12 = scmp.ge.s32.totalorder %s2435_s18, 2 }
0x1279   : > { %p2006_p1 = pnand %p3088_p12, %p3087_p10 }
0x127c   : > { %s1645_s19 = sand.u32 1, %s3086_s20  }
0x127d   : > { %s1646_s27 = scalar_lea.sflag [#allocation6], %s1645_s19 }
0x127e   : > { %2410 = dma.done.wait (!%p2006_p1), %s1646_s27, 128  }
0x127f   : > { %2412 = vsyncadd (!%p2006_p1), %s1646_s27, 4294967168  ;;  %s30_s18 = sadd.s32 1, %s2435_s18   ;;  %s3089_s26 = sld [smem:[#allocation13_spill]] }
0x1280   : > { %p27_p2 = scmp.ge.s32.totalorder %s30_s18, 4   ;;  %s3090_s16 = sld [smem:[#allocation11_spill]] }
0x1281   : > { %s3091_s17 = sld [smem:[#allocation12_spill]]  ;;  %s3092_s29 = smov %s2419_s30 }
0x1282   : > { %s3093_s30 = smov %s2423_s15  ;;  %29 = sbr.rel (!%p27_p2) target bundleno = 9 (0x9), region = 204 }
0x1285   : > { %s3094_s15 = smov %s3089_s26 }
0x1289   :  { %1651 = vsyncpa [#allocation5], 1 }
0x128a   :  { %1653 = vsyncpa [#allocation5 + $0x1], 1 }
0x128b   :  { %1654 = vsyncpa [#allocation6], 1 }
0x128c   :  { %1656 = vsyncpa [#allocation6 + $0x1], 1 }

</bundles_post_ra>
